<compile_context>
chip_gen: v5e
topology: v5e:2x2
jax: 0.10.0
libtpu: 0.0.40
codegen_flags: <defaults>
</compile_context>

<pallas_src>
import jax
import jax.numpy as jnp
from jax.experimental import pallas as pl
from jax.experimental.pallas import tpu as pltpu

# Original 5x5 filters (used only by the pure-JAX reference check).
FILTER_1 = (
    (0, 0, 0, 0, 0),
    (0, -1, 2, -1, 0),
    (0, 2, 4, 2, 0),
    (0, -1, 2, -1, 0),
    (0, 0, 0, 0, 0),
)
FILTER_2 = (
    (-1, 2, -2, 2, -1),
    (2, -6, 8, -6, 2),
    (-2, 8, -12, 8, -2),
    (2, -6, 8, -6, 2),
    (-1, 2, -2, 2, -1),
)
FILTER_3 = (
    (0, 0, 0, 0, 0),
    (0, 0, 0, 0, 0),
    (0, 1, -2, 1, 0),
    (0, 0, 0, 0, 0),
    (0, 0, 0, 0, 0),
)

# Separable 1-D taps (exact decompositions, verified against the filters above).
P3 = (1, 2, 1)              # FILTER_1 =  P3⊗P3 - 2·W3⊗W3   (effective 3x3)
W3 = (1, 0, 1)
U5 = (1, -2, 2, -2, 1)      # FILTER_2 = -(U5⊗U5) - 2·(V5⊗V5)
V5 = (0, 1, -2, 1, 0)
D3 = (1, -2, 1)             # FILTER_3 = horizontal [1,-2,1]


def _wt(t, x):
    """Weight a term by an integer tap, skipping the multiply for +-1."""
    if t == 1:
        return x
    if t == -1:
        return -x
    return jnp.float32(t) * x


def _wpass(x, taps):
    """'valid' 1-D conv along axis 1 (W / sublane axis) of a (H', W', TN) value."""
    wout = x.shape[1] - (len(taps) - 1)
    acc = None
    for dj, t in enumerate(taps):
        if t == 0:
            continue
        term = _wt(t, x[:, dj:dj + wout, :])
        acc = term if acc is None else acc + term
    return acc


def _hpass(x, taps):
    """'valid' 1-D conv along axis 0 (H / leading axis) of a (H', W', TN) value."""
    hout = x.shape[0] - (len(taps) - 1)
    acc = None
    for di, t in enumerate(taps):
        if t == 0:
            continue
        term = _wt(t, x[di:di + hout, :, :])
        acc = term if acc is None else acc + term
    return acc


def _pad_hw(x, ph, pw):
    """Zero-pad a (H', W', TN) value by ph rows / pw cols on both sides."""
    h, w, tn = x.shape
    if pw:
        zc = jnp.zeros((h, pw, tn), x.dtype)
        x = jnp.concatenate([zc, x, zc], axis=1)
    if ph:
        zr = jnp.zeros((ph, x.shape[1], tn), x.dtype)
        x = jnp.concatenate([zr, x, zr], axis=0)
    return x


def residual_feature_kernel(x_ref, o_ref):
    # x_ref / o_ref: (H, W, TN) with the plane axis N on lanes.
    x = x_ref[...].astype(jnp.float32)

    # conv1 (edge features): FILTER_1 = P3⊗P3 - 2·W3⊗W3, zero-pad 1.
    xp = _pad_hw(x, 1, 1)
    a1 = _hpass(_wpass(xp, P3), P3) - 2.0 * _hpass(_wpass(xp, W3), W3)

    # conv2 (texture features): FILTER_2 = -(U5⊗U5) - 2·(V5⊗V5), zero-pad 2.
    a1p = _pad_hw(a1, 2, 2)
    a2 = -_hpass(_wpass(a1p, U5), U5) - 2.0 * _hpass(_wpass(a1p, V5), V5)

    # conv3 (residual features): horizontal [1,-2,1], zero-pad 1 along W only
    # (vertical taps of FILTER_3 are zero).  Applied directly on the a2 value —
    # no re-pad store / reload between stages.
    a3 = _wpass(_pad_hw(a2, 0, 1), D3)

    o_ref[...] = a3.astype(o_ref.dtype)


def _vmem_capacity_bytes():
    try:
        return int(pltpu.get_tpu_info().vmem_capacity_bytes)
    except Exception:
        return 64 * 1024 * 1024  # conservative fallback (v7x per-TC capacity)


def _choose_tn(N, H, W, vmem_limit):
    """Pick the lane-axis tile TN (multiple of 128, or N when N < 128)."""
    if N <= 128:
        return N
    plane_bytes = H * W * 4  # one (H, W, 1) f32 plane slot
    live_factor = 12         # ~peak simultaneously-live plane values incl. dbl-buffered I/O
    fit = max(1, (vmem_limit // 2) // (plane_bytes * live_factor))  # VMEM headroom
    blk = max(1, (8 * 1024 * 1024) // plane_bytes)                  # <= ~8 MiB I/O blocks
    bal = max(N // 8, 128)                                          # >= ~8 grid steps
    tn = min(fit, blk, bal)
    tn = max(128, (tn // 128) * 128)
    return min(tn, N)


def residual_feature(x, *, tn=None):
    """x: (B, C, H, W) float32 (NCHW). Returns (B, C, H, W)."""
    B, C, H, W = x.shape
    N = B * C

    cap = _vmem_capacity_bytes()
    # v5e/v6e: 96 MiB (>> 16/32 MiB scoped default); v7x: 48 MiB (< 64 MiB phys).
    vmem_limit = min((cap * 3) // 4, 96 * 1024 * 1024)

    if tn is None:
        tn = _choose_tn(N, H, W, vmem_limit)

    # Lane-dense layout: planes on the last (lane) axis.
    x_lanes = jnp.transpose(x.reshape(N, H, W), (1, 2, 0))  # (H, W, N)

    grid = (pl.cdiv(N, tn),)
    out = pl.pallas_call(
        residual_feature_kernel,
        out_shape=jax.ShapeDtypeStruct((H, W, N), x.dtype),
        grid=grid,
        in_specs=[pl.BlockSpec((H, W, tn), lambda i: (0, 0, i))],
        out_specs=pl.BlockSpec((H, W, tn), lambda i: (0, 0, i)),
        compiler_params=pltpu.CompilerParams(
            dimension_semantics=("parallel",),
            vmem_limit_bytes=vmem_limit),
    )(x_lanes)

    return jnp.transpose(out, (2, 0, 1)).reshape(B, C, H, W)


def _reference(x):
    """Pure-JAX depthwise reference matching F.conv2d(..., padding=2, groups=C)."""
    B, C, H, W = x.shape

    def dwconv(inp, filt_2d):
        k = jnp.asarray(filt_2d, jnp.float32)
        kern = jnp.broadcast_to(k[None, None, :, :], (C, 1, 5, 5))  # OIHW
        return jax.lax.conv_general_dilated(
            inp, kern, window_strides=(1, 1), padding=((2, 2), (2, 2)),
            dimension_numbers=("NCHW", "OIHW", "NCHW"),
            feature_group_count=C,
            precision=jax.lax.Precision.HIGHEST)

    y = dwconv(x, FILTER_1)
    y = dwconv(y, FILTER_2)
    y = dwconv(y, FILTER_3)
    return y


if __name__ == "__main__":
    key = jax.random.PRNGKey(0)
    B, C, H, W = 2, 4, 16, 16
    x = jax.random.normal(key, (B, C, H, W), dtype=jnp.float32)

    out = jax.block_until_ready(residual_feature(x))
    ref = jax.block_until_ready(_reference(x))

    assert out.shape == (B, C, H, W)
    err = float(jnp.max(jnp.abs(out - ref)))
    tol = 1e-3 * max(1.0, float(jnp.max(jnp.abs(ref))))
    assert err <= tol, (err, tol)
    print("KERNEL_OK")
</pallas_src>

<mosaic_0001>
module attributes {stable_mosaic.version = 11 : i64} {
  func.func @residual_feature_kernel(%arg0: i32, %arg1: memref<16x16x8xf32, #tpu.memory_space<vmem>>, %arg2: memref<16x16x8xf32, #tpu.memory_space<vmem>>) attributes {dimension_semantics = [#tpu.dimension_semantics<parallel>], iteration_bounds = array<i64: 1>, scalar_prefetch = 0 : i64, scratch_operands = 0 : i64, tpu.core_type = #tpu.core_type<tc>, window_params = [{transform_indices = @transform_0, window_bounds = array<i64: 16, 16, 8>}, {transform_indices = @transform_1, window_bounds = array<i64: 16, 16, 8>}]} {
    %c0 = arith.constant 0 : index
    %c0_0 = arith.constant 0 : index
    %c0_1 = arith.constant 0 : index
    %0 = vector.load %arg1[%c0, %c0_0, %c0_1] : memref<16x16x8xf32, #tpu.memory_space<vmem>>, vector<16x16x8xf32>
    %cst = arith.constant 0.000000e+00 : f32
    %1 = vector.broadcast %cst : f32 to vector<16x1x8xf32>
    %2 = tpu.concatenate %1, %0, %1 in 1 : vector<16x1x8xf32>, vector<16x16x8xf32>, vector<16x1x8xf32> -> vector<16x18x8xf32>
    %cst_2 = arith.constant 0.000000e+00 : f32
    %3 = vector.broadcast %cst_2 : f32 to vector<1x18x8xf32>
    %4 = tpu.concatenate %3, %2, %3 in 0 : vector<1x18x8xf32>, vector<16x18x8xf32>, vector<1x18x8xf32> -> vector<18x18x8xf32>
    %5 = vector.extract_strided_slice %4 {offsets = [0, 0, 0], sizes = [18, 16, 8], strides = [1, 1, 1]} : vector<18x18x8xf32> to vector<18x16x8xf32>
    %6 = vector.extract_strided_slice %4 {offsets = [0, 1, 0], sizes = [18, 16, 8], strides = [1, 1, 1]} : vector<18x18x8xf32> to vector<18x16x8xf32>
    %cst_3 = arith.constant 2.000000e+00 : f32
    %7 = vector.broadcast %cst_3 : f32 to vector<18x16x8xf32>
    %8 = arith.mulf %7, %6 : vector<18x16x8xf32>
    %9 = arith.addf %5, %8 : vector<18x16x8xf32>
    %10 = vector.extract_strided_slice %4 {offsets = [0, 2, 0], sizes = [18, 16, 8], strides = [1, 1, 1]} : vector<18x18x8xf32> to vector<18x16x8xf32>
    %11 = arith.addf %9, %10 : vector<18x16x8xf32>
    %12 = vector.extract_strided_slice %11 {offsets = [0, 0, 0], sizes = [16, 16, 8], strides = [1, 1, 1]} : vector<18x16x8xf32> to vector<16x16x8xf32>
    %13 = vector.extract_strided_slice %11 {offsets = [1, 0, 0], sizes = [16, 16, 8], strides = [1, 1, 1]} : vector<18x16x8xf32> to vector<16x16x8xf32>
    %cst_4 = arith.constant 2.000000e+00 : f32
    %14 = vector.broadcast %cst_4 : f32 to vector<16x16x8xf32>
    %15 = arith.mulf %14, %13 : vector<16x16x8xf32>
    %16 = arith.addf %12, %15 : vector<16x16x8xf32>
    %17 = vector.extract_strided_slice %11 {offsets = [2, 0, 0], sizes = [16, 16, 8], strides = [1, 1, 1]} : vector<18x16x8xf32> to vector<16x16x8xf32>
    %18 = arith.addf %16, %17 : vector<16x16x8xf32>
    %19 = vector.extract_strided_slice %4 {offsets = [0, 0, 0], sizes = [18, 16, 8], strides = [1, 1, 1]} : vector<18x18x8xf32> to vector<18x16x8xf32>
    %20 = vector.extract_strided_slice %4 {offsets = [0, 2, 0], sizes = [18, 16, 8], strides = [1, 1, 1]} : vector<18x18x8xf32> to vector<18x16x8xf32>
    %21 = arith.addf %19, %20 : vector<18x16x8xf32>
    %22 = vector.extract_strided_slice %21 {offsets = [0, 0, 0], sizes = [16, 16, 8], strides = [1, 1, 1]} : vector<18x16x8xf32> to vector<16x16x8xf32>
    %23 = vector.extract_strided_slice %21 {offsets = [2, 0, 0], sizes = [16, 16, 8], strides = [1, 1, 1]} : vector<18x16x8xf32> to vector<16x16x8xf32>
    %24 = arith.addf %22, %23 : vector<16x16x8xf32>
    %cst_5 = arith.constant 2.000000e+00 : f32
    %25 = vector.broadcast %cst_5 : f32 to vector<16x16x8xf32>
    %26 = arith.mulf %25, %24 : vector<16x16x8xf32>
    %27 = arith.subf %18, %26 : vector<16x16x8xf32>
    %cst_6 = arith.constant 0.000000e+00 : f32
    %28 = vector.broadcast %cst_6 : f32 to vector<16x2x8xf32>
    %29 = tpu.concatenate %28, %27, %28 in 1 : vector<16x2x8xf32>, vector<16x16x8xf32>, vector<16x2x8xf32> -> vector<16x20x8xf32>
    %cst_7 = arith.constant 0.000000e+00 : f32
    %30 = vector.broadcast %cst_7 : f32 to vector<2x20x8xf32>
    %31 = tpu.concatenate %30, %29, %30 in 0 : vector<2x20x8xf32>, vector<16x20x8xf32>, vector<2x20x8xf32> -> vector<20x20x8xf32>
    %32 = vector.extract_strided_slice %31 {offsets = [0, 0, 0], sizes = [20, 16, 8], strides = [1, 1, 1]} : vector<20x20x8xf32> to vector<20x16x8xf32>
    %33 = vector.extract_strided_slice %31 {offsets = [0, 1, 0], sizes = [20, 16, 8], strides = [1, 1, 1]} : vector<20x20x8xf32> to vector<20x16x8xf32>
    %cst_8 = arith.constant -2.000000e+00 : f32
    %34 = vector.broadcast %cst_8 : f32 to vector<20x16x8xf32>
    %35 = arith.mulf %34, %33 : vector<20x16x8xf32>
    %36 = arith.addf %32, %35 : vector<20x16x8xf32>
    %37 = vector.extract_strided_slice %31 {offsets = [0, 2, 0], sizes = [20, 16, 8], strides = [1, 1, 1]} : vector<20x20x8xf32> to vector<20x16x8xf32>
    %cst_9 = arith.constant 2.000000e+00 : f32
    %38 = vector.broadcast %cst_9 : f32 to vector<20x16x8xf32>
    %39 = arith.mulf %38, %37 : vector<20x16x8xf32>
    %40 = arith.addf %36, %39 : vector<20x16x8xf32>
    %41 = vector.extract_strided_slice %31 {offsets = [0, 3, 0], sizes = [20, 16, 8], strides = [1, 1, 1]} : vector<20x20x8xf32> to vector<20x16x8xf32>
    %cst_10 = arith.constant -2.000000e+00 : f32
    %42 = vector.broadcast %cst_10 : f32 to vector<20x16x8xf32>
    %43 = arith.mulf %42, %41 : vector<20x16x8xf32>
    %44 = arith.addf %40, %43 : vector<20x16x8xf32>
    %45 = vector.extract_strided_slice %31 {offsets = [0, 4, 0], sizes = [20, 16, 8], strides = [1, 1, 1]} : vector<20x20x8xf32> to vector<20x16x8xf32>
    %46 = arith.addf %44, %45 : vector<20x16x8xf32>
    %47 = vector.extract_strided_slice %46 {offsets = [0, 0, 0], sizes = [16, 16, 8], strides = [1, 1, 1]} : vector<20x16x8xf32> to vector<16x16x8xf32>
    %48 = vector.extract_strided_slice %46 {offsets = [1, 0, 0], sizes = [16, 16, 8], strides = [1, 1, 1]} : vector<20x16x8xf32> to vector<16x16x8xf32>
    %cst_11 = arith.constant -2.000000e+00 : f32
    %49 = vector.broadcast %cst_11 : f32 to vector<16x16x8xf32>
    %50 = arith.mulf %49, %48 : vector<16x16x8xf32>
    %51 = arith.addf %47, %50 : vector<16x16x8xf32>
    %52 = vector.extract_strided_slice %46 {offsets = [2, 0, 0], sizes = [16, 16, 8], strides = [1, 1, 1]} : vector<20x16x8xf32> to vector<16x16x8xf32>
    %cst_12 = arith.constant 2.000000e+00 : f32
    %53 = vector.broadcast %cst_12 : f32 to vector<16x16x8xf32>
    %54 = arith.mulf %53, %52 : vector<16x16x8xf32>
    %55 = arith.addf %51, %54 : vector<16x16x8xf32>
    %56 = vector.extract_strided_slice %46 {offsets = [3, 0, 0], sizes = [16, 16, 8], strides = [1, 1, 1]} : vector<20x16x8xf32> to vector<16x16x8xf32>
    %cst_13 = arith.constant -2.000000e+00 : f32
    %57 = vector.broadcast %cst_13 : f32 to vector<16x16x8xf32>
    %58 = arith.mulf %57, %56 : vector<16x16x8xf32>
    %59 = arith.addf %55, %58 : vector<16x16x8xf32>
    %60 = vector.extract_strided_slice %46 {offsets = [4, 0, 0], sizes = [16, 16, 8], strides = [1, 1, 1]} : vector<20x16x8xf32> to vector<16x16x8xf32>
    %61 = arith.addf %59, %60 : vector<16x16x8xf32>
    %cst_14 = arith.constant 0.000000e+00 : f32
    %62 = vector.broadcast %cst_14 : f32 to vector<16x16x8xf32>
    %63 = arith.subf %62, %61 : vector<16x16x8xf32>
    %64 = vector.extract_strided_slice %31 {offsets = [0, 1, 0], sizes = [20, 16, 8], strides = [1, 1, 1]} : vector<20x20x8xf32> to vector<20x16x8xf32>
    %65 = vector.extract_strided_slice %31 {offsets = [0, 2, 0], sizes = [20, 16, 8], strides = [1, 1, 1]} : vector<20x20x8xf32> to vector<20x16x8xf32>
    %cst_15 = arith.constant -2.000000e+00 : f32
    %66 = vector.broadcast %cst_15 : f32 to vector<20x16x8xf32>
    %67 = arith.mulf %66, %65 : vector<20x16x8xf32>
    %68 = arith.addf %64, %67 : vector<20x16x8xf32>
    %69 = vector.extract_strided_slice %31 {offsets = [0, 3, 0], sizes = [20, 16, 8], strides = [1, 1, 1]} : vector<20x20x8xf32> to vector<20x16x8xf32>
    %70 = arith.addf %68, %69 : vector<20x16x8xf32>
    %71 = vector.extract_strided_slice %70 {offsets = [1, 0, 0], sizes = [16, 16, 8], strides = [1, 1, 1]} : vector<20x16x8xf32> to vector<16x16x8xf32>
    %72 = vector.extract_strided_slice %70 {offsets = [2, 0, 0], sizes = [16, 16, 8], strides = [1, 1, 1]} : vector<20x16x8xf32> to vector<16x16x8xf32>
    %cst_16 = arith.constant -2.000000e+00 : f32
    %73 = vector.broadcast %cst_16 : f32 to vector<16x16x8xf32>
    %74 = arith.mulf %73, %72 : vector<16x16x8xf32>
    %75 = arith.addf %71, %74 : vector<16x16x8xf32>
    %76 = vector.extract_strided_slice %70 {offsets = [3, 0, 0], sizes = [16, 16, 8], strides = [1, 1, 1]} : vector<20x16x8xf32> to vector<16x16x8xf32>
    %77 = arith.addf %75, %76 : vector<16x16x8xf32>
    %cst_17 = arith.constant 2.000000e+00 : f32
    %78 = vector.broadcast %cst_17 : f32 to vector<16x16x8xf32>
    %79 = arith.mulf %78, %77 : vector<16x16x8xf32>
    %80 = arith.subf %63, %79 : vector<16x16x8xf32>
    %cst_18 = arith.constant 0.000000e+00 : f32
    %81 = vector.broadcast %cst_18 : f32 to vector<16x1x8xf32>
    %82 = tpu.concatenate %81, %80, %81 in 1 : vector<16x1x8xf32>, vector<16x16x8xf32>, vector<16x1x8xf32> -> vector<16x18x8xf32>
    %83 = vector.extract_strided_slice %82 {offsets = [0, 0, 0], sizes = [16, 16, 8], strides = [1, 1, 1]} : vector<16x18x8xf32> to vector<16x16x8xf32>
    %84 = vector.extract_strided_slice %82 {offsets = [0, 1, 0], sizes = [16, 16, 8], strides = [1, 1, 1]} : vector<16x18x8xf32> to vector<16x16x8xf32>
    %cst_19 = arith.constant -2.000000e+00 : f32
    %85 = vector.broadcast %cst_19 : f32 to vector<16x16x8xf32>
    %86 = arith.mulf %85, %84 : vector<16x16x8xf32>
    %87 = arith.addf %83, %86 : vector<16x16x8xf32>
    %88 = vector.extract_strided_slice %82 {offsets = [0, 2, 0], sizes = [16, 16, 8], strides = [1, 1, 1]} : vector<16x18x8xf32> to vector<16x16x8xf32>
    %89 = arith.addf %87, %88 : vector<16x16x8xf32>
    %c0_20 = arith.constant 0 : index
    %c0_21 = arith.constant 0 : index
    %c0_22 = arith.constant 0 : index
    %90 = vector.load %arg2[%c0_20, %c0_21, %c0_22] : memref<16x16x8xf32, #tpu.memory_space<vmem>>, vector<16x16x8xf32>
    tpu.vector_store %arg2[%c0_20, %c0_21, %c0_22], %89 {strides = array<i32>} : memref<16x16x8xf32, #tpu.memory_space<vmem>>, vector<16x16x8xf32>,
    return
  }
  func.func @transform_0(%arg0: i32) -> (i32, i32, i32) {
    %c0_i32 = arith.constant 0 : i32
    %c0_i32_0 = arith.constant 0 : i32
    %c0_i32_1 = arith.constant 0 : i32
    return %c0_i32, %c0_i32_0, %arg0 : i32, i32, i32
  }
  func.func @transform_1(%arg0: i32) -> (i32, i32, i32) {
    %c0_i32 = arith.constant 0 : i32
    %c0_i32_0 = arith.constant 0 : i32
    %c0_i32_1 = arith.constant 0 : i32
    return %c0_i32, %c0_i32_0, %arg0 : i32, i32, i32
  }
}

</mosaic_0001>

<bundles_post_ra>
// kernel: tpu_custom_call.1
= control target key start
LH: loop header
LB: loop body
LE: loop exit
PB: predicated region body
PF: predicated region fallthrough
CT: control target
= control target key end

     0   :  { %vm72_vm0 = vcmask 1040384   ;;  %vm298_vm1 = vcmask 1046528   ;;  %vm479_vm2 = vcmask 1045504   ;;  %vm885_vm3 = vcmask 1041408   ;;  %s7748_s0 = inlined_call_operand.vmem [shape: f32[16,16,8], index: 0, kind: input, shape index: {}]   ;;  %s7749_s1 = inlined_call_operand.vmem [shape: f32[16,16,8], index: 1, kind: output, shape index: {}]  }
   0x1   :  { %v3280_v0 = vld [vmem:[%s7748_s0] sm:$0xff]  ;;  %v3285_v1 = vld [vmem:[%s7748_s0 + $0x8] sm:$0xff]  ;;  %v3290_v2 = vld [vmem:[%s7748_s0 + $0x10] sm:$0xff]  ;;  %vm1500_vm4 = vcmask 1044480   ;;  %vm1681_vm5 = vcmask 1043456   ;;  %vm3226_vm6 = vcmask 64512  }
   0x2   :  { %v3295_v3 = vld [vmem:[%s7748_s0 + $0x18] sm:$0xff]  ;;  %v3300_v4 = vld [vmem:[%s7748_s0 + $0x20] sm:$0xff]  ;;  %v3305_v5 = vld [vmem:[%s7748_s0 + $0x28] sm:$0xff]  ;;  %v73_v14 = vrot.slane %v3280_v0, 7  ;;  %v74_v15 = vrot.slane %v3285_v1, 7  ;;  %v76_v19 = vrot.slane %v3290_v2, 7 }
   0x3   :  { %v3310_v6 = vld [vmem:[%s7748_s0 + $0x30] sm:$0xff]  ;;  %v3315_v7 = vld [vmem:[%s7748_s0 + $0x38] sm:$0xff]  ;;  %v3320_v8 = vld [vmem:[%s7748_s0 + $0x40] sm:$0xff]  ;;  %v77_v20 = vrot.slane %v3295_v3, 7  ;;  %v79_v21 = vrot.slane %v3300_v4, 7  ;;  %v80_v25 = vrot.slane %v3305_v5, 7 }
   0x4   :  { %v3325_v9 = vld [vmem:[%s7748_s0 + $0x48] sm:$0xff]  ;;  %v3330_v10 = vld [vmem:[%s7748_s0 + $0x50] sm:$0xff]  ;;  %v3335_v11 = vld [vmem:[%s7748_s0 + $0x58] sm:$0xff]  ;;  %v82_v26 = vrot.slane %v3310_v6, 7  ;;  %v83_v27 = vrot.slane %v3315_v7, 7  ;;  %v85_v31 = vrot.slane %v3320_v8, 7  ;;  %v3419_v37 = vsel %vm72_vm0, %v73_v14, %v74_v15 }
   0x5   :  { %v3340_v12 = vld [vmem:[%s7748_s0 + $0x60] sm:$0xff]  ;;  %v3345_v13 = vld [vmem:[%s7748_s0 + $0x68] sm:$0xff]  ;;  %v3352_v16 = vld [vmem:[%s7748_s0 + $0x70] sm:$0xff]  ;;  %v86_v32 = vrot.slane %v3325_v9, 7  ;;  %v88_v33 = vrot.slane %v3330_v10, 7  ;;  %8387 = vst [vmem:[#allocation2_spill] sm:$0xff] %v3419_v37  ;;  %v3440_v44 = vsel %vm72_vm0, %v76_v19, %v77_v20  ;;  %v3459_v51 = vsel %vm72_vm0, %v79_v21, %v80_v25 }
   0x6   :  { %v3357_v17 = vld [vmem:[%s7748_s0 + $0x78] sm:$0xff]  ;;  %v3362_v18 = vld [vmem:[%s7748_s0 + $0x80] sm:$0xff]  ;;  %v3370_v22 = vld [vmem:[%s7748_s0 + $0x88] sm:$0xff]  ;;  %v89_v38 = vrot.slane %v3335_v11, 7  ;;  %v91_v39 = vrot.slane %v3340_v12, 7  ;;  %v92_v40 = vrot.slane %v3345_v13, 7  ;;  %v3473_v10 = vsel %vm72_vm0, %v82_v26, %v83_v27 }
   0x7   :  { %v3375_v23 = vld [vmem:[%s7748_s0 + $0x90] sm:$0xff]  ;;  %v3380_v24 = vld [vmem:[%s7748_s0 + $0x98] sm:$0xff]  ;;  %v3388_v28 = vld [vmem:[%s7748_s0 + $0xa0] sm:$0xff]  ;;  %8388 = vst [vmem:[#allocation3_spill] sm:$0xff] %v3440_v44  ;;  %v94_v45 = vrot.slane %v3352_v16, 7  ;;  %v95_v46 = vrot.slane %v3357_v17, 7  ;;  %v3478_v12 = vsel %vm72_vm0, %v85_v31, %v86_v32 }
   0x8   :  { %v3393_v29 = vld [vmem:[%s7748_s0 + $0xa8] sm:$0xff]  ;;  %v30_v30 = vld [vmem:[%s7748_s0 + $0xb0] sm:$0xff]  ;;  %v3404_v34 = vld [vmem:[%s7748_s0 + $0xb8] sm:$0xff]  ;;  %v97_v47 = vrot.slane %v3362_v18, 7  ;;  %8389 = vst [vmem:[#allocation4_spill] sm:$0xff] %v3459_v51  ;;  %v98_v52 = vrot.slane %v3370_v22, 7  ;;  %v3483_v13 = vsel %vm72_vm0, %v88_v33, %v89_v38  ;;  %v3486_v16 = vsel %vm72_vm0, %v91_v39, %v92_v40 }
   0x9   :  { %v32_v35 = vld [vmem:[%s7748_s0 + $0xc0] sm:$0xff]  ;;  %v3412_v36 = vld [vmem:[%s7748_s0 + $0xc8] sm:$0xff]  ;;  %v34_v41 = vld [vmem:[%s7748_s0 + $0xd0] sm:$0xff]  ;;  %v100_v53 = vrot.slane %v3375_v23, 7  ;;  %v101_v54 = vrot.slane %v3380_v24, 7  ;;  %v103_v55 = vrot.slane %v3388_v28, 7  ;;  %v3489_v17 = vsel %vm72_vm0, %v94_v45, %v95_v46 }
   0xa   :  { %v3430_v42 = vld [vmem:[%s7748_s0 + $0xd8] sm:$0xff]  ;;  %v36_v43 = vld [vmem:[%s7748_s0 + $0xe0] sm:$0xff]  ;;  %v3448_v48 = vld [vmem:[%s7748_s0 + $0xe8] sm:$0xff]  ;;  %v104_v56 = vrot.slane %v3393_v29, 7  ;;  %v106_v57 = vrot.slane %v30_v30, 7  ;;  %v107_v58 = vrot.slane %v3404_v34, 7  ;;  %v3492_v18 = vsel %vm72_vm0, %v97_v47, %v98_v52 }
   0xb   :  { %v38_v49 = vld [vmem:[%s7748_s0 + $0xf0] sm:$0xff]  ;;  %v39_v50 = vld [vmem:[%s7748_s0 + $0xf8] sm:$0xff]  ;;  %v109_v59 = vrot.slane %v32_v35, 7  ;;  %v110_v60 = vrot.slane %v3412_v36, 7  ;;  %v112_v61 = vrot.slane %v34_v41, 7  ;;  %v113_v62 = vrot.slane %v3430_v42, 7 }
   0xc   :  { %v115_v63 = vrot.slane %v36_v43, 7  ;;  %v116_v4 = vrot.slane %v3448_v48, 7  ;;  %v118_v6 = vrot.slane %v38_v49, 7  ;;  %v119_v8 = vrot.slane %v39_v50, 7  ;;  %8390 = vst [vmem:[#allocation5_spill] sm:$0xff] %v3473_v10 }
   0xd   :  { %8391 = vst [vmem:[#allocation6_spill] sm:$0xff] %v3478_v12  ;;  %v3495_v22 = vsel %vm72_vm0, %v100_v53, %v101_v54  ;;  %v3498_v23 = vsel %vm72_vm0, %v103_v55, %v104_v56  ;;  %v3501_v24 = vsel %vm72_vm0, %v106_v57, %v107_v58  ;;  %v3504_v28 = vsel %vm72_vm0, %v109_v59, %v110_v60 }
   0xe   :  { %8392 = vst [vmem:[#allocation7_spill] sm:$0xff] %v3483_v13  ;;  %v3507_v29 = vsel %vm72_vm0, %v112_v61, %v113_v62  ;;  %v3512_v30 = vsel %vm72_vm0, 0.0, %v73_v14  ;;  %v3515_v34 = vsel %vm72_vm0, %v115_v63, %v116_v4  ;;  %v3518_v35 = vsel %vm72_vm0, %v118_v6, %v119_v8 }
   0xf   :  { %8393 = vst [vmem:[#allocation8_spill] sm:$0xff] %v3486_v16  ;;  %v3523_v36 = vsel %vm72_vm0, 0.0, %v76_v19  ;;  %v3526_v41 = vsel %vm72_vm0, 0.0, %v79_v21  ;;  %v3529_v42 = vsel %vm72_vm0, 0.0, %v82_v26  ;;  %v3532_v0 = vsel %vm72_vm0, 0.0, %v85_v31 }
  0x10   :  { %8394 = vst [vmem:[#allocation9_spill] sm:$0xff] %v3489_v17  ;;  %v3535_v14 = vsel %vm72_vm0, 0.0, %v88_v33  ;;  %v3538_v43 = vsel %vm72_vm0, 0.0, %v91_v39  ;;  %v3541_v2 = vsel %vm72_vm0, 0.0, %v94_v45  ;;  %v3544_v19 = vsel %vm72_vm0, 0.0, %v97_v47 }
  0x11   :  { %8395 = vst [vmem:[#allocation10_spill] sm:$0xff] %v3492_v18  ;;  %v3547_v21 = vsel %vm72_vm0, 0.0, %v100_v53  ;;  %v3550_v26 = vsel %vm72_vm0, 0.0, %v103_v55  ;;  %v3553_v31 = vsel %vm72_vm0, 0.0, %v106_v57  ;;  %v3556_v33 = vsel %vm72_vm0, 0.0, %v109_v59 }
  0x12   :  { %8396 = vst [vmem:[#allocation11_spill] sm:$0xff] %v3495_v22  ;;  %v3559_v39 = vsel %vm72_vm0, 0.0, %v112_v61  ;;  %v3562_v45 = vsel %vm72_vm0, 0.0, %v115_v63  ;;  %v3565_v47 = vsel %vm72_vm0, 0.0, %v118_v6  ;;  %v3570_v48 = vsel %vm72_vm0, %v74_v15, 0.0 }
  0x13   :  { %8397 = vst [vmem:[#allocation12_spill] sm:$0xff] %v3498_v23  ;;  %v3575_v49 = vsel %vm72_vm0, %v77_v20, 0.0  ;;  %v3580_v50 = vsel %vm72_vm0, %v80_v25, 0.0  ;;  %v3585_v53 = vsel %vm72_vm0, %v83_v27, 0.0  ;;  %v3590_v1 = vsel %vm72_vm0, %v86_v32, 0.0 }
  0x14   :  { %8398 = vst [vmem:[#allocation13_spill] sm:$0xff] %v3501_v24  ;;  %v3595_v3 = vsel %vm72_vm0, %v89_v38, 0.0  ;;  %v3598_v5 = vsel %vm72_vm0, %v92_v40, 0.0  ;;  %v3601_v15 = vsel %vm72_vm0, %v95_v46, 0.0  ;;  %v3604_v7 = vsel %vm72_vm0, %v98_v52, 0.0 }
  0x15   :  { %8399 = vst [vmem:[#allocation14_spill] sm:$0xff] %v3504_v28  ;;  %v3607_v20 = vsel %vm72_vm0, %v101_v54, 0.0  ;;  %v3610_v9 = vsel %vm72_vm0, %v104_v56, 0.0  ;;  %v3613_v11 = vsel %vm72_vm0, %v107_v58, 0.0  ;;  %v3616_v25 = vsel %vm72_vm0, %v110_v60, 0.0 }
  0x16   :  { %8400 = vst [vmem:[#allocation15_spill] sm:$0xff] %v3507_v29  ;;  %v3619_v27 = vsel %vm72_vm0, %v113_v62, 0.0  ;;  %v3622_v32 = vsel %vm72_vm0, %v116_v4, 0.0  ;;  %v3625_v38 = vsel %vm72_vm0, %v119_v8, 0.0  ;;  %v201_v40 = vmul.f32 2.0, %v3512_v30 }
  0x17   :  { %8401 = vst [vmem:[#allocation16_spill] sm:$0xff] %v3512_v30  ;;  %v202_v46 = vmul.f32 2.0, %v3419_v37  ;;  %v203_v52 = vmul.f32 2.0, %v3570_v48  ;;  %v204_v54 = vmul.f32 2.0, %v3523_v36  ;;  %v3632_v55 = vmul.f32 2.0, %v3440_v44 }
  0x18   :  { %8402 = vst [vmem:[#allocation17_spill] sm:$0xff] %v3515_v34  ;;  %v3635_v56 = vmul.f32 2.0, %v3575_v49  ;;  %v3638_v57 = vmul.f32 2.0, %v3526_v41  ;;  %v3641_v58 = vmul.f32 2.0, %v3459_v51  ;;  %v3644_v59 = vmul.f32 2.0, %v3580_v50 }
  0x19   :  { %8403 = vst [vmem:[#allocation18_spill] sm:$0xff] %v3518_v35  ;;  %v3647_v60 = vmul.f32 2.0, %v3529_v42  ;;  %v3650_v61 = vmul.f32 2.0, %v3473_v10  ;;  %v3653_v62 = vmul.f32 2.0, %v3585_v53  ;;  %v3656_v63 = vmul.f32 2.0, %v3532_v0 }
  0x1a   :  { %8404 = vst [vmem:[#allocation19_spill] sm:$0xff] %v3523_v36  ;;  %v3659_v4 = vmul.f32 2.0, %v3478_v12  ;;  %v3662_v6 = vmul.f32 2.0, %v3590_v1  ;;  %v3665_v8 = vmul.f32 2.0, %v3535_v14  ;;  %v3680_v12 = vmul.f32 2.0, %v3598_v5 }
  0x1b   :  { %8405 = vst [vmem:[#allocation20_spill] sm:$0xff] %v3526_v41  ;;  %v306_v10 = vrot.slane %v204_v54, 1  ;;  %v7816_v54 = vmov 0.0  }
  0x1c   :  { %8406 = vst [vmem:[#allocation21_spill] sm:$0xff] %v3529_v42  ;;  %v3741_v42 = vmul.f32 2.0, %v3507_v29 }
  0x1d   :  { %8407 = vst [vmem:[#allocation22_spill] sm:$0xff] %v3532_v0  ;;  %v302_v0 = vrot.slane %v202_v46, 1  ;;  %v3759_v46 = vmul.f32 2.0, %v3518_v35 }
  0x1e   :  { %8408 = vst [vmem:[#allocation23_spill] sm:$0xff] %v3535_v14  ;;  %v3686_v14 = vmul.f32 2.0, %v3489_v17  ;;  %v3707_v17 = vmul.f32 2.0, %v3607_v20 }
  0x1f   :  { %8409 = vst [vmem:[#allocation24_spill] sm:$0xff] %v3538_v43 }
  0x20   :  { %8410 = vst [vmem:[#allocation25_spill] sm:$0xff] %v3541_v2 }
  0x21   :  { %8411 = vst [vmem:[#allocation26_spill] sm:$0xff] %v3544_v19 }
  0x22   :  { %8412 = vst [vmem:[#allocation27_spill] sm:$0xff] %v3547_v21 }
  0x23   :  { %8413 = vst [vmem:[#allocation28_spill] sm:$0xff] %v3550_v26 }
  0x24   :  { %8414 = vst [vmem:[#allocation29_spill] sm:$0xff] %v3553_v31 }
  0x25   :  { %8415 = vst [vmem:[#allocation30_spill] sm:$0xff] %v3556_v33 }
  0x26   :  { %8416 = vst [vmem:[#allocation31_spill] sm:$0xff] %v3559_v39 }
  0x27   :  { %8417 = vst [vmem:[#allocation32_spill] sm:$0xff] %v3562_v45 }
  0x28   :  { %8418 = vst [vmem:[#allocation33_spill] sm:$0xff] %v3565_v47 }
  0x29   :  { %8419 = vst [vmem:[#allocation34_spill] sm:$0xff] %v3570_v48  ;;  %v3677_v48 = vmul.f32 2.0, %v3486_v16  ;;  %v3698_v16 = vmul.f32 2.0, %v3604_v7 }
  0x2a   :  { %8420 = vst [vmem:[#allocation35_spill] sm:$0xff] %v3575_v49  ;;  %v3671_v49 = vmul.f32 2.0, %v3595_v3 }
  0x2b   :  { %8421 = vst [vmem:[#allocation36_spill] sm:$0xff] %v3580_v50  ;;  %v3668_v50 = vmul.f32 2.0, %v3483_v13  ;;  %v3689_v13 = vmul.f32 2.0, %v3601_v15 }
  0x2c   :  { %8422 = vst [vmem:[#allocation37_spill] sm:$0xff] %v3585_v53  ;;  %v3674_v53 = vmul.f32 2.0, %v3538_v43  ;;  %v3695_v43 = vmul.f32 2.0, %v3492_v18  ;;  %v3716_v18 = vmul.f32 2.0, %v3610_v9 }
  0x2d   :  { %8423 = vst [vmem:[#allocation38_spill] sm:$0xff] %v3590_v1  ;;  %v3683_v1 = vmul.f32 2.0, %v3541_v2  ;;  %v3704_v2 = vmul.f32 2.0, %v3495_v22  ;;  %v3725_v22 = vmul.f32 2.0, %v3613_v11 }
  0x2e   :  { %8424 = vst [vmem:[#allocation39_spill] sm:$0xff] %v3595_v3  ;;  %v3692_v3 = vmul.f32 2.0, %v3544_v19  ;;  %v3713_v19 = vmul.f32 2.0, %v3498_v23  ;;  %v3734_v23 = vmul.f32 2.0, %v3616_v25 }
  0x2f   :  { %8425 = vst [vmem:[#allocation40_spill] sm:$0xff] %v3598_v5  ;;  %v3701_v5 = vmul.f32 2.0, %v3547_v21  ;;  %v3722_v21 = vmul.f32 2.0, %v3501_v24  ;;  %v304_v24 = vrot.slane %v203_v52, 1  ;;  %v3762_v52 = vmul.f32 2.0, %v3625_v38 }
  0x30   :  { %8426 = vst [vmem:[#allocation41_spill] sm:$0xff] %v3601_v15  ;;  %v3710_v15 = vmul.f32 2.0, %v3550_v26  ;;  %v3731_v26 = vmul.f32 2.0, %v3504_v28  ;;  %v3747_v28 = vmul.f32 2.0, %v3562_v45  ;;  %v314_v45 = vrot.slane %v3644_v59, 1 }
  0x31   :  { %8427 = vst [vmem:[#allocation42_spill] sm:$0xff] %v3604_v7  ;;  %v3719_v7 = vmul.f32 2.0, %v3553_v31  ;;  %v301_v31 = vrot.slane %v201_v40, 1  ;;  %v3756_v40 = vmul.f32 2.0, %v3565_v47  ;;  %v3773_v47 = vsel %vm298_vm1, %v302_v0, %v304_v24 }
  0x32   :  { %8428 = vst [vmem:[#allocation43_spill] sm:$0xff] %v3607_v20  ;;  %v3728_v20 = vmul.f32 2.0, %v3556_v33  ;;  %v3744_v33 = vmul.f32 2.0, %v3619_v27  ;;  %v324_v24 = vrot.slane %v3662_v6, 1  ;;  %v331_v59 = vrot.slane %v3674_v53, 1 }
  0x33   :  { %8429 = vst [vmem:[#allocation44_spill] sm:$0xff] %v3610_v9  ;;  %v3737_v9 = vmul.f32 2.0, %v3559_v39  ;;  %v3753_v39 = vmul.f32 2.0, %v3622_v32  ;;  %v339_v6 = vrot.slane %v3689_v13, 1  ;;  %v342_v53 = vrot.slane %v3695_v43, 1 }
  0x34   :  { %8430 = vst [vmem:[#allocation45_spill] sm:$0xff] %v3613_v11  ;;  %v307_v11 = vrot.slane %v3632_v55, 1  ;;  %v3765_v55 = vrot.slane %v7816_v54, 1  ;;  %v316_v54 = vrot.slane %v3647_v60, 1  ;;  %v332_v60 = vrot.slane %v3677_v48, 1 }
  0x35   :  { %8431 = vst [vmem:[#allocation46_spill] sm:$0xff] %v3616_v25  ;;  %v3750_v25 = vmul.f32 2.0, %v3515_v34  ;;  %v309_v34 = vrot.slane %v3635_v56, 1  ;;  %v321_v56 = vrot.slane %v3656_v63, 1  ;;  %v336_v63 = vrot.slane %v3683_v1, 1 }
  0x36   :  { %8432 = vst [vmem:[#allocation47_spill] sm:$0xff] %v3619_v27  ;;  %v3768_v27 = vsel %vm298_vm1, %v301_v31, %v302_v0  ;;  %v3776_v35 = vsel %vm298_vm1, %v306_v10, %v307_v11  ;;  %v319_v31 = vrot.slane %v3653_v62, 1  ;;  %v326_v0 = vrot.slane %v3665_v8, 1 }
  0x37   :  { %8433 = vst [vmem:[#allocation48_spill] sm:$0xff] %v3622_v32  ;;  %v311_v32 = vrot.slane %v3638_v57, 1  ;;  %v322_v57 = vrot.slane %v3659_v4, 1  ;;  %v327_v10 = vrot.slane %v3668_v50, 1  ;;  %v310_v62 = vsel %vm298_vm1, %v307_v11, %v309_v34 }
  0x38   :  { %8434 = vst [vmem:[#allocation49_spill] sm:$0xff] %v3625_v38  ;;  %v312_v38 = vrot.slane %v3641_v58, 1  ;;  %v329_v58 = vrot.slane %v3671_v49, 1  ;;  %v337_v4 = vrot.slane %v3686_v14, 1  ;;  %v341_v49 = vrot.slane %v3692_v3, 1 }
  0x39   :  { %8435 = vst [vmem:[#allocation50_spill] sm:$0xff] %v3765_v55  ;;  %v317_v55 = vrot.slane %v3650_v61, 1  ;;  %v334_v61 = vrot.slane %v3680_v12, 1  ;;  %v323_v34 = vsel %vm298_vm1, %v321_v56, %v322_v57  ;;  %v325_v1 = vsel %vm298_vm1, %v322_v57, %v324_v24 }
  0x3a   :  { %v313_v8 = vsel %vm298_vm1, %v311_v32, %v312_v38  ;;  %v315_v50 = vsel %vm298_vm1, %v312_v38, %v314_v45  ;;  %v328_v14 = vsel %vm298_vm1, %v326_v0, %v327_v10  ;;  %v330_v13 = vsel %vm298_vm1, %v327_v10, %v329_v58 }
  0x3b   :  { %v318_v48 = vsel %vm298_vm1, %v316_v54, %v317_v55  ;;  %v320_v12 = vsel %vm298_vm1, %v317_v55, %v319_v31  ;;  %v333_v11 = vsel %vm298_vm1, %v331_v59, %v332_v60  ;;  %v335_v45 = vsel %vm298_vm1, %v332_v60, %v334_v61 }
  0x3c   :  { %v338_v3 = vsel %vm298_vm1, %v336_v63, %v337_v4  ;;  %v340_v43 = vsel %vm298_vm1, %v337_v4, %v339_v6  ;;  %v344_v32 = vrot.slane %v3698_v16, 1  ;;  %v346_v38 = vrot.slane %v3701_v5, 1 }
  0x3d   :  { %v343_v54 = vsel %vm298_vm1, %v341_v49, %v342_v53  ;;  %v347_v55 = vrot.slane %v3704_v2, 1  ;;  %v349_v31 = vrot.slane %v3707_v17, 1  ;;  %v351_v56 = vrot.slane %v3710_v15, 1 }
  0x3e   :  { %v352_v57 = vrot.slane %v3713_v19, 1  ;;  %v354_v24 = vrot.slane %v3716_v18, 1  ;;  %v356_v0 = vrot.slane %v3719_v7, 1  ;;  %v357_v10 = vrot.slane %v3722_v21, 1 }
  0x3f   :  { %v359_v16 = vrot.slane %v3725_v22, 1  ;;  %v361_v5 = vrot.slane %v3728_v20, 1  ;;  %v362_v58 = vrot.slane %v3731_v26, 1  ;;  %v364_v2 = vrot.slane %v3734_v23, 1 }
  0x40   :  { %v366_v17 = vrot.slane %v3737_v9, 1  ;;  %v367_v15 = vrot.slane %v3741_v42, 1  ;;  %v369_v19 = vrot.slane %v3744_v33, 1  ;;  %v371_v18 = vrot.slane %v3747_v28, 1 }
  0x41   :  { %v372_v7 = vrot.slane %v3750_v25, 1  ;;  %v374_v21 = vrot.slane %v3753_v39, 1  ;;  %v376_v22 = vrot.slane %v3756_v40, 1  ;;  %v377_v20 = vrot.slane %v3759_v46, 1 }
  0x42   :  { %v345_v26 = vsel %vm298_vm1, %v342_v53, %v344_v32  ;;  %v348_v23 = vsel %vm298_vm1, %v346_v38, %v347_v55  ;;  %v350_v9 = vsel %vm298_vm1, %v347_v55, %v349_v31  ;;  %v379_v42 = vrot.slane %v3762_v52, 1 }
  0x43   :  { %v353_v33 = vsel %vm298_vm1, %v351_v56, %v352_v57  ;;  %v355_v28 = vsel %vm298_vm1, %v352_v57, %v354_v24  ;;  %v358_v25 = vsel %vm298_vm1, %v356_v0, %v357_v10  ;;  %v360_v39 = vsel %vm298_vm1, %v357_v10, %v359_v16  ;;  %v8437_v56 = vld [vmem:[#allocation5_spill] sm:$0xff] }
  0x44   :  { %v363_v40 = vsel %vm298_vm1, %v361_v5, %v362_v58  ;;  %v365_v46 = vsel %vm298_vm1, %v362_v58, %v364_v2  ;;  %v368_v59 = vsel %vm298_vm1, %v366_v17, %v367_v15  ;;  %v370_v60 = vsel %vm298_vm1, %v367_v15, %v369_v19 }
  0x45   :  { %v373_v61 = vsel %vm298_vm1, %v371_v18, %v372_v7  ;;  %v375_v52 = vsel %vm298_vm1, %v372_v7, %v374_v21  ;;  %v378_v63 = vsel %vm298_vm1, %v376_v22, %v377_v20  ;;  %v3849_v4 = vadd.f32 %v3768_v27, %v3512_v30  ;;  %v8436_v27 = vld [vmem:[#allocation21_spill] sm:$0xff] }
  0x46   :  { %v380_v6 = vsel %vm298_vm1, %v377_v20, %v379_v42  ;;  %v3854_v49 = vadd.f32 %v3773_v47, %v3419_v37  ;;  %v3858_v53 = vadd.f32 %v3776_v35, %v3523_v36  ;;  %v3861_v32 = vadd.f32 %v310_v62, %v3440_v44  ;;  %v8438_v47 = vld [vmem:[#allocation22_spill] sm:$0xff]  ;;  %v8440_v62 = vld [vmem:[#allocation23_spill] sm:$0xff] }
  0x47   :  { %v3864_v38 = vadd.f32 %v313_v8, %v3526_v41  ;;  %v3867_v55 = vadd.f32 %v315_v50, %v3459_v51  ;;  %v3870_v31 = vadd.f32 %v318_v48, %v8436_v27  ;;  %v3873_v57 = vadd.f32 %v320_v12, %v8437_v56  ;;  %v8439_v35 = vld [vmem:[#allocation6_spill] sm:$0xff]  ;;  %v8441_v8 = vld [vmem:[#allocation7_spill] sm:$0xff]  ;;  %v8442_v50 = vld [vmem:[#allocation24_spill] sm:$0xff] }
  0x48   :  { %v3876_v24 = vadd.f32 %v323_v34, %v8438_v47  ;;  %v3879_v0 = vadd.f32 %v325_v1, %v8439_v35  ;;  %v3882_v10 = vadd.f32 %v328_v14, %v8440_v62  ;;  %v3885_v16 = vadd.f32 %v330_v13, %v8441_v8  ;;  %v8443_v48 = vld [vmem:[#allocation8_spill] sm:$0xff]  ;;  %v8444_v12 = vld [vmem:[#allocation25_spill] sm:$0xff]  ;;  %v8448_v1 = vld [vmem:[#allocation26_spill] sm:$0xff] }
  0x49   :  { %v3888_v5 = vadd.f32 %v333_v11, %v8442_v50  ;;  %v3891_v58 = vadd.f32 %v335_v45, %v8443_v48  ;;  %v3894_v2 = vadd.f32 %v338_v3, %v8444_v12  ;;  %v8446_v34 = vld [vmem:[#allocation9_spill] sm:$0xff]  ;;  %v3900_v15 = vadd.f32 %v343_v54, %v8448_v1  ;;  %v8450_v14 = vld [vmem:[#allocation10_spill] sm:$0xff]  ;;  %v8452_v13 = vld [vmem:[#allocation27_spill] sm:$0xff] }
  0x4a   :  { %v3897_v17 = vadd.f32 %v340_v43, %v8446_v34  ;;  %v3903_v19 = vadd.f32 %v345_v26, %v8450_v14  ;;  %v3906_v18 = vadd.f32 %v348_v23, %v8452_v13  ;;  %v8454_v11 = vld [vmem:[#allocation11_spill] sm:$0xff]  ;;  %v8456_v45 = vld [vmem:[#allocation28_spill] sm:$0xff]  ;;  %v8460_v43 = vld [vmem:[#allocation29_spill] sm:$0xff] }
  0x4b   :  { %8445 = vst [vmem:[#allocation51_spill] sm:$0xff] %v3894_v2  ;;  %v3909_v7 = vadd.f32 %v350_v9, %v8454_v11  ;;  %v3912_v21 = vadd.f32 %v353_v33, %v8456_v45  ;;  %v8458_v3 = vld [vmem:[#allocation12_spill] sm:$0xff]  ;;  %v3918_v20 = vadd.f32 %v358_v25, %v8460_v43  ;;  %v8462_v54 = vld [vmem:[#allocation13_spill] sm:$0xff]  ;;  %v8464_v26 = vld [vmem:[#allocation30_spill] sm:$0xff]  ;;  %v482_v9 = vrot.slane %v3512_v30, 2 }
  0x4c   :  { %8447 = vst [vmem:[#allocation52_spill] sm:$0xff] %v3897_v17  ;;  %v3915_v22 = vadd.f32 %v355_v28, %v8458_v3  ;;  %v3921_v42 = vadd.f32 %v360_v39, %v8462_v54  ;;  %v8466_v23 = vld [vmem:[#allocation14_spill] sm:$0xff]  ;;  %v483_v33 = vrot.slane %v3419_v37, 2  ;;  %v488_v25 = vrot.slane %v3440_v44, 2  ;;  %v8476_v37 = vld [vmem:[#allocation33_spill] sm:$0xff]  ;;  %v8490_v17 = vld [vmem:[#allocation40_spill] sm:$0xff] }
  0x4d   :  { %8449 = vst [vmem:[#allocation53_spill] sm:$0xff] %v3900_v15 }
  0x4e   :  { %8451 = vst [vmem:[#allocation54_spill] sm:$0xff] %v3903_v19  ;;  %v3924_v19 = vadd.f32 %v363_v40, %v8464_v26  ;;  %v3938_v40 = vadd.f32 %v370_v60, %v3507_v29  ;;  %v3957_v60 = vsel %vm479_vm2, %v482_v9, %v483_v33  ;;  %v502_v9 = vrot.slane %v8438_v47, 2 }
  0x4f   :  { %8453 = vst [vmem:[#allocation55_spill] sm:$0xff] %v3906_v18  ;;  %v3927_v18 = vadd.f32 %v365_v46, %v8466_v23  ;;  %v518_v47 = vrot.slane %v8446_v34, 2 }
  0x50   :  { %8455 = vst [vmem:[#allocation56_spill] sm:$0xff] %v3909_v7 }
  0x51   :  { %8457 = vst [vmem:[#allocation57_spill] sm:$0xff] %v3912_v21  ;;  %v8468_v21 = vld [vmem:[#allocation34_spill] sm:$0xff] }
  0x52   :  { %8459 = vst [vmem:[#allocation58_spill] sm:$0xff] %v3915_v22  ;;  %v485_v28 = vrot.slane %v8468_v21, 2  ;;  %v487_v22 = vrot.slane %v3523_v36, 2  ;;  %v8478_v21 = vld [vmem:[#allocation18_spill] sm:$0xff]  ;;  %v8480_v36 = vmov 0.0  }
  0x53   :  { %8461 = vst [vmem:[#allocation59_spill] sm:$0xff] %v3918_v20  ;;  %v8469_v20 = vld [vmem:[#allocation31_spill] sm:$0xff]  ;;  %v3950_v7 = vadd.f32 %v380_v6, %v8478_v21  ;;  %v3953_v44 = vrot.slane %v8480_v36, 2  ;;  %v497_v36 = vrot.slane %v8436_v27, 2  ;;  %v513_v27 = vrot.slane %v8443_v48, 2 }
  0x54   :  { %8463 = vst [vmem:[#allocation60_spill] sm:$0xff] %v3921_v42  ;;  %v3935_v39 = vadd.f32 %v368_v59, %v8469_v20  ;;  %v3947_v42 = vadd.f32 %v378_v63, %v8476_v37  ;;  %v8482_v59 = vld [vmem:[#allocation35_spill] sm:$0xff]  ;;  %v3963_v63 = vsel %vm479_vm2, %v483_v33, %v485_v28  ;;  %v3966_v6 = vsel %vm479_vm2, %v487_v22, %v488_v25 }
  0x55   :  { %8465 = vst [vmem:[#allocation61_spill] sm:$0xff] %v3924_v19  ;;  %v8472_v19 = vld [vmem:[#allocation32_spill] sm:$0xff]  ;;  %v508_v33 = vrot.slane %v8441_v8, 2  ;;  %v8489_v28 = vld [vmem:[#allocation39_spill] sm:$0xff]  ;;  %v512_v22 = vrot.slane %v8442_v50, 2  ;;  %v523_v8 = vrot.slane %v8450_v14, 2 }
  0x56   :  { %8467 = vst [vmem:[#allocation62_spill] sm:$0xff] %v3927_v18  ;;  %v3941_v46 = vadd.f32 %v373_v61, %v8472_v19  ;;  %v8474_v18 = vld [vmem:[#allocation17_spill] sm:$0xff]  ;;  %v492_v61 = vrot.slane %v3526_v41, 2  ;;  %v503_v41 = vrot.slane %v8439_v35, 2  ;;  %v510_v15 = vrot.slane %v8489_v28, 2  ;;  %v8512_v14 = vld [vmem:[#allocation47_spill] sm:$0xff] }
  0x57   :  { %8470 = vst [vmem:[#allocation34_spill] sm:$0xff] %v3935_v39  ;;  %v3944_v30 = vadd.f32 %v375_v52, %v8474_v18  ;;  %v490_v39 = vrot.slane %v8482_v59, 2  ;;  %v8484_v52 = vld [vmem:[#allocation36_spill] sm:$0xff]  ;;  %v8487_v59 = vld [vmem:[#allocation37_spill] sm:$0xff] }
  0x58   :  { %8471 = vst [vmem:[#allocation63_spill] sm:$0xff] %v3938_v40  ;;  %v8488_v40 = vld [vmem:[#allocation38_spill] sm:$0xff] }
  0x59   :  { %8473 = vst [vmem:[#allocation64_spill] sm:$0xff] %v3941_v46  ;;  %v493_v46 = vrot.slane %v3459_v51, 2  ;;  %v505_v51 = vrot.slane %v8488_v40, 2  ;;  %v3983_v35 = vsel %vm479_vm2, %v488_v25, %v490_v39  ;;  %v8492_v40 = vld [vmem:[#allocation41_spill] sm:$0xff]  ;;  %v4002_v39 = vsel %vm479_vm2, %v502_v9, %v503_v41  ;;  %v8508_v9 = vld [vmem:[#allocation43_spill] sm:$0xff] }
  0x5a   :  { %8475 = vst [vmem:[#allocation65_spill] sm:$0xff] %v3944_v30  ;;  %v495_v30 = vrot.slane %v8484_v52, 2  ;;  %v507_v52 = vrot.slane %v8440_v62, 2  ;;  %v520_v2 = vrot.slane %v8492_v40, 2  ;;  %v522_v62 = vrot.slane %v8448_v1, 2 }
  0x5b   :  { %8477 = vst [vmem:[#allocation66_spill] sm:$0xff] %v3947_v42  ;;  %v500_v42 = vrot.slane %v8487_v59, 2  ;;  %v517_v59 = vrot.slane %v8444_v12, 2  ;;  %v3989_v28 = vsel %vm479_vm2, %v492_v61, %v493_v46  ;;  %v8496_v12 = vld [vmem:[#allocation42_spill] sm:$0xff]  ;;  %v4005_v40 = vsel %vm479_vm2, %v503_v41, %v505_v51 }
  0x5c   :  { %8479 = vst [vmem:[#allocation67_spill] sm:$0xff] %v3950_v7  ;;  %v498_v7 = vrot.slane %v8437_v56, 2  ;;  %v515_v56 = vrot.slane %v8490_v17, 2  ;;  %v3992_v48 = vsel %vm479_vm2, %v493_v46, %v495_v30  ;;  %v525_v34 = vrot.slane %v8496_v12, 2 }
  0x5d   :  { %8481 = vst [vmem:[#allocation68_spill] sm:$0xff] %v3953_v44  ;;  %v4008_v61 = vsel %vm479_vm2, %v507_v52, %v508_v33  ;;  %v4011_v30 = vsel %vm479_vm2, %v508_v33, %v510_v15  ;;  %v4026_v51 = vsel %vm479_vm2, %v522_v62, %v523_v8  ;;  %v527_v41 = vrot.slane %v8452_v13, 2  ;;  %v8509_v33 = vld [vmem:[#allocation44_spill] sm:$0xff] }
  0x5e   :  { %8483 = vst [vmem:[#allocation35_spill] sm:$0xff] %v3957_v60  ;;  %v3995_v17 = vsel %vm479_vm2, %v497_v36, %v498_v7  ;;  %v3999_v25 = vsel %vm479_vm2, %v498_v7, %v500_v42  ;;  %v4014_v36 = vsel %vm479_vm2, %v512_v22, %v513_v27  ;;  %v4017_v12 = vsel %vm479_vm2, %v513_v27, %v515_v56 }
  0x5f   :  { %8485 = vst [vmem:[#allocation36_spill] sm:$0xff] %v3963_v63  ;;  %v4020_v7 = vsel %vm479_vm2, %v517_v59, %v518_v47  ;;  %v4023_v42 = vsel %vm479_vm2, %v518_v47, %v520_v2  ;;  %v528_v15 = vrot.slane %v8454_v11, 2  ;;  %v4031_v46 = vsel %vm479_vm2, %v523_v8, %v525_v34  ;;  %v8510_v2 = vld [vmem:[#allocation45_spill] sm:$0xff]  ;;  %v8511_v8 = vld [vmem:[#allocation46_spill] sm:$0xff] }
  0x60   :  { %8486 = vst [vmem:[#allocation69_spill] sm:$0xff] %v3966_v6  ;;  %v530_v52 = vrot.slane %v8508_v9, 2  ;;  %v532_v27 = vrot.slane %v8456_v45, 2  ;;  %v533_v56 = vrot.slane %v8458_v3, 2  ;;  %v535_v22 = vrot.slane %v8509_v33, 2 }
  0x61   :  { %8491 = vst [vmem:[#allocation37_spill] sm:$0xff] %v3983_v35  ;;  %v537_v47 = vrot.slane %v8460_v43, 2  ;;  %v538_v62 = vrot.slane %v8462_v54, 2  ;;  %v540_v59 = vrot.slane %v8510_v2, 2  ;;  %v542_v13 = vrot.slane %v8464_v26, 2  ;;  %v8514_v2 = vld [vmem:[#allocation48_spill] sm:$0xff] }
  0x62   :  { %8493 = vst [vmem:[#allocation38_spill] sm:$0xff] %v3989_v28  ;;  %v543_v11 = vrot.slane %v8466_v23, 2  ;;  %v545_v34 = vrot.slane %v8511_v8, 2  ;;  %v547_v9 = vrot.slane %v8469_v20, 2  ;;  %v548_v45 = vrot.slane %v3507_v29, 2  ;;  %v8550_v20 = vld [vmem:[#allocation61_spill] sm:$0xff] }
  0x63   :  { %8494 = vst [vmem:[#allocation39_spill] sm:$0xff] %v3992_v48  ;;  %v550_v3 = vrot.slane %v8512_v14, 2  ;;  %v552_v33 = vrot.slane %v8472_v19, 2  ;;  %v553_v43 = vrot.slane %v8474_v18, 2  ;;  %v4049_v54 = vsel %vm479_vm2, %v527_v41, %v528_v15  ;;  %v8518_v19 = vld [vmem:[#allocation49_spill] sm:$0xff] }
  0x64   :  { %8495 = vst [vmem:[#allocation40_spill] sm:$0xff] %v3995_v17  ;;  %v555_v1 = vrot.slane %v8514_v2, 2  ;;  %v557_v26 = vrot.slane %v8476_v37, 2  ;;  %v558_v23 = vrot.slane %v8478_v21, 2  ;;  %v4055_v8 = vsel %vm479_vm2, %v528_v15, %v530_v52  ;;  %v8548_v21 = vld [vmem:[#allocation60_spill] sm:$0xff] }
  0x65   :  { %8497 = vst [vmem:[#allocation41_spill] sm:$0xff] %v3999_v25  ;;  %v4058_v29 = vsel %vm479_vm2, %v532_v27, %v533_v56  ;;  %v4061_v14 = vsel %vm479_vm2, %v533_v56, %v535_v22  ;;  %v560_v18 = vrot.slane %v8518_v19, 2  ;;  %v4065_v41 = vsel %vm479_vm2, %v537_v47, %v538_v62  ;;  %v8526_v56 = vld [vmem:[#allocation50_spill] sm:$0xff] }
  0x66   :  { %8498 = vst [vmem:[#allocation42_spill] sm:$0xff] %v4002_v39  ;;  %v4068_v2 = vsel %vm479_vm2, %v538_v62, %v540_v59  ;;  %v4071_v37 = vsel %vm479_vm2, %v542_v13, %v543_v11  ;;  %v4074_v15 = vsel %vm479_vm2, %v543_v11, %v545_v34  ;;  %v4077_v52 = vsel %vm479_vm2, %v547_v9, %v548_v45  ;;  %v8538_v59 = vld [vmem:[#allocation54_spill] sm:$0xff]  ;;  %v8540_v34 = vld [vmem:[#allocation55_spill] sm:$0xff]  ;;  %v8542_v9 = vld [vmem:[#allocation56_spill] sm:$0xff] }
  0x67   :  { %8499 = vst [vmem:[#allocation70_spill] sm:$0xff] %v4005_v40  ;;  %v4080_v27 = vsel %vm479_vm2, %v548_v45, %v550_v3  ;;  %v4083_v19 = vsel %vm479_vm2, %v552_v33, %v553_v43  ;;  %v4087_v22 = vadd.f32 %v3953_v44, %v8526_v56  ;;  %v4090_v47 = vsel %vm479_vm2, %v553_v43, %v555_v1  ;;  %v8543_v56 = vld [vmem:[#allocation57_spill] sm:$0xff]  ;;  %v8546_v44 = vld [vmem:[#allocation59_spill] sm:$0xff] }
  0x68   :  { %8500 = vst [vmem:[#allocation71_spill] sm:$0xff] %v4008_v61  ;;  %v4093_v13 = vsel %vm479_vm2, %v557_v26, %v558_v23  ;;  %v4097_v11 = vadd.f32 %v3957_v60, %v3849_v4  ;;  %v4101_v45 = vadd.f32 %v3963_v63, %v3854_v49  ;;  %v4104_v3 = vsel %vm479_vm2, %v558_v23, %v560_v18  ;;  %v8532_v18 = vld [vmem:[#allocation51_spill] sm:$0xff]  ;;  %v8534_v26 = vld [vmem:[#allocation52_spill] sm:$0xff]  ;;  %v8536_v23 = vld [vmem:[#allocation53_spill] sm:$0xff] }
  0x69   :  { %8501 = vst [vmem:[#allocation72_spill] sm:$0xff] %v4011_v30  ;;  %v4108_v62 = vadd.f32 %v3966_v6, %v3858_v53  ;;  %v4112_v1 = vadd.f32 %v3983_v35, %v3861_v32  ;;  %v4116_v43 = vadd.f32 %v3989_v28, %v3864_v38  ;;  %v4120_v4 = vadd.f32 %v3992_v48, %v3867_v55 }
  0x6a   :  { %8502 = vst [vmem:[#allocation73_spill] sm:$0xff] %v4014_v36  ;;  %v4124_v49 = vadd.f32 %v3995_v17, %v3870_v31  ;;  %v4128_v53 = vadd.f32 %v3999_v25, %v3873_v57  ;;  %v4132_v32 = vadd.f32 %v4002_v39, %v3876_v24  ;;  %v4136_v38 = vadd.f32 %v4005_v40, %v3879_v0 }
  0x6b   :  { %8503 = vst [vmem:[#allocation74_spill] sm:$0xff] %v4017_v12  ;;  %v4140_v55 = vadd.f32 %v4008_v61, %v3882_v10  ;;  %v4144_v31 = vadd.f32 %v4011_v30, %v3885_v16  ;;  %v4148_v57 = vadd.f32 %v4014_v36, %v3888_v5  ;;  %v4152_v24 = vadd.f32 %v4017_v12, %v3891_v58 }
  0x6c   :  { %8504 = vst [vmem:[#allocation75_spill] sm:$0xff] %v4020_v7  ;;  %v4156_v0 = vadd.f32 %v4020_v7, %v8532_v18  ;;  %v4160_v10 = vadd.f32 %v4023_v42, %v8534_v26  ;;  %v4164_v16 = vadd.f32 %v4026_v51, %v8536_v23  ;;  %v4168_v5 = vadd.f32 %v4031_v46, %v8538_v59  ;;  %v8544_v26 = vld [vmem:[#allocation58_spill] sm:$0xff] }
  0x6d   :  { %8505 = vst [vmem:[#allocation76_spill] sm:$0xff] %v4023_v42  ;;  %v4172_v58 = vadd.f32 %v4049_v54, %v8540_v34  ;;  %v4176_v33 = vadd.f32 %v4055_v8, %v8542_v9  ;;  %v4180_v18 = vadd.f32 %v4058_v29, %v8543_v56  ;;  %v4184_v23 = vadd.f32 %v4061_v14, %v8544_v26 }
  0x6e   :  { %8506 = vst [vmem:[#allocation77_spill] sm:$0xff] %v4026_v51  ;;  %v4188_v59 = vadd.f32 %v4065_v41, %v8546_v44  ;;  %v4192_v34 = vadd.f32 %v4068_v2, %v8548_v21  ;;  %v4196_v9 = vadd.f32 %v4071_v37, %v8550_v20  ;;  %v641_v51 = vmul.f32 2.0, %v4152_v24 }
  0x6f   :  { %8507 = vst [vmem:[#allocation78_spill] sm:$0xff] %v4031_v46  ;;  %v640_v46 = vmul.f32 2.0, %v4148_v57  ;;  %v642_v42 = vmul.f32 2.0, %v4156_v0  ;;  %v643_v7 = vmul.f32 2.0, %v4160_v10  ;;  %v644_v12 = vmul.f32 2.0, %v4164_v16 }
  0x70   :  { %8513 = vst [vmem:[#allocation43_spill] sm:$0xff] %v4049_v54  ;;  %v639_v54 = vmul.f32 2.0, %v4144_v31  ;;  %v645_v36 = vmul.f32 2.0, %v4168_v5  ;;  %v646_v50 = vmul.f32 2.0, %v4172_v58  ;;  %v647_v30 = vmul.f32 2.0, %v4176_v33 }
  0x71   :  { %8515 = vst [vmem:[#allocation44_spill] sm:$0xff] %v4055_v8  ;;  %v8552_v8 = vld [vmem:[#allocation62_spill] sm:$0xff]  ;;  %v648_v61 = vmul.f32 2.0, %v4180_v18  ;;  %v649_v40 = vmul.f32 2.0, %v4184_v23  ;;  %v650_v39 = vmul.f32 2.0, %v4188_v59  ;;  %v651_v25 = vmul.f32 2.0, %v4192_v34 }
  0x72   :  { %8516 = vst [vmem:[#allocation45_spill] sm:$0xff] %v4058_v29  ;;  %v4200_v56 = vadd.f32 %v4074_v15, %v8552_v8  ;;  %v8554_v29 = vld [vmem:[#allocation34_spill] sm:$0xff]  ;;  %v652_v17 = vmul.f32 2.0, %v4196_v9 }
  0x73   :  { %8517 = vst [vmem:[#allocation46_spill] sm:$0xff] %v4061_v14  ;;  %v4204_v26 = vadd.f32 %v4077_v52, %v8554_v29  ;;  %v8556_v14 = vld [vmem:[#allocation63_spill] sm:$0xff] }
  0x74   :  { %8519 = vst [vmem:[#allocation47_spill] sm:$0xff] %v4065_v41  ;;  %v4208_v44 = vadd.f32 %v4080_v27, %v8556_v14  ;;  %v8558_v41 = vld [vmem:[#allocation64_spill] sm:$0xff]  ;;  %v629_v14 = vmul.f32 2.0, %v4101_v45  ;;  %v653_v48 = vmul.f32 2.0, %v4200_v56 }
  0x75   :  { %8520 = vst [vmem:[#allocation48_spill] sm:$0xff] %v4068_v2  ;;  %v4212_v21 = vadd.f32 %v4083_v19, %v8558_v41  ;;  %v8560_v2 = vld [vmem:[#allocation65_spill] sm:$0xff]  ;;  %v631_v41 = vmul.f32 2.0, %v4112_v1  ;;  %v654_v28 = vmul.f32 2.0, %v4204_v26 }
  0x76   :  { %8521 = vst [vmem:[#allocation49_spill] sm:$0xff] %v4071_v37  ;;  %v4216_v20 = vadd.f32 %v4090_v47, %v8560_v2  ;;  %v8562_v37 = vld [vmem:[#allocation66_spill] sm:$0xff]  ;;  %v633_v2 = vmul.f32 2.0, %v4120_v4  ;;  %v655_v35 = vmul.f32 2.0, %v4208_v44 }
  0x77   :  { %8522 = vst [vmem:[#allocation79_spill] sm:$0xff] %v4074_v15  ;;  %v4220_v8 = vadd.f32 %v4093_v13, %v8562_v37  ;;  %v8564_v15 = vld [vmem:[#allocation67_spill] sm:$0xff]  ;;  %v635_v37 = vmul.f32 2.0, %v4128_v53  ;;  %v656_v6 = vmul.f32 2.0, %v4212_v21 }
  0x78   :  { %8523 = vst [vmem:[#allocation80_spill] sm:$0xff] %v4077_v52  ;;  %v4224_v29 = vadd.f32 %v4104_v3, %v8564_v15  ;;  %v628_v52 = vmul.f32 2.0, %v4097_v11  ;;  %v637_v15 = vmul.f32 2.0, %v4136_v38  ;;  %v657_v63 = vmul.f32 2.0, %v4216_v20 }
  0x79   :  { %8524 = vst [vmem:[#allocation81_spill] sm:$0xff] %v4080_v27  ;;  %v630_v27 = vmul.f32 2.0, %v4108_v62  ;;  %v658_v60 = vmul.f32 2.0, %v4220_v8 }
  0x7a   :  { %8525 = vst [vmem:[#allocation82_spill] sm:$0xff] %v4083_v19  ;;  %v632_v19 = vmul.f32 2.0, %v4116_v43 }
  0x7b   :  { %8527 = vst [vmem:[#allocation50_spill] sm:$0xff] %v4087_v22 }
  0x7c   :  { %8528 = vst [vmem:[#allocation83_spill] sm:$0xff] %v4090_v47  ;;  %v634_v47 = vmul.f32 2.0, %v4124_v49 }
  0x7d   :  { %8529 = vst [vmem:[#allocation84_spill] sm:$0xff] %v4093_v13  ;;  %v636_v13 = vmul.f32 2.0, %v4132_v32 }
  0x7e   :  { %8530 = vst [vmem:[#allocation85_spill] sm:$0xff] %v4104_v3  ;;  %v638_v3 = vmul.f32 2.0, %v4140_v55 }
  0x7f   :  { %8531 = vst [vmem:[#allocation86_spill] sm:$0xff] %v4152_v24 }
  0x80   :  { %8533 = vst [vmem:[#allocation51_spill] sm:$0xff] %v4156_v0 }
  0x81   :  { %8535 = vst [vmem:[#allocation52_spill] sm:$0xff] %v4160_v10 }
  0x82   :  { %8537 = vst [vmem:[#allocation53_spill] sm:$0xff] %v4164_v16 }
  0x83   :  { %8539 = vst [vmem:[#allocation54_spill] sm:$0xff] %v4168_v5 }
  0x84   :  { %8541 = vst [vmem:[#allocation55_spill] sm:$0xff] %v4172_v58 }
  0x85   :  { %8545 = vst [vmem:[#allocation56_spill] sm:$0xff] %v4184_v23  ;;  %v659_v23 = vmul.f32 2.0, %v4224_v29 }
  0x86   :  { %8547 = vst [vmem:[#allocation57_spill] sm:$0xff] %v4188_v59  ;;  %v660_v59 = vadd.f32 %v628_v52, %v4087_v22  ;;  %v670_v52 = vadd.f32 %v638_v3, %v4132_v32  ;;  %v680_v3 = vadd.f32 %v648_v61, %v4172_v58 }
  0x87   :  { %8549 = vst [vmem:[#allocation58_spill] sm:$0xff] %v4192_v34  ;;  %v661_v34 = vadd.f32 %v629_v14, %v4087_v22  ;;  %v671_v14 = vadd.f32 %v639_v54, %v4136_v38  ;;  %v681_v54 = vadd.f32 %v649_v40, %v4176_v33 }
  0x88   :  { %8551 = vst [vmem:[#allocation59_spill] sm:$0xff] %v4196_v9  ;;  %v662_v9 = vadd.f32 %v630_v27, %v4097_v11  ;;  %v672_v27 = vadd.f32 %v640_v46, %v4140_v55  ;;  %v673_v11 = vadd.f32 %v641_v51, %v4144_v31  ;;  %v682_v46 = vadd.f32 %v650_v39, %v4180_v18 }
  0x89   :  { %8553 = vst [vmem:[#allocation60_spill] sm:$0xff] %v4200_v56  ;;  %v663_v56 = vadd.f32 %v631_v41, %v4101_v45  ;;  %v675_v45 = vadd.f32 %v643_v7, %v4152_v24  ;;  %v677_v41 = vadd.f32 %v645_v36, %v4160_v10  ;;  %v4291_v39 = vadd.f32 %v660_v59, %v4108_v62 }
  0x8a   :  { %8555 = vst [vmem:[#allocation61_spill] sm:$0xff] %v4204_v26  ;;  %v664_v26 = vadd.f32 %v632_v19, %v4108_v62  ;;  %v674_v19 = vadd.f32 %v642_v42, %v4148_v57 }
  0x8b   :  { %8557 = vst [vmem:[#allocation62_spill] sm:$0xff] %v4208_v44  ;;  %v665_v44 = vadd.f32 %v633_v2, %v4112_v1  ;;  %v679_v2 = vadd.f32 %v647_v30, %v4168_v5 }
  0x8c   :  { %8559 = vst [vmem:[#allocation34_spill] sm:$0xff] %v4212_v21  ;;  %v666_v21 = vadd.f32 %v634_v47, %v4116_v43  ;;  %v676_v47 = vadd.f32 %v644_v12, %v4156_v0 }
  0x8d   :  { %8561 = vst [vmem:[#allocation63_spill] sm:$0xff] %v4216_v20  ;;  %v667_v20 = vadd.f32 %v635_v37, %v4120_v4  ;;  %v8566_v37 = vld [vmem:[#allocation56_spill] sm:$0xff] }
  0x8e   :  { %8563 = vst [vmem:[#allocation64_spill] sm:$0xff] %v4220_v8  ;;  %v668_v8 = vadd.f32 %v636_v13, %v4124_v49  ;;  %v678_v13 = vadd.f32 %v646_v50, %v4164_v16  ;;  %v683_v51 = vadd.f32 %v651_v25, %v8566_v37  ;;  %v8568_v22 = vld [vmem:[#allocation58_spill] sm:$0xff]  ;;  %v4294_v25 = vadd.f32 %v661_v34, %v4112_v1 }
  0x8f   :  { %8565 = vst [vmem:[#allocation65_spill] sm:$0xff] %v4224_v29  ;;  %v669_v29 = vadd.f32 %v637_v15, %v4128_v53  ;;  %v8567_v15 = vld [vmem:[#allocation57_spill] sm:$0xff]  ;;  %v685_v7 = vadd.f32 %v653_v48, %v8568_v22  ;;  %v8569_v24 = vld [vmem:[#allocation59_spill] sm:$0xff]  ;;  %v4297_v48 = vadd.f32 %v662_v9, %v4116_v43  ;;  %v4321_v1 = vadd.f32 %v670_v52, %v4148_v57  ;;  %v8577_v43 = vld [vmem:[#allocation86_spill] sm:$0xff] }
  0x90   :  { %v684_v42 = vadd.f32 %v652_v17, %v8567_v15  ;;  %v686_v12 = vadd.f32 %v654_v28, %v8569_v24  ;;  %v8570_v0 = vld [vmem:[#allocation60_spill] sm:$0xff]  ;;  %v4300_v28 = vadd.f32 %v663_v56, %v4120_v4  ;;  %v4315_v17 = vadd.f32 %v668_v8, %v4140_v55  ;;  %v8585_v55 = vld [vmem:[#allocation54_spill] sm:$0xff] }
  0x91   :  { %v687_v36 = vadd.f32 %v655_v35, %v8570_v0  ;;  %v8571_v10 = vld [vmem:[#allocation61_spill] sm:$0xff]  ;;  %v4303_v35 = vadd.f32 %v664_v26, %v4124_v49  ;;  %v4318_v62 = vadd.f32 %v669_v29, %v4144_v31  ;;  %8576 = vst [vmem:[#allocation67_spill] sm:$0xff] %v4321_v1  ;;  %v4324_v4 = vadd.f32 %v671_v14, %v8577_v43  ;;  %v8579_v49 = vld [vmem:[#allocation51_spill] sm:$0xff] }
  0x92   :  { %v688_v50 = vadd.f32 %v656_v6, %v8571_v10  ;;  %v8572_v16 = vld [vmem:[#allocation62_spill] sm:$0xff]  ;;  %v4312_v6 = vadd.f32 %v667_v20, %v4136_v38  ;;  %v8583_v38 = vld [vmem:[#allocation53_spill] sm:$0xff]  ;;  %v4336_v34 = vadd.f32 %v675_v45, %v8585_v55  ;;  %v8587_v31 = vld [vmem:[#allocation55_spill] sm:$0xff]  ;;  %v4342_v57 = vadd.f32 %v677_v41, %v4176_v33 }
  0x93   :  { %v689_v30 = vadd.f32 %v657_v63, %v8572_v16  ;;  %v8573_v5 = vld [vmem:[#allocation34_spill] sm:$0xff]  ;;  %v4306_v63 = vadd.f32 %v665_v44, %v4128_v53  ;;  %8575 = vst [vmem:[#allocation66_spill] sm:$0xff] %v4318_v62  ;;  %v4327_v53 = vadd.f32 %v672_v27, %v8579_v49  ;;  %v4333_v59 = vadd.f32 %v674_v19, %v8583_v38  ;;  %v8608_v19 = vld [vmem:[#allocation35_spill] sm:$0xff] }
  0x94   :  { %v690_v61 = vadd.f32 %v658_v60, %v8573_v5  ;;  %v8574_v58 = vld [vmem:[#allocation63_spill] sm:$0xff]  ;;  %v4309_v60 = vadd.f32 %v666_v21, %v4132_v32  ;;  %8578 = vst [vmem:[#allocation56_spill] sm:$0xff] %v4324_v4  ;;  %v8581_v32 = vld [vmem:[#allocation52_spill] sm:$0xff]  ;;  %v4339_v9 = vadd.f32 %v676_v47, %v8587_v31  ;;  %v4345_v56 = vadd.f32 %v678_v13, %v4180_v18  ;;  %v8612_v13 = vld [vmem:[#allocation69_spill] sm:$0xff] }
  0x95   :  { %v691_v40 = vadd.f32 %v659_v23, %v8574_v58  ;;  %8580 = vst [vmem:[#allocation57_spill] sm:$0xff] %v4327_v53  ;;  %v4330_v23 = vadd.f32 %v673_v11, %v8581_v32  ;;  %v4348_v26 = vadd.f32 %v679_v2, %v8566_v37  ;;  %v4351_v44 = vadd.f32 %v680_v3, %v8567_v15  ;;  %v8610_v47 = vld [vmem:[#allocation36_spill] sm:$0xff]  ;;  %v8613_v3 = vld [vmem:[#allocation3_spill] sm:$0xff]  ;;  %v8623_v49 = vld [vmem:[#allocation22_spill] sm:$0xff] }
  0x96   :  { %8584 = vst [vmem:[#allocation59_spill] sm:$0xff] %v4333_v59  ;;  %v4354_v21 = vadd.f32 %v681_v54, %v8568_v22  ;;  %v4357_v20 = vadd.f32 %v682_v46, %v8569_v24  ;;  %v4360_v8 = vadd.f32 %v683_v51, %v8570_v0  ;;  %v4363_v33 = vadd.f32 %v684_v42, %v8571_v10  ;;  %v8600_v22 = vld [vmem:[#allocation64_spill] sm:$0xff]  ;;  %v8602_v24 = vld [vmem:[#allocation65_spill] sm:$0xff]  ;;  %v8604_v0 = vld [vmem:[#allocation50_spill] sm:$0xff] }
  0x97   :  { %8582 = vst [vmem:[#allocation58_spill] sm:$0xff] %v4330_v23  ;;  %v4366_v18 = vadd.f32 %v685_v7, %v8572_v16  ;;  %v4369_v29 = vadd.f32 %v686_v12, %v8573_v5  ;;  %v4372_v52 = vadd.f32 %v687_v36, %v8574_v58  ;;  %v4375_v14 = vadd.f32 %v688_v50, %v8600_v22  ;;  %v8607_v16 = vld [vmem:[#allocation16_spill] sm:$0xff]  ;;  %v8609_v5 = vld [vmem:[#allocation2_spill] sm:$0xff]  ;;  %v8611_v58 = vld [vmem:[#allocation19_spill] sm:$0xff] }
  0x98   :  { %8586 = vst [vmem:[#allocation60_spill] sm:$0xff] %v4336_v34  ;;  %v4378_v27 = vadd.f32 %v689_v30, %v8602_v24  ;;  %v4381_v11 = vadd.f32 %v690_v61, %v8604_v0  ;;  %v4384_v10 = vadd.f32 %v691_v40, %v8604_v0  ;;  %v725_v45 = vadd.f32 %v8608_v19, %v8607_v16  ;;  %v8614_v54 = vld [vmem:[#allocation37_spill] sm:$0xff]  ;;  %v8615_v37 = vld [vmem:[#allocation20_spill] sm:$0xff]  ;;  %v8616_v51 = vld [vmem:[#allocation38_spill] sm:$0xff] }
  0x99   :  { %8588 = vst [vmem:[#allocation61_spill] sm:$0xff] %v4339_v9  ;;  %v726_v41 = vadd.f32 %v8610_v47, %v8609_v5  ;;  %v727_v2 = vadd.f32 %v8612_v13, %v8611_v58  ;;  %v728_v46 = vadd.f32 %v8614_v54, %v8613_v3  ;;  %v729_v15 = vadd.f32 %v8616_v51, %v8615_v37  ;;  %v8617_v42 = vld [vmem:[#allocation4_spill] sm:$0xff]  ;;  %v8618_v7 = vld [vmem:[#allocation39_spill] sm:$0xff]  ;;  %v8619_v36 = vld [vmem:[#allocation21_spill] sm:$0xff] }
  0x9a   :  { %8589 = vst [vmem:[#allocation62_spill] sm:$0xff] %v4342_v57  ;;  %v730_v12 = vadd.f32 %v8618_v7, %v8617_v42  ;;  %v8620_v50 = vld [vmem:[#allocation40_spill] sm:$0xff]  ;;  %v8621_v61 = vld [vmem:[#allocation5_spill] sm:$0xff]  ;;  %v8624_v32 = vld [vmem:[#allocation42_spill] sm:$0xff] }
  0x9b   :  { %8590 = vst [vmem:[#allocation34_spill] sm:$0xff] %v4345_v56  ;;  %v731_v30 = vadd.f32 %v8620_v50, %v8619_v36  ;;  %v8622_v40 = vld [vmem:[#allocation41_spill] sm:$0xff]  ;;  %v733_v38 = vadd.f32 %v8624_v32, %v8623_v49  ;;  %v8625_v55 = vld [vmem:[#allocation6_spill] sm:$0xff]  ;;  %v8627_v24 = vld [vmem:[#allocation23_spill] sm:$0xff] }
  0x9c   :  { %8591 = vst [vmem:[#allocation63_spill] sm:$0xff] %v4348_v26  ;;  %v732_v43 = vadd.f32 %v8622_v40, %v8621_v61  ;;  %v8626_v31 = vld [vmem:[#allocation70_spill] sm:$0xff]  ;;  %v8628_v0 = vld [vmem:[#allocation71_spill] sm:$0xff]  ;;  %v8630_v5 = vld [vmem:[#allocation72_spill] sm:$0xff] }
  0x9d   :  { %8592 = vst [vmem:[#allocation86_spill] sm:$0xff] %v4351_v44  ;;  %v734_v22 = vadd.f32 %v8626_v31, %v8625_v55  ;;  %v735_v16 = vadd.f32 %v8628_v0, %v8627_v24  ;;  %v8629_v19 = vld [vmem:[#allocation7_spill] sm:$0xff]  ;;  %v8631_v58 = vld [vmem:[#allocation24_spill] sm:$0xff]  ;;  %v8632_v13 = vld [vmem:[#allocation73_spill] sm:$0xff]  ;;  %v761_v9 = vadd.f32 %v731_v30, %v727_v2 }
  0x9e   :  { %8593 = vst [vmem:[#allocation51_spill] sm:$0xff] %v4354_v21  ;;  %v736_v47 = vadd.f32 %v8630_v5, %v8629_v19  ;;  %v737_v3 = vadd.f32 %v8632_v13, %v8631_v58  ;;  %v8633_v54 = vld [vmem:[#allocation8_spill] sm:$0xff]  ;;  %v8634_v37 = vld [vmem:[#allocation74_spill] sm:$0xff]  ;;  %v8635_v42 = vld [vmem:[#allocation25_spill] sm:$0xff] }
  0x9f   :  { %8594 = vst [vmem:[#allocation52_spill] sm:$0xff] %v4357_v20  ;;  %v738_v51 = vadd.f32 %v8634_v37, %v8633_v54  ;;  %v8636_v7 = vld [vmem:[#allocation75_spill] sm:$0xff]  ;;  %v8637_v50 = vld [vmem:[#allocation9_spill] sm:$0xff]  ;;  %v8638_v61 = vld [vmem:[#allocation76_spill] sm:$0xff]  ;;  %v764_v34 = vadd.f32 %v734_v22, %v730_v12 }
  0xa0   :  { %8595 = vst [vmem:[#allocation53_spill] sm:$0xff] %v4360_v8  ;;  %v739_v36 = vadd.f32 %v8636_v7, %v8635_v42  ;;  %v740_v40 = vadd.f32 %v8638_v61, %v8637_v50  ;;  %v8639_v49 = vld [vmem:[#allocation26_spill] sm:$0xff]  ;;  %v8640_v32 = vld [vmem:[#allocation77_spill] sm:$0xff]  ;;  %v8644_v19 = vld [vmem:[#allocation43_spill] sm:$0xff]  ;;  %v767_v59 = vadd.f32 %v737_v3, %v733_v38 }
  0xa1   :  { %8596 = vst [vmem:[#allocation54_spill] sm:$0xff] %v4363_v33  ;;  %v741_v55 = vadd.f32 %v8640_v32, %v8639_v49  ;;  %v8641_v31 = vld [vmem:[#allocation10_spill] sm:$0xff]  ;;  %v8646_v58 = vld [vmem:[#allocation44_spill] sm:$0xff]  ;;  %v8648_v54 = vld [vmem:[#allocation45_spill] sm:$0xff] }
  0xa2   :  { %8597 = vst [vmem:[#allocation55_spill] sm:$0xff] %v4366_v18  ;;  %v8642_v24 = vld [vmem:[#allocation78_spill] sm:$0xff]  ;;  %v8652_v50 = vld [vmem:[#allocation47_spill] sm:$0xff]  ;;  %v8654_v49 = vld [vmem:[#allocation48_spill] sm:$0xff]  ;;  %v770_v23 = vadd.f32 %v740_v40, %v736_v47 }
  0xa3   :  { %8598 = vst [vmem:[#allocation87_spill] sm:$0xff] %v4369_v29  ;;  %v742_v0 = vadd.f32 %v8642_v24, %v8641_v31  ;;  %v8650_v42 = vld [vmem:[#allocation46_spill] sm:$0xff]  ;;  %v8653_v29 = vld [vmem:[#allocation13_spill] sm:$0xff]  ;;  %v8659_v8 = vld [vmem:[#allocation31_spill] sm:$0xff] }
  0xa4   :  { %8599 = vst [vmem:[#allocation88_spill] sm:$0xff] %v4372_v52  ;;  %v8651_v52 = vld [vmem:[#allocation29_spill] sm:$0xff]  ;;  %v748_v32 = vadd.f32 %v8654_v49, %v8653_v29  ;;  %v8655_v18 = vld [vmem:[#allocation30_spill] sm:$0xff]  ;;  %v8661_v20 = vld [vmem:[#allocation15_spill] sm:$0xff] }
  0xa5   :  { %8601 = vst [vmem:[#allocation64_spill] sm:$0xff] %v4375_v14  ;;  %v8649_v14 = vld [vmem:[#allocation12_spill] sm:$0xff]  ;;  %v747_v61 = vadd.f32 %v8652_v50, %v8651_v52  ;;  %v8656_v31 = vld [vmem:[#allocation49_spill] sm:$0xff]  ;;  %v8657_v33 = vld [vmem:[#allocation14_spill] sm:$0xff] }
  0xa6   :  { %8603 = vst [vmem:[#allocation65_spill] sm:$0xff] %v4378_v27  ;;  %v8647_v27 = vld [vmem:[#allocation28_spill] sm:$0xff]  ;;  %v746_v7 = vadd.f32 %v8650_v42, %v8649_v14  ;;  %v749_v24 = vadd.f32 %v8656_v31, %v8655_v18  ;;  %v8664_v14 = vld [vmem:[#allocation82_spill] sm:$0xff]  ;;  %v8665_v44 = vld [vmem:[#allocation17_spill] sm:$0xff] }
  0xa7   :  { %8605 = vst [vmem:[#allocation50_spill] sm:$0xff] %v4381_v11  ;;  %v8645_v11 = vld [vmem:[#allocation11_spill] sm:$0xff]  ;;  %v745_v37 = vadd.f32 %v8648_v54, %v8647_v27  ;;  %v8662_v27 = vld [vmem:[#allocation81_spill] sm:$0xff]  ;;  %v8663_v21 = vld [vmem:[#allocation32_spill] sm:$0xff] }
  0xa8   :  { %8606 = vst [vmem:[#allocation89_spill] sm:$0xff] %v4384_v10  ;;  %v8643_v10 = vld [vmem:[#allocation27_spill] sm:$0xff]  ;;  %v744_v13 = vadd.f32 %v8646_v58, %v8645_v11  ;;  %v8660_v11 = vld [vmem:[#allocation80_spill] sm:$0xff]  ;;  %v752_v54 = vadd.f32 %v8662_v27, %v8661_v20  ;;  %v753_v42 = vadd.f32 %v8664_v14, %v8663_v21  ;;  %v8667_v26 = vld [vmem:[#allocation33_spill] sm:$0xff]  ;;  %v762_v20 = vadd.f32 %v732_v43, %v728_v46 }
  0xa9   :  { %v743_v5 = vadd.f32 %v8644_v19, %v8643_v10  ;;  %v8658_v10 = vld [vmem:[#allocation79_spill] sm:$0xff]  ;;  %v751_v58 = vadd.f32 %v8660_v11, %v8659_v8  ;;  %v8668_v29 = vld [vmem:[#allocation84_spill] sm:$0xff]  ;;  %v8669_v56 = vld [vmem:[#allocation18_spill] sm:$0xff]  ;;  %v759_v8 = vadd.f32 %v729_v15, %v725_v45  ;;  %v760_v11 = vadd.f32 %v730_v12, %v726_v41 }
  0xaa   :  { %v750_v19 = vadd.f32 %v8658_v10, %v8657_v33  ;;  %v8666_v52 = vld [vmem:[#allocation83_spill] sm:$0xff]  ;;  %v755_v49 = vadd.f32 %v8668_v29, %v8667_v26  ;;  %v8670_v18 = vld [vmem:[#allocation85_spill] sm:$0xff]  ;;  %v8671_v57 = vld [vmem:[#allocation68_spill] sm:$0xff]  ;;  %v763_v27 = vadd.f32 %v733_v38, %v729_v15  ;;  %v765_v21 = vadd.f32 %v735_v16, %v731_v30 }
  0xab   :  { %v754_v50 = vadd.f32 %v8666_v52, %v8665_v44  ;;  %v756_v31 = vadd.f32 %v8670_v18, %v8669_v56  ;;  %v757_v33 = vadd.f32 %v727_v2, %v8671_v57  ;;  %v758_v10 = vadd.f32 %v728_v46, %v8671_v57 }
  0xac   :  { %v766_v14 = vadd.f32 %v736_v47, %v732_v43  ;;  %v768_v44 = vadd.f32 %v738_v51, %v734_v22  ;;  %v769_v52 = vadd.f32 %v739_v36, %v735_v16  ;;  %v771_v26 = vadd.f32 %v741_v55, %v737_v3 }
  0xad   :  { %v772_v29 = vadd.f32 %v742_v0, %v738_v51  ;;  %v773_v53 = vadd.f32 %v743_v5, %v739_v36  ;;  %v774_v56 = vadd.f32 %v744_v13, %v740_v40  ;;  %v775_v18 = vadd.f32 %v745_v37, %v741_v55 }
  0xae   :  { %v776_v4 = vadd.f32 %v746_v7, %v742_v0  ;;  %v777_v1 = vadd.f32 %v747_v61, %v743_v5  ;;  %v778_v62 = vadd.f32 %v748_v32, %v744_v13  ;;  %v779_v45 = vadd.f32 %v749_v24, %v745_v37 }
  0xaf   :  { %v780_v41 = vadd.f32 %v750_v19, %v746_v7  ;;  %v781_v2 = vadd.f32 %v751_v58, %v747_v61  ;;  %v782_v46 = vadd.f32 %v752_v54, %v748_v32  ;;  %v783_v15 = vadd.f32 %v753_v42, %v749_v24 }
  0xb0   :  { %v784_v12 = vadd.f32 %v754_v50, %v750_v19  ;;  %v785_v30 = vadd.f32 %v755_v49, %v751_v58  ;;  %v786_v43 = vadd.f32 %v756_v31, %v752_v54  ;;  %v787_v38 = vadd.f32 %v753_v42, %v8671_v57 }
  0xb1   :  { %v788_v22 = vadd.f32 %v754_v50, %v8671_v57  ;;  %v789_v16 = vmul.f32 2.0, %v757_v33  ;;  %v790_v47 = vmul.f32 2.0, %v758_v10  ;;  %v791_v3 = vmul.f32 2.0, %v759_v8 }
  0xb2   :  { %v792_v51 = vmul.f32 2.0, %v760_v11  ;;  %v4454_v36 = vmul.f32 2.0, %v761_v9  ;;  %v4456_v40 = vmul.f32 2.0, %v762_v20  ;;  %v4458_v55 = vmul.f32 2.0, %v763_v27 }
  0xb3   :  { %v4460_v0 = vmul.f32 2.0, %v764_v34  ;;  %v4462_v5 = vmul.f32 2.0, %v765_v21  ;;  %v4464_v13 = vmul.f32 2.0, %v766_v14  ;;  %v4466_v37 = vmul.f32 2.0, %v767_v59 }
  0xb4   :  { %v4468_v7 = vmul.f32 2.0, %v768_v44  ;;  %v4470_v61 = vmul.f32 2.0, %v769_v52  ;;  %v4472_v32 = vmul.f32 2.0, %v770_v23  ;;  %v4474_v9 = vmul.f32 2.0, %v771_v26 }
  0xb5   :  { %v4476_v24 = vmul.f32 2.0, %v772_v29  ;;  %v4478_v19 = vmul.f32 2.0, %v773_v53  ;;  %v4480_v34 = vmul.f32 2.0, %v774_v56  ;;  %v4482_v58 = vmul.f32 2.0, %v775_v18 }
  0xb6   :  { %v4484_v54 = vmul.f32 2.0, %v776_v4  ;;  %v4486_v59 = vmul.f32 2.0, %v777_v1  ;;  %v4488_v42 = vmul.f32 2.0, %v778_v62  ;;  %v4490_v50 = vmul.f32 2.0, %v779_v45 }
  0xb7   :  { %v4492_v23 = vmul.f32 2.0, %v780_v41  ;;  %v4494_v49 = vmul.f32 2.0, %v781_v2  ;;  %v4496_v31 = vmul.f32 2.0, %v782_v46  ;;  %v4498_v53 = vmul.f32 2.0, %v783_v15  ;;  %v8679_v2 = vld [vmem:[#allocation61_spill] sm:$0xff]  ;;  %v8680_v15 = vld [vmem:[#allocation62_spill] sm:$0xff] }
  0xb8   :  { %v4500_v33 = vmul.f32 2.0, %v784_v12  ;;  %v4502_v10 = vmul.f32 2.0, %v785_v30  ;;  %v4504_v4 = vmul.f32 2.0, %v786_v43  ;;  %v4506_v1 = vmul.f32 2.0, %v787_v38  ;;  %v8681_v30 = vld [vmem:[#allocation34_spill] sm:$0xff]  ;;  %v8682_v38 = vld [vmem:[#allocation63_spill] sm:$0xff] }
  0xb9   :  { %v4508_v62 = vmul.f32 2.0, %v788_v22  ;;  %v821_v8 = vsub.f32 %v4291_v39, %v789_v16  ;;  %v822_v11 = vsub.f32 %v4294_v25, %v790_v47  ;;  %v823_v20 = vsub.f32 %v4297_v48, %v791_v3  ;;  %v8672_v25 = vld [vmem:[#allocation66_spill] sm:$0xff]  ;;  %v8684_v3 = vld [vmem:[#allocation51_spill] sm:$0xff] }
  0xba   :  { %v824_v27 = vsub.f32 %v4300_v28, %v792_v51  ;;  %v825_v21 = vsub.f32 %v4303_v35, %v4454_v36  ;;  %v826_v14 = vsub.f32 %v4306_v63, %v4456_v40  ;;  %v827_v44 = vsub.f32 %v4309_v60, %v4458_v55  ;;  %v8673_v28 = vld [vmem:[#allocation67_spill] sm:$0xff]  ;;  %v8674_v35 = vld [vmem:[#allocation56_spill] sm:$0xff]  ;;  %v8675_v63 = vld [vmem:[#allocation57_spill] sm:$0xff] }
  0xbb   :  { %v828_v52 = vsub.f32 %v4312_v6, %v4460_v0  ;;  %v829_v39 = vsub.f32 %v4315_v17, %v4462_v5  ;;  %v830_v48 = vsub.f32 %v8672_v25, %v4464_v13  ;;  %v831_v26 = vsub.f32 %v8673_v28, %v4466_v37  ;;  %v8676_v60 = vld [vmem:[#allocation58_spill] sm:$0xff]  ;;  %v8677_v6 = vld [vmem:[#allocation59_spill] sm:$0xff]  ;;  %v8678_v17 = vld [vmem:[#allocation60_spill] sm:$0xff] }
  0xbc   :  { %v832_v29 = vsub.f32 %v8674_v35, %v4468_v7  ;;  %v833_v56 = vsub.f32 %v8675_v63, %v4470_v61  ;;  %v834_v18 = vsub.f32 %v8676_v60, %v4472_v32  ;;  %v835_v45 = vsub.f32 %v8677_v6, %v4474_v9  ;;  %v8683_v16 = vld [vmem:[#allocation86_spill] sm:$0xff]  ;;  %v8685_v36 = vld [vmem:[#allocation52_spill] sm:$0xff]  ;;  %v8686_v5 = vld [vmem:[#allocation53_spill] sm:$0xff] }
  0xbd   :  { %v836_v41 = vsub.f32 %v8678_v17, %v4476_v24  ;;  %v837_v46 = vsub.f32 %v8679_v2, %v4478_v19  ;;  %v838_v12 = vsub.f32 %v8680_v15, %v4480_v34  ;;  %v839_v43 = vsub.f32 %v8681_v30, %v4482_v58  ;;  %v8687_v61 = vld [vmem:[#allocation54_spill] sm:$0xff]  ;;  %v8688_v9 = vld [vmem:[#allocation55_spill] sm:$0xff]  ;;  %v8690_v58 = vld [vmem:[#allocation88_spill] sm:$0xff] }
  0xbe   :  { %v840_v22 = vsub.f32 %v8682_v38, %v4484_v54  ;;  %v841_v47 = vsub.f32 %v8683_v16, %v4486_v59  ;;  %v842_v51 = vsub.f32 %v8684_v3, %v4488_v42  ;;  %v843_v40 = vsub.f32 %v8685_v36, %v4490_v50  ;;  %v8689_v19 = vld [vmem:[#allocation87_spill] sm:$0xff]  ;;  %v8691_v59 = vld [vmem:[#allocation64_spill] sm:$0xff]  ;;  %v8692_v50 = vld [vmem:[#allocation65_spill] sm:$0xff] }
  0xbf   :  { %v886_v55 = vrot.slane %v821_v8, 6  ;;  %v4552_v0 = vrot.slane %v822_v11, 6  ;;  %v844_v13 = vsub.f32 %v8686_v5, %v4492_v23  ;;  %v889_v37 = vrot.slane %v823_v20, 6  ;;  %v8693_v8 = vld [vmem:[#allocation50_spill] sm:$0xff] }
  0xc0   :  { %v4556_v7 = vrot.slane %v824_v27, 6  ;;  %v845_v32 = vsub.f32 %v8687_v61, %v4494_v49  ;;  %v846_v24 = vsub.f32 %v8688_v9, %v4496_v31  ;;  %v847_v34 = vsub.f32 %v8689_v19, %v4498_v53  ;;  %v8694_v49 = vld [vmem:[#allocation89_spill] sm:$0xff] }
  0xc1   :  { %v848_v54 = vsub.f32 %v8690_v58, %v4500_v33  ;;  %v849_v42 = vsub.f32 %v8691_v59, %v4502_v10  ;;  %v850_v23 = vsub.f32 %v8692_v50, %v4504_v4  ;;  %v851_v11 = vsub.f32 %v8693_v8, %v4506_v1 }
  0xc2   :  { %v852_v20 = vsub.f32 %v8694_v49, %v4508_v62  ;;  %v4576_v31 = vsel %vm885_vm3, %v886_v55, %v4552_v0  ;;  %v892_v53 = vrot.slane %v825_v21, 6  ;;  %v893_v27 = vrot.slane %v826_v14, 6 }
  0xc3   :  { %8695 = vst [vmem:[#allocation16_spill] sm:$0xff] %v4576_v31  ;;  %v895_v25 = vrot.slane %v827_v44, 6  ;;  %v4580_v33 = vsel %vm885_vm3, %v889_v37, %v4556_v7  ;;  %v896_v10 = vrot.slane %v828_v52, 6  ;;  %v898_v28 = vrot.slane %v829_v39, 6 }
  0xc4   :  { %8696 = vst [vmem:[#allocation35_spill] sm:$0xff] %v4580_v33  ;;  %v899_v4 = vrot.slane %v830_v48, 6  ;;  %v901_v35 = vrot.slane %v831_v26, 6  ;;  %v902_v63 = vrot.slane %v832_v29, 6  ;;  %v904_v1 = vrot.slane %v833_v56, 6 }
  0xc5   :  { %v905_v60 = vrot.slane %v834_v18, 6  ;;  %v907_v6 = vrot.slane %v835_v45, 6  ;;  %v908_v62 = vrot.slane %v836_v41, 6  ;;  %v910_v17 = vrot.slane %v837_v46, 6 }
  0xc6   :  { %v911_v2 = vrot.slane %v838_v12, 6  ;;  %v913_v15 = vrot.slane %v839_v43, 6  ;;  %v914_v30 = vrot.slane %v840_v22, 6  ;;  %v916_v21 = vrot.slane %v841_v47, 6 }
  0xc7   :  { %v917_v14 = vrot.slane %v842_v51, 6  ;;  %v919_v44 = vrot.slane %v843_v40, 6  ;;  %v920_v38 = vrot.slane %v844_v13, 6  ;;  %v922_v16 = vrot.slane %v845_v32, 6 }
  0xc8   :  { %v923_v3 = vrot.slane %v846_v24, 6  ;;  %v925_v36 = vrot.slane %v847_v34, 6  ;;  %v926_v52 = vrot.slane %v848_v54, 6  ;;  %v928_v39 = vrot.slane %v849_v42, 6 }
  0xc9   :  { %v929_v48 = vrot.slane %v850_v23, 6  ;;  %v4583_v26 = vsel %vm885_vm3, %v892_v53, %v893_v27  ;;  %v4586_v29 = vsel %vm885_vm3, %v895_v25, %v896_v10  ;;  %v931_v56 = vrot.slane %v851_v11, 6 }
  0xca   :  { %8697 = vst [vmem:[#allocation2_spill] sm:$0xff] %v4583_v26  ;;  %v932_v18 = vrot.slane %v852_v20, 6  ;;  %v4589_v45 = vsel %vm885_vm3, %v898_v28, %v899_v4  ;;  %v4592_v41 = vsel %vm885_vm3, %v901_v35, %v902_v63  ;;  %v4595_v46 = vsel %vm885_vm3, %v904_v1, %v905_v60 }
  0xcb   :  { %8698 = vst [vmem:[#allocation36_spill] sm:$0xff] %v4586_v29  ;;  %v4598_v12 = vsel %vm885_vm3, %v907_v6, %v908_v62  ;;  %v4601_v43 = vsel %vm885_vm3, %v910_v17, %v911_v2  ;;  %v4604_v22 = vsel %vm885_vm3, %v913_v15, %v914_v30  ;;  %v4607_v47 = vsel %vm885_vm3, %v916_v21, %v917_v14 }
  0xcc   :  { %8699 = vst [vmem:[#allocation19_spill] sm:$0xff] %v4589_v45  ;;  %v4610_v51 = vsel %vm885_vm3, %v919_v44, %v920_v38  ;;  %v4613_v40 = vsel %vm885_vm3, %v922_v16, %v923_v3  ;;  %v4616_v5 = vsel %vm885_vm3, %v925_v36, %v926_v52  ;;  %v4619_v13 = vsel %vm885_vm3, %v928_v39, %v929_v48 }
  0xcd   :  { %8700 = vst [vmem:[#allocation69_spill] sm:$0xff] %v4592_v41  ;;  %v4622_v61 = vsel %vm885_vm3, 0.0, %v886_v55  ;;  %v4625_v32 = vsel %vm885_vm3, %v931_v56, %v932_v18  ;;  %v4628_v9 = vsel %vm885_vm3, 0.0, %v889_v37  ;;  %v4631_v24 = vsel %vm885_vm3, 0.0, %v892_v53 }
  0xce   :  { %8701 = vst [vmem:[#allocation3_spill] sm:$0xff] %v4595_v46  ;;  %v4634_v19 = vsel %vm885_vm3, 0.0, %v895_v25  ;;  %v4637_v34 = vsel %vm885_vm3, 0.0, %v898_v28  ;;  %v4640_v58 = vsel %vm885_vm3, 0.0, %v901_v35  ;;  %v4643_v55 = vsel %vm885_vm3, 0.0, %v904_v1 }
  0xcf   :  { %8702 = vst [vmem:[#allocation37_spill] sm:$0xff] %v4598_v12  ;;  %v4646_v54 = vsel %vm885_vm3, 0.0, %v907_v6  ;;  %v4649_v37 = vsel %vm885_vm3, 0.0, %v910_v17  ;;  %v4652_v59 = vsel %vm885_vm3, 0.0, %v913_v15  ;;  %v4655_v42 = vsel %vm885_vm3, 0.0, %v916_v21 }
  0xd0   :  { %8703 = vst [vmem:[#allocation20_spill] sm:$0xff] %v4601_v43  ;;  %v4658_v50 = vsel %vm885_vm3, 0.0, %v919_v44  ;;  %v4661_v23 = vsel %vm885_vm3, 0.0, %v922_v16  ;;  %v4664_v8 = vsel %vm885_vm3, 0.0, %v925_v36  ;;  %v4667_v11 = vsel %vm885_vm3, 0.0, %v928_v39 }
  0xd1   :  { %8704 = vst [vmem:[#allocation38_spill] sm:$0xff] %v4604_v22  ;;  %v4670_v49 = vsel %vm885_vm3, 0.0, %v931_v56  ;;  %v4674_v20 = vsel %vm885_vm3, %v4552_v0, 0.0  ;;  %v4678_v53 = vsel %vm885_vm3, %v4556_v7, 0.0  ;;  %v4681_v25 = vsel %vm885_vm3, %v893_v27, 0.0 }
  0xd2   :  { %8705 = vst [vmem:[#allocation4_spill] sm:$0xff] %v4607_v47  ;;  %v4684_v28 = vsel %vm885_vm3, %v896_v10, 0.0  ;;  %v4687_v35 = vsel %vm885_vm3, %v899_v4, 0.0  ;;  %v4690_v1 = vsel %vm885_vm3, %v902_v63, 0.0  ;;  %v4693_v6 = vsel %vm885_vm3, %v905_v60, 0.0 }
  0xd3   :  { %8706 = vst [vmem:[#allocation39_spill] sm:$0xff] %v4610_v51  ;;  %v4696_v0 = vsel %vm885_vm3, %v908_v62, 0.0  ;;  %v4699_v7 = vsel %vm885_vm3, %v911_v2, 0.0  ;;  %v4702_v27 = vsel %vm885_vm3, %v914_v30, 0.0  ;;  %v4705_v10 = vsel %vm885_vm3, %v917_v14, 0.0 }
  0xd4   :  { %8707 = vst [vmem:[#allocation21_spill] sm:$0xff] %v4613_v40  ;;  %v4708_v4 = vsel %vm885_vm3, %v920_v38, 0.0  ;;  %v4711_v63 = vsel %vm885_vm3, %v923_v3, 0.0  ;;  %v4714_v60 = vsel %vm885_vm3, %v926_v52, 0.0  ;;  %v4717_v62 = vsel %vm885_vm3, %v929_v48, 0.0 }
  0xd5   :  { %8708 = vst [vmem:[#allocation40_spill] sm:$0xff] %v4616_v5  ;;  %v4720_v17 = vsel %vm885_vm3, %v932_v18, 0.0  ;;  %v4723_v2 = vmul.f32 -2.0, %v4622_v61  ;;  %v4726_v15 = vmul.f32 -2.0, %v4576_v31  ;;  %v4729_v30 = vmul.f32 -2.0, %v4674_v20 }
  0xd6   :  { %8709 = vst [vmem:[#allocation5_spill] sm:$0xff] %v4619_v13  ;;  %v4732_v21 = vmul.f32 -2.0, %v4628_v9  ;;  %v4735_v14 = vmul.f32 -2.0, %v4580_v33  ;;  %v4738_v44 = vmul.f32 -2.0, %v4678_v53  ;;  %v4741_v38 = vmul.f32 -2.0, %v4631_v24 }
  0xd7   :  { %8710 = vst [vmem:[#allocation41_spill] sm:$0xff] %v4622_v61  ;;  %v4744_v16 = vmul.f32 -2.0, %v4583_v26  ;;  %v4747_v3 = vmul.f32 -2.0, %v4681_v25  ;;  %v4750_v36 = vmul.f32 -2.0, %v4634_v19  ;;  %v4753_v52 = vmul.f32 -2.0, %v4586_v29 }
  0xd8   :  { %8711 = vst [vmem:[#allocation22_spill] sm:$0xff] %v4625_v32  ;;  %v4756_v39 = vmul.f32 -2.0, %v4684_v28  ;;  %v4759_v48 = vmul.f32 -2.0, %v4637_v34  ;;  %v4762_v56 = vmul.f32 -2.0, %v4589_v45  ;;  %v4765_v18 = vmul.f32 -2.0, %v4687_v35 }
  0xd9   :  { %8712 = vst [vmem:[#allocation42_spill] sm:$0xff] %v4628_v9  ;;  %v4768_v57 = vmul.f32 -2.0, %v4640_v58  ;;  %v4783_v45 = vmul.f32 -2.0, %v4693_v6  ;;  %v1124_v29 = vrot.slane %v4744_v16, 1 }
  0xda   :  { %8713 = vst [vmem:[#allocation6_spill] sm:$0xff] %v4631_v24 }
  0xdb   :  { %8714 = vst [vmem:[#allocation70_spill] sm:$0xff] %v4634_v19 }
  0xdc   :  { %8715 = vst [vmem:[#allocation23_spill] sm:$0xff] %v4637_v34  ;;  %v4839_v34 = vmul.f32 -2.0, %v4711_v63 }
  0xdd   :  { %8716 = vst [vmem:[#allocation71_spill] sm:$0xff] %v4640_v58  ;;  %v4789_v58 = vmul.f32 -2.0, %v4598_v12  ;;  %v4810_v12 = vmul.f32 -2.0, %v4702_v27 }
  0xde   :  { %8717 = vst [vmem:[#allocation7_spill] sm:$0xff] %v4643_v55 }
  0xdf   :  { %8718 = vst [vmem:[#allocation72_spill] sm:$0xff] %v4646_v54 }
  0xe0   :  { %8719 = vst [vmem:[#allocation24_spill] sm:$0xff] %v4649_v37 }
  0xe1   :  { %8720 = vst [vmem:[#allocation73_spill] sm:$0xff] %v4652_v59 }
  0xe2   :  { %8721 = vst [vmem:[#allocation8_spill] sm:$0xff] %v4655_v42 }
  0xe3   :  { %8722 = vst [vmem:[#allocation74_spill] sm:$0xff] %v4658_v50 }
  0xe4   :  { %8723 = vst [vmem:[#allocation25_spill] sm:$0xff] %v4661_v23 }
  0xe5   :  { %8724 = vst [vmem:[#allocation75_spill] sm:$0xff] %v4664_v8 }
  0xe6   :  { %8725 = vst [vmem:[#allocation9_spill] sm:$0xff] %v4667_v11 }
  0xe7   :  { %8726 = vst [vmem:[#allocation76_spill] sm:$0xff] %v4670_v49 }
  0xe8   :  { %8727 = vst [vmem:[#allocation26_spill] sm:$0xff] %v4674_v20  ;;  %v4780_v20 = vmul.f32 -2.0, %v4595_v46  ;;  %v4801_v46 = vmul.f32 -2.0, %v4699_v7 }
  0xe9   :  { %8728 = vst [vmem:[#allocation77_spill] sm:$0xff] %v4678_v53  ;;  %v4774_v53 = vmul.f32 -2.0, %v4690_v1 }
  0xea   :  { %8729 = vst [vmem:[#allocation10_spill] sm:$0xff] %v4681_v25  ;;  %v4771_v25 = vmul.f32 -2.0, %v4592_v41  ;;  %v4792_v41 = vmul.f32 -2.0, %v4696_v0 }
  0xeb   :  { %8730 = vst [vmem:[#allocation78_spill] sm:$0xff] %v4684_v28  ;;  %v4777_v28 = vmul.f32 -2.0, %v4643_v55  ;;  %v4798_v55 = vmul.f32 -2.0, %v4601_v43  ;;  %v4819_v43 = vmul.f32 -2.0, %v4705_v10 }
  0xec   :  { %8731 = vst [vmem:[#allocation27_spill] sm:$0xff] %v4687_v35  ;;  %v4786_v35 = vmul.f32 -2.0, %v4646_v54  ;;  %v4807_v54 = vmul.f32 -2.0, %v4604_v22  ;;  %v4828_v22 = vmul.f32 -2.0, %v4708_v4 }
  0xed   :  { %8732 = vst [vmem:[#allocation43_spill] sm:$0xff] %v4690_v1  ;;  %v4795_v1 = vmul.f32 -2.0, %v4649_v37  ;;  %v4816_v37 = vmul.f32 -2.0, %v4607_v47  ;;  %v1113_v47 = vrot.slane %v4723_v2, 1 }
  0xee   :  { %8733 = vst [vmem:[#allocation11_spill] sm:$0xff] %v4693_v6  ;;  %v4804_v6 = vmul.f32 -2.0, %v4652_v59  ;;  %v4825_v59 = vmul.f32 -2.0, %v4610_v51  ;;  %v4863_v51 = vmul.f32 -2.0, %v4670_v49 }
  0xef   :  { %8734 = vst [vmem:[#allocation44_spill] sm:$0xff] %v4696_v0  ;;  %v4813_v0 = vmul.f32 -2.0, %v4655_v42  ;;  %v4834_v42 = vmul.f32 -2.0, %v4613_v40  ;;  %v1118_v40 = vrot.slane %v4732_v21, 1 }
  0xf0   :  { %8735 = vst [vmem:[#allocation28_spill] sm:$0xff] %v4699_v7  ;;  %v4822_v7 = vmul.f32 -2.0, %v4658_v50  ;;  %v4842_v50 = vmul.f32 -2.0, %v4664_v8  ;;  %v4860_v8 = vmul.f32 -2.0, %v4717_v62 }
  0xf1   :  { %8736 = vst [vmem:[#allocation45_spill] sm:$0xff] %v4702_v27  ;;  %v4831_v27 = vmul.f32 -2.0, %v4661_v23  ;;  %v4849_v23 = vmul.f32 -2.0, %v4714_v60 }
  0xf2   :  { %8737 = vst [vmem:[#allocation12_spill] sm:$0xff] %v4705_v10  ;;  %v1114_v10 = vrot.slane %v4726_v15, 1 }
  0xf3   :  { %8738 = vst [vmem:[#allocation46_spill] sm:$0xff] %v4708_v4  ;;  %v4846_v4 = vmul.f32 -2.0, %v4616_v5  ;;  %v4866_v5 = vmul.f32 -2.0, %v4625_v32  ;;  %v1123_v32 = vrot.slane %v4741_v38, 1 }
  0xf4   :  { %8739 = vst [vmem:[#allocation29_spill] sm:$0xff] %v4711_v63  ;;  %v4857_v63 = vmul.f32 -2.0, %v4619_v13  ;;  %v8792_v13 = vrot.slane %v4729_v30, 1 }
  0xf5   :  { %8740 = vst [vmem:[#allocation47_spill] sm:$0xff] %v4714_v60  ;;  %v4869_v60 = vmul.f32 -2.0, %v4720_v17 }
  0xf6   :  { %8741 = vst [vmem:[#allocation13_spill] sm:$0xff] %v4717_v62  ;;  %v4880_v62 = vsel %vm298_vm1, %v1114_v10, %v8792_v13  ;;  %v1133_v13 = vrot.slane %v4759_v48, 1 }
  0xf7   :  { %8742 = vst [vmem:[#allocation48_spill] sm:$0xff] %v4720_v17 }
  0xf8   :  { %8743 = vst [vmem:[#allocation30_spill] sm:$0xff] %v4723_v2  ;;  %v1119_v2 = vrot.slane %v4735_v14, 1 }
  0xf9   :  { %8744 = vst [vmem:[#allocation49_spill] sm:$0xff] %v4726_v15  ;;  %v4854_v15 = vmul.f32 -2.0, %v4667_v11  ;;  %v4875_v11 = vsel %vm298_vm1, %v1113_v47, %v1114_v10  ;;  %v1129_v47 = vrot.slane %v4753_v52, 1  ;;  %v1134_v10 = vrot.slane %v4762_v56, 1 }
  0xfa   :  { %8745 = vst [vmem:[#allocation14_spill] sm:$0xff] %v4729_v30  ;;  %v4886_v17 = vsel %vm298_vm1, %v1118_v40, %v1119_v2  ;;  %v1148_v30 = vrot.slane %v4786_v35, 1  ;;  %v1154_v40 = vrot.slane %v4798_v55, 1 }
  0xfb   :  { %8746 = vst [vmem:[#allocation79_spill] sm:$0xff] %v4732_v21  ;;  %v7999_v21 = vmov -0.0  }
  0xfc   :  { %8747 = vst [vmem:[#allocation31_spill] sm:$0xff] %v4735_v14  ;;  %v4872_v14 = vrot.slane %v7999_v21, 1  ;;  %v1143_v21 = vrot.slane %v4777_v28, 1 }
  0xfd   :  { %8748 = vst [vmem:[#allocation80_spill] sm:$0xff] %v4738_v44 }
  0xfe   :  { %8749 = vst [vmem:[#allocation15_spill] sm:$0xff] %v4741_v38  ;;  %v1138_v38 = vrot.slane %v4768_v57, 1 }
  0xff   :  { %8750 = vst [vmem:[#allocation81_spill] sm:$0xff] %v4744_v16  ;;  %v1139_v16 = vrot.slane %v4771_v25, 1 }
 0x100   :  { %8751 = vst [vmem:[#allocation32_spill] sm:$0xff] %v4747_v3 }
 0x101   :  { %8752 = vst [vmem:[#allocation82_spill] sm:$0xff] %v4750_v36 }
 0x102   :  { %8753 = vst [vmem:[#allocation17_spill] sm:$0xff] %v4753_v52 }
 0x103   :  { %8754 = vst [vmem:[#allocation83_spill] sm:$0xff] %v4756_v39 }
 0x104   :  { %8755 = vst [vmem:[#allocation33_spill] sm:$0xff] %v4759_v48  ;;  %v1149_v48 = vrot.slane %v4789_v58, 1 }
 0x105   :  { %8756 = vst [vmem:[#allocation84_spill] sm:$0xff] %v4762_v56  ;;  %v8793_v56 = vrot.slane %v4738_v44, 1  ;;  %v8795_v44 = vrot.slane %v4756_v39, 1 }
 0x106   :  { %8757 = vst [vmem:[#allocation18_spill] sm:$0xff] %v4765_v18 }
 0x107   :  { %8758 = vst [vmem:[#allocation85_spill] sm:$0xff] %v4768_v57  ;;  %v1122_v49 = vsel %vm298_vm1, %v1119_v2, %v8793_v56  ;;  %v1132_v2 = vsel %vm298_vm1, %v1129_v47, %v8795_v44  ;;  %v1135_v56 = vsel %vm298_vm1, %v1133_v13, %v1134_v10  ;;  %v8796_v57 = vrot.slane %v4765_v18, 1 }
 0x108   :  { %8759 = vst [vmem:[#allocation66_spill] sm:$0xff] %v4771_v25  ;;  %v1153_v25 = vrot.slane %v4795_v1, 1  ;;  %v1150_v44 = vsel %vm298_vm1, %v1148_v30, %v1149_v48  ;;  %v1164_v30 = vrot.slane %v4816_v37, 1 }
 0x109   :  { %8760 = vst [vmem:[#allocation67_spill] sm:$0xff] %v4774_v53 }
 0x10a   :  { %8761 = vst [vmem:[#allocation56_spill] sm:$0xff] %v4777_v28  ;;  %v1125_v28 = vsel %vm298_vm1, %v1123_v32, %v1124_v29  ;;  %v1140_v32 = vsel %vm298_vm1, %v1138_v38, %v1139_v16  ;;  %v1158_v38 = vrot.slane %v4804_v6, 1 }
 0x10b   :  { %8762 = vst [vmem:[#allocation57_spill] sm:$0xff] %v4780_v20 }
 0x10c   :  { %8763 = vst [vmem:[#allocation58_spill] sm:$0xff] %v4783_v45 }
 0x10d   :  { %8764 = vst [vmem:[#allocation59_spill] sm:$0xff] %v4786_v35 }
 0x10e   :  { %8765 = vst [vmem:[#allocation60_spill] sm:$0xff] %v4789_v58 }
 0x10f   :  { %8766 = vst [vmem:[#allocation61_spill] sm:$0xff] %v4792_v41 }
 0x110   :  { %8767 = vst [vmem:[#allocation62_spill] sm:$0xff] %v4795_v1  ;;  %v8797_v1 = vrot.slane %v4774_v53, 1 }
 0x111   :  { %8768 = vst [vmem:[#allocation34_spill] sm:$0xff] %v4798_v55  ;;  %v1137_v55 = vsel %vm298_vm1, %v1134_v10, %v8796_v57  ;;  %v1155_v57 = vsel %vm298_vm1, %v1153_v25, %v1154_v40  ;;  %v1159_v10 = vrot.slane %v4807_v54, 1  ;;  %v1169_v25 = vrot.slane %v4825_v59, 1 }
 0x112   :  { %8769 = vst [vmem:[#allocation63_spill] sm:$0xff] %v4801_v46 }
 0x113   :  { %8770 = vst [vmem:[#allocation86_spill] sm:$0xff] %v4804_v6  ;;  %v1174_v6 = vrot.slane %v4834_v42, 1 }
 0x114   :  { %8771 = vst [vmem:[#allocation51_spill] sm:$0xff] %v4807_v54  ;;  %v1173_v54 = vrot.slane %v4831_v27, 1 }
 0x115   :  { %8772 = vst [vmem:[#allocation52_spill] sm:$0xff] %v4810_v12 }
 0x116   :  { %8773 = vst [vmem:[#allocation53_spill] sm:$0xff] %v4813_v0 }
 0x117   :  { %8774 = vst [vmem:[#allocation54_spill] sm:$0xff] %v4816_v37  ;;  %v8802_v37 = vrot.slane %v4819_v43, 1 }
 0x118   :  { %8775 = vst [vmem:[#allocation55_spill] sm:$0xff] %v4819_v43 }
 0x119   :  { %8776 = vst [vmem:[#allocation87_spill] sm:$0xff] %v4822_v7 }
 0x11a   :  { %8777 = vst [vmem:[#allocation88_spill] sm:$0xff] %v4825_v59  ;;  %v1160_v59 = vsel %vm298_vm1, %v1158_v38, %v1159_v10 }
 0x11b   :  { %8778 = vst [vmem:[#allocation64_spill] sm:$0xff] %v4828_v22 }
 0x11c   :  { %8779 = vst [vmem:[#allocation65_spill] sm:$0xff] %v4831_v27  ;;  %v1188_v27 = vrot.slane %v4863_v51, 1 }
 0x11d   :  { %8780 = vst [vmem:[#allocation50_spill] sm:$0xff] %v4834_v42  ;;  %v1189_v42 = vrot.slane %v4866_v5, 1 }
 0x11e   :  { %8781 = vst [vmem:[#allocation89_spill] sm:$0xff] %v4839_v34 }
 0x11f   :  { %8782 = vst [vmem:[#allocation90_spill] sm:$0xff] %v4842_v50 }
 0x120   :  { %8783 = vst [vmem:[#allocation91_spill] sm:$0xff] %v4846_v4 }
 0x121   :  { %8784 = vst [vmem:[#allocation92_spill] sm:$0xff] %v4849_v23 }
 0x122   :  { %8785 = vst [vmem:[#allocation93_spill] sm:$0xff] %v4854_v15 }
 0x123   :  { %8786 = vst [vmem:[#allocation94_spill] sm:$0xff] %v4857_v63 }
 0x124   :  { %8787 = vst [vmem:[#allocation95_spill] sm:$0xff] %v4860_v8 }
 0x125   :  { %8788 = vst [vmem:[#allocation96_spill] sm:$0xff] %v4863_v51 }
 0x126   :  { %8789 = vst [vmem:[#allocation97_spill] sm:$0xff] %v4866_v5  ;;  %v1175_v5 = vsel %vm298_vm1, %v1173_v54, %v1174_v6 }
 0x127   :  { %8790 = vst [vmem:[#allocation98_spill] sm:$0xff] %v4869_v60 }
 0x128   :  { %8791 = vst [vmem:[#allocation99_spill] sm:$0xff] %v4872_v14  ;;  %v1128_v14 = vrot.slane %v4750_v36, 1  ;;  %v1144_v36 = vrot.slane %v4780_v20, 1  ;;  %v8794_v20 = vrot.slane %v4747_v3, 1 }
 0x12a   :  { %v1127_v52 = vsel %vm298_vm1, %v1124_v29, %v8794_v20  ;;  %v1130_v35 = vsel %vm298_vm1, %v1128_v14, %v1129_v47  ;;  %v1142_v29 = vsel %vm298_vm1, %v1139_v16, %v8797_v1  ;;  %v1145_v20 = vsel %vm298_vm1, %v1143_v21, %v1144_v36 }
 0x12b   :  { %v8798_v14 = vrot.slane %v4783_v45, 1  ;;  %v8799_v47 = vrot.slane %v4792_v41, 1  ;;  %v8800_v1 = vrot.slane %v4801_v46, 1  ;;  %v1179_v16 = vrot.slane %v4846_v4, 1 }
 0x12d   :  { %v1147_v58 = vsel %vm298_vm1, %v1144_v36, %v8798_v14  ;;  %v1152_v13 = vsel %vm298_vm1, %v1149_v48, %v8799_v47  ;;  %v1157_v21 = vsel %vm298_vm1, %v1154_v40, %v8800_v1  ;;  %v1163_v36 = vrot.slane %v4813_v0, 1 }
 0x12e   :  { %v1168_v48 = vrot.slane %v4822_v7, 1  ;;  %v1178_v1 = vrot.slane %v4842_v50, 1  ;;  %v1183_v14 = vrot.slane %v4854_v15, 1  ;;  %v1184_v7 = vrot.slane %v4857_v63, 1 }
 0x12f   :  { %v8801_v40 = vrot.slane %v4810_v12, 1  ;;  %v1165_v4 = vsel %vm298_vm1, %v1163_v36, %v1164_v30  ;;  %v1167_v15 = vsel %vm298_vm1, %v1164_v30, %v8802_v37  ;;  %v8032_v63 = vrot.slane %v4869_v60, 1 }
 0x130   :  { %v1170_v38 = vsel %vm298_vm1, %v1168_v48, %v1169_v25  ;;  %v8803_v47 = vrot.slane %v4828_v22, 1  ;;  %v8804_v0 = vrot.slane %v4839_v34, 1  ;;  %v1180_v36 = vsel %vm298_vm1, %v1178_v1, %v1179_v16 }
 0x131   :  { %v1162_v50 = vsel %vm298_vm1, %v1159_v10, %v8801_v40  ;;  %v8805_v40 = vrot.slane %v4849_v23, 1  ;;  %v1185_v30 = vsel %vm298_vm1, %v1183_v14, %v1184_v7  ;;  %v4982_v48 = vadd.f32 %v4875_v11, %v4622_v61 }
 0x132   :  { %v1172_v51 = vsel %vm298_vm1, %v1169_v25, %v8803_v47  ;;  %v1177_v10 = vsel %vm298_vm1, %v1174_v6, %v8804_v0  ;;  %v8807_v25 = vrot.slane %v4860_v8, 1  ;;  %v1190_v47 = vsel %vm298_vm1, %v1188_v27, %v1189_v42 }
 0x133   :  { %v1182_v37 = vsel %vm298_vm1, %v1179_v16, %v8805_v40  ;;  %8806 = vst [vmem:[#allocation100_spill] sm:$0xff] %v4982_v48  ;;  %v4990_v6 = vadd.f32 %v4880_v62, %v4576_v31  ;;  %v4994_v0 = vadd.f32 %v4886_v17, %v4628_v9  ;;  %v1192_v16 = vsel %vm298_vm1, %v1189_v42, %v8032_v63  ;;  %v8814_v62 = vld [vmem:[#allocation36_spill] sm:$0xff]  ;;  %v8816_v17 = vld [vmem:[#allocation23_spill] sm:$0xff] }
 0x134   :  { %v1187_v54 = vsel %vm298_vm1, %v1184_v7, %v8807_v25  ;;  %v5000_v11 = vadd.f32 %v1122_v49, %v4580_v33  ;;  %v5003_v14 = vadd.f32 %v1125_v28, %v4631_v24  ;;  %v5006_v7 = vadd.f32 %v1127_v52, %v4583_v26  ;;  %v8818_v25 = vld [vmem:[#allocation19_spill] sm:$0xff]  ;;  %v8822_v28 = vld [vmem:[#allocation69_spill] sm:$0xff] }
 0x135   :  { %8808 = vst [vmem:[#allocation101_spill] sm:$0xff] %v4990_v6  ;;  %v5009_v27 = vadd.f32 %v1130_v35, %v4634_v19  ;;  %v5012_v1 = vadd.f32 %v1132_v2, %v8814_v62  ;;  %v5015_v40 = vadd.f32 %v1135_v56, %v8816_v17  ;;  %v5018_v42 = vadd.f32 %v1137_v55, %v8818_v25  ;;  %v8820_v49 = vld [vmem:[#allocation71_spill] sm:$0xff]  ;;  %v8828_v2 = vld [vmem:[#allocation72_spill] sm:$0xff]  ;;  %v8830_v56 = vld [vmem:[#allocation37_spill] sm:$0xff] }
 0x136   :  { %8809 = vst [vmem:[#allocation102_spill] sm:$0xff] %v4994_v0  ;;  %v5021_v63 = vadd.f32 %v1140_v32, %v8820_v49  ;;  %v5024_v60 = vadd.f32 %v1142_v29, %v8822_v28  ;;  %v8824_v52 = vld [vmem:[#allocation7_spill] sm:$0xff]  ;;  %v5033_v34 = vadd.f32 %v1150_v44, %v8828_v2  ;;  %v5036_v22 = vadd.f32 %v1152_v13, %v8830_v56  ;;  %v8832_v55 = vld [vmem:[#allocation24_spill] sm:$0xff]  ;;  %v8836_v29 = vld [vmem:[#allocation73_spill] sm:$0xff] }
 0x137   :  { %8810 = vst [vmem:[#allocation103_spill] sm:$0xff] %v5000_v11  ;;  %v5027_v8 = vadd.f32 %v1145_v20, %v8824_v52  ;;  %v8826_v35 = vld [vmem:[#allocation3_spill] sm:$0xff]  ;;  %v5039_v43 = vadd.f32 %v1155_v57, %v8832_v55  ;;  %v8834_v32 = vld [vmem:[#allocation20_spill] sm:$0xff]  ;;  %v5045_v46 = vadd.f32 %v1160_v59, %v8836_v29  ;;  %v8838_v20 = vld [vmem:[#allocation38_spill] sm:$0xff] }
 0x138   :  { %8811 = vst [vmem:[#allocation104_spill] sm:$0xff] %v5003_v14  ;;  %v5030_v23 = vadd.f32 %v1147_v58, %v8826_v35  ;;  %v5042_v12 = vadd.f32 %v1157_v21, %v8834_v32  ;;  %v5048_v41 = vadd.f32 %v1162_v50, %v8838_v20  ;;  %v8840_v58 = vld [vmem:[#allocation8_spill] sm:$0xff]  ;;  %v8844_v13 = vld [vmem:[#allocation74_spill] sm:$0xff]  ;;  %v8846_v57 = vld [vmem:[#allocation39_spill] sm:$0xff] }
 0x139   :  { %8812 = vst [vmem:[#allocation105_spill] sm:$0xff] %v5006_v7  ;;  %v5051_v45 = vadd.f32 %v1165_v4, %v8840_v58  ;;  %v8842_v44 = vld [vmem:[#allocation4_spill] sm:$0xff]  ;;  %v5057_v18 = vadd.f32 %v1170_v38, %v8844_v13  ;;  %v5060_v39 = vadd.f32 %v1172_v51, %v8846_v57  ;;  %v8848_v21 = vld [vmem:[#allocation25_spill] sm:$0xff]  ;;  %v8852_v50 = vld [vmem:[#allocation75_spill] sm:$0xff] }
 0x13a   :  { %8813 = vst [vmem:[#allocation106_spill] sm:$0xff] %v5009_v27  ;;  %v5054_v53 = vadd.f32 %v1167_v15, %v8842_v44  ;;  %v5063_v3 = vadd.f32 %v1175_v5, %v8848_v21  ;;  %v8850_v59 = vld [vmem:[#allocation21_spill] sm:$0xff]  ;;  %v8854_v4 = vld [vmem:[#allocation40_spill] sm:$0xff]  ;;  %v8862_v5 = vld [vmem:[#allocation22_spill] sm:$0xff] }
 0x13b   :  { %8815 = vst [vmem:[#allocation107_spill] sm:$0xff] %v5012_v1  ;;  %v8856_v15 = vld [vmem:[#allocation9_spill] sm:$0xff]  ;;  %v8860_v51 = vld [vmem:[#allocation76_spill] sm:$0xff] }
 0x13c   :  { %8817 = vst [vmem:[#allocation108_spill] sm:$0xff] %v5015_v40  ;;  %v8858_v38 = vld [vmem:[#allocation5_spill] sm:$0xff] }
 0x13d   :  { %8819 = vst [vmem:[#allocation109_spill] sm:$0xff] %v5018_v42 }
 0x13e   :  { %8821 = vst [vmem:[#allocation110_spill] sm:$0xff] %v5021_v63 }
 0x13f   :  { %8823 = vst [vmem:[#allocation111_spill] sm:$0xff] %v5024_v60 }
 0x140   :  { %8825 = vst [vmem:[#allocation112_spill] sm:$0xff] %v5027_v8 }
 0x141   :  { %8827 = vst [vmem:[#allocation113_spill] sm:$0xff] %v5030_v23 }
 0x142   :  { %8829 = vst [vmem:[#allocation114_spill] sm:$0xff] %v5033_v34 }
 0x143   :  { %8831 = vst [vmem:[#allocation115_spill] sm:$0xff] %v5036_v22 }
 0x144   :  { %8833 = vst [vmem:[#allocation116_spill] sm:$0xff] %v5039_v43 }
 0x145   :  { %8835 = vst [vmem:[#allocation117_spill] sm:$0xff] %v5042_v12 }
 0x146   :  { %8837 = vst [vmem:[#allocation118_spill] sm:$0xff] %v5045_v46  ;;  %v5066_v46 = vadd.f32 %v1177_v10, %v8850_v59  ;;  %v1259_v10 = vmul.f32 2.0, %v4622_v61 }
 0x147   :  { %8839 = vst [vmem:[#allocation119_spill] sm:$0xff] %v5048_v41  ;;  %v5069_v41 = vadd.f32 %v1180_v36, %v8852_v50  ;;  %v1260_v36 = vmul.f32 2.0, %v4576_v31  ;;  %v5106_v31 = vmul.f32 2.0, %v4634_v19  ;;  %v5127_v19 = vmul.f32 2.0, %v8822_v28  ;;  %v8871_v28 = vld [vmem:[#allocation44_spill] sm:$0xff] }
 0x148   :  { %8841 = vst [vmem:[#allocation120_spill] sm:$0xff] %v5051_v45  ;;  %v5072_v45 = vadd.f32 %v1182_v37, %v8854_v4  ;;  %v1262_v37 = vmul.f32 2.0, %v4628_v9  ;;  %v5109_v9 = vmul.f32 2.0, %v8814_v62  ;;  %v8869_v62 = vld [vmem:[#allocation43_spill] sm:$0xff]  ;;  %v5148_v12 = vmul.f32 2.0, %v8871_v28 }
 0x149   :  { %8843 = vst [vmem:[#allocation121_spill] sm:$0xff] %v5054_v53  ;;  %v5075_v53 = vadd.f32 %v1185_v30, %v8856_v15  ;;  %v5091_v30 = vmul.f32 2.0, %v4580_v33  ;;  %v8867_v33 = vld [vmem:[#allocation78_spill] sm:$0xff]  ;;  %v5169_v28 = vmul.f32 2.0, %v8840_v58  ;;  %v5190_v58 = vmul.f32 2.0, %v8850_v59 }
 0x14a   :  { %8845 = vst [vmem:[#allocation122_spill] sm:$0xff] %v5057_v18  ;;  %v5078_v18 = vadd.f32 %v1187_v54, %v8858_v38  ;;  %v1356_v60 = vrot.slane %v1260_v36, 2  ;;  %v5206_v59 = vmul.f32 2.0, %v8856_v15  ;;  %v8879_v36 = vld [vmem:[#allocation48_spill] sm:$0xff] }
 0x14b   :  { %8847 = vst [vmem:[#allocation123_spill] sm:$0xff] %v5060_v39  ;;  %v5081_v39 = vadd.f32 %v1190_v47, %v8860_v51  ;;  %v5097_v47 = vmul.f32 2.0, %v4631_v24  ;;  %v5118_v24 = vmul.f32 2.0, %v8818_v25  ;;  %v8870_v25 = vld [vmem:[#allocation11_spill] sm:$0xff]  ;;  %v1361_v42 = vrot.slane %v5091_v30, 2 }
 0x14c   :  { %8849 = vst [vmem:[#allocation124_spill] sm:$0xff] %v5063_v3  ;;  %v5084_v3 = vadd.f32 %v1192_v16, %v8862_v5  ;;  %v5100_v16 = vmul.f32 2.0, %v4583_v26  ;;  %v8868_v26 = vld [vmem:[#allocation27_spill] sm:$0xff] }
 0x14d   :  { %8851 = vst [vmem:[#allocation125_spill] sm:$0xff] %v5066_v46 }
 0x14e   :  { %8853 = vst [vmem:[#allocation126_spill] sm:$0xff] %v5069_v41  ;;  %v8864_v41 = vld [vmem:[#allocation26_spill] sm:$0xff] }
 0x14f   :  { %8855 = vst [vmem:[#allocation127_spill] sm:$0xff] %v5072_v45  ;;  %v1261_v46 = vmul.f32 2.0, %v8864_v41  ;;  %v5112_v41 = vmul.f32 2.0, %v8867_v33  ;;  %v5133_v33 = vmul.f32 2.0, %v8824_v52  ;;  %v5139_v45 = vmul.f32 2.0, %v8870_v25 }
 0x150   :  { %8857 = vst [vmem:[#allocation128_spill] sm:$0xff] %v5075_v53  ;;  %v8865_v53 = vld [vmem:[#allocation77_spill] sm:$0xff]  ;;  %v5154_v52 = vmul.f32 2.0, %v8834_v32  ;;  %v5160_v25 = vmul.f32 2.0, %v8836_v29  ;;  %v8874_v32 = vld [vmem:[#allocation12_spill] sm:$0xff]  ;;  %v5181_v29 = vmul.f32 2.0, %v8846_v57 }
 0x151   :  { %8859 = vst [vmem:[#allocation129_spill] sm:$0xff] %v5078_v18  ;;  %v5094_v54 = vmul.f32 2.0, %v8865_v53  ;;  %v5115_v53 = vmul.f32 2.0, %v8816_v17  ;;  %v5130_v18 = vmul.f32 2.0, %v8869_v62  ;;  %v5136_v17 = vmul.f32 2.0, %v8826_v35  ;;  %v8872_v35 = vld [vmem:[#allocation28_spill] sm:$0xff] }
 0x152   :  { %8861 = vst [vmem:[#allocation130_spill] sm:$0xff] %v5081_v39  ;;  %v5121_v39 = vmul.f32 2.0, %v8868_v26  ;;  %v5142_v26 = vmul.f32 2.0, %v8828_v2  ;;  %v5151_v62 = vmul.f32 2.0, %v8832_v55  ;;  %v5157_v43 = vmul.f32 2.0, %v8872_v35 }
 0x153   :  { %8863 = vst [vmem:[#allocation131_spill] sm:$0xff] %v5084_v3  ;;  %v8866_v3 = vld [vmem:[#allocation10_spill] sm:$0xff]  ;;  %v5163_v2 = vmul.f32 2.0, %v8838_v20  ;;  %v5172_v55 = vmul.f32 2.0, %v8842_v44  ;;  %v5175_v34 = vmul.f32 2.0, %v8874_v32  ;;  %v5178_v35 = vmul.f32 2.0, %v8844_v13 }
 0x154   :  { %v5103_v61 = vmul.f32 2.0, %v8866_v3  ;;  %v5124_v3 = vmul.f32 2.0, %v8820_v49  ;;  %v5145_v49 = vmul.f32 2.0, %v8830_v56  ;;  %v8873_v56 = vld [vmem:[#allocation45_spill] sm:$0xff]  ;;  %v8875_v20 = vld [vmem:[#allocation46_spill] sm:$0xff]  ;;  %v5196_v32 = vmul.f32 2.0, %v8852_v50 }
 0x155   :  { %v5166_v22 = vmul.f32 2.0, %v8873_v56  ;;  %v5184_v23 = vmul.f32 2.0, %v8875_v20  ;;  %v5187_v56 = vmul.f32 2.0, %v8848_v21  ;;  %v8876_v44 = vld [vmem:[#allocation29_spill] sm:$0xff]  ;;  %v1355_v13 = vrot.slane %v1259_v10, 2  ;;  %v8877_v21 = vld [vmem:[#allocation47_spill] sm:$0xff] }
 0x156   :  { %v5193_v8 = vmul.f32 2.0, %v8876_v44  ;;  %v5199_v57 = vmul.f32 2.0, %v8854_v4  ;;  %v1358_v63 = vrot.slane %v1261_v46, 2  ;;  %v1360_v20 = vrot.slane %v1262_v37, 2  ;;  %v8878_v50 = vld [vmem:[#allocation13_spill] sm:$0xff] }
 0x157   :  { %v5203_v40 = vmul.f32 2.0, %v8877_v21  ;;  %v5209_v44 = vmul.f32 2.0, %v8858_v38  ;;  %v5212_v1 = vmul.f32 2.0, %v8878_v50  ;;  %v5215_v10 = vmul.f32 2.0, %v8860_v51 }
 0x158   :  { %v5218_v46 = vmul.f32 2.0, %v8862_v5  ;;  %v5221_v37 = vmul.f32 2.0, %v8879_v36  ;;  %v1363_v30 = vrot.slane %v5094_v54, 2  ;;  %v5225_v15 = vsel %vm479_vm2, %v1355_v13, %v1356_v60 }
 0x159   :  { %v1365_v38 = vrot.slane %v5097_v47, 2  ;;  %v1366_v21 = vrot.slane %v5100_v16, 2  ;;  %v1368_v50 = vrot.slane %v5103_v61, 2  ;;  %v5231_v51 = vsel %vm479_vm2, %v1356_v60, %v1358_v63 }
 0x15a   :  { %v5234_v5 = vsel %vm479_vm2, %v1360_v20, %v1361_v42  ;;  %v1370_v36 = vrot.slane %v5106_v31, 2  ;;  %v1371_v4 = vrot.slane %v5109_v9, 2  ;;  %v1373_v54 = vrot.slane %v5112_v41, 2 }
 0x15b   :  { %v1375_v13 = vrot.slane %v5115_v53, 2  ;;  %v1376_v47 = vrot.slane %v5118_v24, 2  ;;  %v1378_v16 = vrot.slane %v5121_v39, 2  ;;  %v1380_v61 = vrot.slane %v5124_v3, 2 }
 0x15c   :  { %v1381_v63 = vrot.slane %v5127_v19, 2  ;;  %v1383_v60 = vrot.slane %v5130_v18, 2  ;;  %v1385_v20 = vrot.slane %v5133_v33, 2  ;;  %v1386_v31 = vrot.slane %v5136_v17, 2 }
 0x15d   :  { %v1388_v9 = vrot.slane %v5139_v45, 2  ;;  %v1390_v41 = vrot.slane %v5142_v26, 2  ;;  %v1391_v53 = vrot.slane %v5145_v49, 2  ;;  %v1364_v24 = vsel %vm479_vm2, %v1361_v42, %v1363_v30 }
 0x15e   :  { %v1393_v39 = vrot.slane %v5148_v12, 2  ;;  %v1395_v3 = vrot.slane %v5151_v62, 2  ;;  %v1396_v19 = vrot.slane %v5154_v52, 2  ;;  %v1367_v18 = vsel %vm479_vm2, %v1365_v38, %v1366_v21 }
 0x15f   :  { %v1369_v33 = vsel %vm479_vm2, %v1366_v21, %v1368_v50  ;;  %v1372_v17 = vsel %vm479_vm2, %v1370_v36, %v1371_v4  ;;  %v1398_v45 = vrot.slane %v5157_v43, 2  ;;  %v1374_v26 = vsel %vm479_vm2, %v1371_v4, %v1373_v54 }
 0x160   :  { %v1377_v49 = vsel %vm479_vm2, %v1375_v13, %v1376_v47  ;;  %v1379_v42 = vsel %vm479_vm2, %v1376_v47, %v1378_v16  ;;  %v1382_v12 = vsel %vm479_vm2, %v1380_v61, %v1381_v63  ;;  %v1384_v62 = vsel %vm479_vm2, %v1381_v63, %v1383_v60 }
 0x161   :  { %v1387_v52 = vsel %vm479_vm2, %v1385_v20, %v1386_v31  ;;  %v1389_v38 = vsel %vm479_vm2, %v1386_v31, %v1388_v9  ;;  %v1392_v21 = vsel %vm479_vm2, %v1390_v41, %v1391_v53  ;;  %v1394_v50 = vsel %vm479_vm2, %v1391_v53, %v1393_v39  ;;  %v8880_v41 = vld [vmem:[#allocation68_spill] sm:$0xff]  ;;  %v8881_v53 = vld [vmem:[#allocation99_spill] sm:$0xff] }
 0x162   :  { %v1397_v43 = vsel %vm479_vm2, %v1395_v3, %v1396_v19  ;;  %v1400_v4 = vrot.slane %v5160_v25, 2  ;;  %v1401_v36 = vrot.slane %v5163_v2, 2  ;;  %v1399_v30 = vsel %vm479_vm2, %v1396_v19, %v1398_v45 }
 0x163   :  { %v1403_v54 = vrot.slane %v5166_v22, 2  ;;  %v1405_v13 = vrot.slane %v5169_v28, 2  ;;  %v1406_v47 = vrot.slane %v5172_v55, 2  ;;  %v1408_v16 = vrot.slane %v5175_v34, 2 }
 0x164   :  { %v1410_v61 = vrot.slane %v5178_v35, 2  ;;  %v1411_v63 = vrot.slane %v5181_v29, 2  ;;  %v1413_v60 = vrot.slane %v5184_v23, 2  ;;  %v1415_v25 = vrot.slane %v5187_v56, 2 }
 0x165   :  { %v1416_v2 = vrot.slane %v5190_v58, 2  ;;  %v1418_v20 = vrot.slane %v5193_v8, 2  ;;  %v1420_v22 = vrot.slane %v5196_v32, 2  ;;  %v1421_v28 = vrot.slane %v5199_v57, 2 }
 0x166   :  { %v1423_v55 = vrot.slane %v5203_v40, 2  ;;  %v1425_v34 = vrot.slane %v5206_v59, 2  ;;  %v1426_v35 = vrot.slane %v5209_v44, 2  ;;  %v1402_v29 = vsel %vm479_vm2, %v1400_v4, %v1401_v36 }
 0x167   :  { %v1428_v23 = vrot.slane %v5212_v1, 2  ;;  %v1430_v56 = vrot.slane %v5215_v10, 2  ;;  %v1431_v58 = vrot.slane %v5218_v46, 2  ;;  %v1404_v8 = vsel %vm479_vm2, %v1401_v36, %v1403_v54 }
 0x168   :  { %v1407_v32 = vsel %vm479_vm2, %v1405_v13, %v1406_v47  ;;  %v1409_v57 = vsel %vm479_vm2, %v1406_v47, %v1408_v16  ;;  %v1433_v40 = vrot.slane %v5221_v37, 2  ;;  %v1412_v59 = vsel %vm479_vm2, %v1410_v61, %v1411_v63  ;;  %v8884_v61 = vld [vmem:[#allocation108_spill] sm:$0xff] }
 0x169   :  { %v1414_v44 = vsel %vm479_vm2, %v1411_v63, %v1413_v60  ;;  %v1417_v31 = vsel %vm479_vm2, %v1415_v25, %v1416_v2  ;;  %v1419_v1 = vsel %vm479_vm2, %v1416_v2, %v1418_v20  ;;  %v1422_v10 = vsel %vm479_vm2, %v1420_v22, %v1421_v28 }
 0x16a   :  { %v1424_v46 = vsel %vm479_vm2, %v1421_v28, %v1423_v55  ;;  %v1427_v9 = vsel %vm479_vm2, %v1425_v34, %v1426_v35  ;;  %v5303_v39 = vadd.f32 %v8881_v53, %v8880_v41  ;;  %v1429_v37 = vsel %vm479_vm2, %v1426_v35, %v1428_v23 }
 0x16b   :  { %v1432_v3 = vsel %vm479_vm2, %v1430_v56, %v1431_v58  ;;  %v5309_v19 = vadd.f32 %v5225_v15, %v4982_v48  ;;  %v5313_v45 = vadd.f32 %v5231_v51, %v4990_v6  ;;  %v1434_v4 = vsel %vm479_vm2, %v1431_v58, %v1433_v40  ;;  %v8883_v51 = vld [vmem:[#allocation107_spill] sm:$0xff] }
 0x16c   :  { %8882 = vst [vmem:[#allocation68_spill] sm:$0xff] %v5303_v39  ;;  %v5318_v36 = vadd.f32 %v5234_v5, %v4994_v0  ;;  %v5321_v54 = vadd.f32 %v1364_v24, %v5000_v11  ;;  %v5324_v13 = vadd.f32 %v1367_v18, %v5003_v14  ;;  %v5327_v47 = vadd.f32 %v1369_v33, %v5006_v7  ;;  %v8885_v5 = vld [vmem:[#allocation109_spill] sm:$0xff]  ;;  %v8886_v24 = vld [vmem:[#allocation110_spill] sm:$0xff]  ;;  %v8887_v18 = vld [vmem:[#allocation111_spill] sm:$0xff] }
 0x16d   :  { %v5330_v15 = vadd.f32 %v1372_v17, %v5009_v27  ;;  %v5333_v16 = vadd.f32 %v1374_v26, %v8883_v51  ;;  %v5336_v63 = vadd.f32 %v1377_v49, %v8884_v61  ;;  %v5339_v60 = vadd.f32 %v1379_v42, %v8885_v5  ;;  %v8888_v33 = vld [vmem:[#allocation112_spill] sm:$0xff]  ;;  %v8889_v17 = vld [vmem:[#allocation113_spill] sm:$0xff]  ;;  %v8891_v26 = vld [vmem:[#allocation114_spill] sm:$0xff] }
 0x16e   :  { %v5342_v25 = vadd.f32 %v1382_v12, %v8886_v24  ;;  %v5345_v2 = vadd.f32 %v1384_v62, %v8887_v18  ;;  %v5348_v20 = vadd.f32 %v1387_v52, %v8888_v33  ;;  %v5351_v22 = vadd.f32 %v1389_v38, %v8889_v17  ;;  %v8893_v49 = vld [vmem:[#allocation115_spill] sm:$0xff]  ;;  %v8895_v42 = vld [vmem:[#allocation116_spill] sm:$0xff]  ;;  %v8897_v12 = vld [vmem:[#allocation117_spill] sm:$0xff] }
 0x16f   :  { %v5354_v28 = vadd.f32 %v1392_v21, %v8891_v26  ;;  %v5357_v55 = vadd.f32 %v1394_v50, %v8893_v49  ;;  %v5360_v34 = vadd.f32 %v1397_v43, %v8895_v42  ;;  %v5363_v35 = vadd.f32 %v1399_v30, %v8897_v12  ;;  %v8899_v62 = vld [vmem:[#allocation118_spill] sm:$0xff]  ;;  %v8901_v52 = vld [vmem:[#allocation119_spill] sm:$0xff]  ;;  %v8903_v38 = vld [vmem:[#allocation120_spill] sm:$0xff] }
 0x170   :  { %8890 = vst [vmem:[#allocation99_spill] sm:$0xff] %v5351_v22  ;;  %v5366_v23 = vadd.f32 %v1402_v29, %v8899_v62  ;;  %v5369_v56 = vadd.f32 %v1404_v8, %v8901_v52  ;;  %v5372_v58 = vadd.f32 %v1407_v32, %v8903_v38  ;;  %v8905_v21 = vld [vmem:[#allocation121_spill] sm:$0xff]  ;;  %v8907_v50 = vld [vmem:[#allocation122_spill] sm:$0xff]  ;;  %v8911_v12 = vld [vmem:[#allocation123_spill] sm:$0xff] }
 0x171   :  { %8892 = vst [vmem:[#allocation132_spill] sm:$0xff] %v5354_v28  ;;  %v5375_v40 = vadd.f32 %v1409_v57, %v8905_v21  ;;  %v5378_v41 = vadd.f32 %v1412_v59, %v8907_v50  ;;  %v8909_v43 = vld [vmem:[#allocation30_spill] sm:$0xff]  ;;  %v8910_v42 = vld [vmem:[#allocation49_spill] sm:$0xff]  ;;  %v5383_v49 = vadd.f32 %v1414_v44, %v8911_v12  ;;  %v8913_v29 = vld [vmem:[#allocation124_spill] sm:$0xff] }
 0x172   :  { %8894 = vst [vmem:[#allocation133_spill] sm:$0xff] %v5357_v55  ;;  %v1503_v53 = vrot.slane %v8909_v43, 3  ;;  %v1504_v30 = vrot.slane %v8910_v42, 3  ;;  %v5386_v62 = vadd.f32 %v1417_v31, %v8913_v29  ;;  %v8915_v8 = vld [vmem:[#allocation14_spill] sm:$0xff]  ;;  %v8916_v38 = vld [vmem:[#allocation125_spill] sm:$0xff]  ;;  %v8918_v57 = vld [vmem:[#allocation79_spill] sm:$0xff] }
 0x173   :  { %8896 = vst [vmem:[#allocation134_spill] sm:$0xff] %v5360_v34  ;;  %v1506_v32 = vrot.slane %v8915_v8, 3  ;;  %v5390_v52 = vadd.f32 %v1419_v1, %v8916_v38  ;;  %v1508_v21 = vrot.slane %v8918_v57, 3  ;;  %v8919_v59 = vld [vmem:[#allocation31_spill] sm:$0xff]  ;;  %v8920_v26 = vld [vmem:[#allocation80_spill] sm:$0xff]  ;;  %v8921_v17 = vld [vmem:[#allocation126_spill] sm:$0xff] }
 0x174   :  { %8898 = vst [vmem:[#allocation135_spill] sm:$0xff] %v5363_v35  ;;  %v1509_v50 = vrot.slane %v8919_v59, 3  ;;  %v1511_v43 = vrot.slane %v8920_v26, 3  ;;  %v5396_v42 = vadd.f32 %v1422_v10, %v8921_v17  ;;  %v8923_v44 = vld [vmem:[#allocation127_spill] sm:$0xff]  ;;  %v8925_v31 = vld [vmem:[#allocation128_spill] sm:$0xff]  ;;  %v8927_v33 = vld [vmem:[#allocation129_spill] sm:$0xff]  ;;  %v5417_v10 = vsel %vm1500_vm4, %v1503_v53, %v1504_v30 }
 0x175   :  { %8900 = vst [vmem:[#allocation136_spill] sm:$0xff] %v5366_v23  ;;  %v5399_v12 = vadd.f32 %v1424_v46, %v8923_v44  ;;  %v5402_v29 = vadd.f32 %v1427_v9, %v8925_v31  ;;  %v5405_v18 = vadd.f32 %v1429_v37, %v8927_v33  ;;  %v8929_v1 = vld [vmem:[#allocation130_spill] sm:$0xff]  ;;  %v8931_v57 = vld [vmem:[#allocation131_spill] sm:$0xff]  ;;  %v8933_v59 = vmov -0.0   ;;  %v8935_v44 = vld [vmem:[#allocation81_spill] sm:$0xff] }
 0x176   :  { %8902 = vst [vmem:[#allocation137_spill] sm:$0xff] %v5369_v56  ;;  %v5408_v38 = vadd.f32 %v1432_v3, %v8929_v1  ;;  %v5411_v24 = vadd.f32 %v1434_v4, %v8931_v57  ;;  %v5414_v5 = vrot.slane %v8933_v59, 3  ;;  %v5420_v46 = vsel %vm1500_vm4, %v1504_v30, %v1506_v32  ;;  %v8934_v9 = vld [vmem:[#allocation15_spill] sm:$0xff]  ;;  %v8936_v33 = vld [vmem:[#allocation32_spill] sm:$0xff]  ;;  %v8937_v59 = vld [vmem:[#allocation82_spill] sm:$0xff] }
 0x177   :  { %8904 = vst [vmem:[#allocation138_spill] sm:$0xff] %v5372_v58  ;;  %v1513_v31 = vrot.slane %v8934_v9, 3  ;;  %v1514_v37 = vrot.slane %v8935_v44, 3  ;;  %v1516_v17 = vrot.slane %v8936_v33, 3  ;;  %v5426_v3 = vsel %vm1500_vm4, %v1508_v21, %v1509_v50  ;;  %v8938_v1 = vld [vmem:[#allocation17_spill] sm:$0xff]  ;;  %v8939_v61 = vld [vmem:[#allocation83_spill] sm:$0xff] }
 0x178   :  { %8906 = vst [vmem:[#allocation139_spill] sm:$0xff] %v5375_v40  ;;  %v5429_v4 = vsel %vm1500_vm4, %v1509_v50, %v1511_v43  ;;  %v1518_v57 = vrot.slane %v8937_v59, 3  ;;  %v1519_v53 = vrot.slane %v8938_v1, 3  ;;  %v1521_v51 = vrot.slane %v8939_v61, 3  ;;  %v8940_v30 = vld [vmem:[#allocation33_spill] sm:$0xff]  ;;  %v8941_v27 = vld [vmem:[#allocation84_spill] sm:$0xff] }
 0x179   :  { %8908 = vst [vmem:[#allocation140_spill] sm:$0xff] %v5378_v41  ;;  %v1523_v32 = vrot.slane %v8940_v30, 3  ;;  %v1524_v9 = vrot.slane %v8941_v27, 3  ;;  %v8942_v7 = vld [vmem:[#allocation18_spill] sm:$0xff]  ;;  %v8943_v14 = vld [vmem:[#allocation85_spill] sm:$0xff]  ;;  %v8945_v6 = vld [vmem:[#allocation67_spill] sm:$0xff]  ;;  %v1515_v27 = vsel %vm1500_vm4, %v1513_v31, %v1514_v37 }
 0x17a   :  { %8912 = vst [vmem:[#allocation30_spill] sm:$0xff] %v5383_v49  ;;  %v1526_v44 = vrot.slane %v8942_v7, 3  ;;  %v1528_v11 = vrot.slane %v8943_v14, 3  ;;  %v8944_v0 = vld [vmem:[#allocation66_spill] sm:$0xff]  ;;  %v1531_v48 = vrot.slane %v8945_v6, 3  ;;  %v8946_v50 = vld [vmem:[#allocation56_spill] sm:$0xff]  ;;  %v1517_v6 = vsel %vm1500_vm4, %v1514_v37, %v1516_v17 }
 0x17b   :  { %8914 = vst [vmem:[#allocation49_spill] sm:$0xff] %v5386_v62  ;;  %v1529_v21 = vrot.slane %v8944_v0, 3  ;;  %v1533_v43 = vrot.slane %v8946_v50, 3  ;;  %v8947_v33 = vld [vmem:[#allocation57_spill] sm:$0xff]  ;;  %v8948_v26 = vld [vmem:[#allocation58_spill] sm:$0xff]  ;;  %v8949_v8 = vld [vmem:[#allocation59_spill] sm:$0xff]  ;;  %v1520_v50 = vsel %vm1500_vm4, %v1518_v57, %v1519_v53 }
 0x17c   :  { %8917 = vst [vmem:[#allocation141_spill] sm:$0xff] %v5390_v52  ;;  %v1534_v59 = vrot.slane %v8947_v33, 3  ;;  %v1536_v1 = vrot.slane %v8948_v26, 3  ;;  %v1538_v61 = vrot.slane %v8949_v8, 3  ;;  %v1522_v33 = vsel %vm1500_vm4, %v1519_v53, %v1521_v51  ;;  %v8955_v37 = vld [vmem:[#allocation86_spill] sm:$0xff]  ;;  %v8960_v52 = vld [vmem:[#allocation55_spill] sm:$0xff] }
 0x17d   :  { %8922 = vst [vmem:[#allocation79_spill] sm:$0xff] %v5396_v42  ;;  %v1525_v8 = vsel %vm1500_vm4, %v1523_v32, %v1524_v9  ;;  %v1530_v31 = vsel %vm1500_vm4, %v1528_v11, %v1529_v21  ;;  %v1548_v57 = vrot.slane %v8955_v37, 3  ;;  %v8957_v42 = vld [vmem:[#allocation52_spill] sm:$0xff]  ;;  %v8965_v41 = vld [vmem:[#allocation50_spill] sm:$0xff]  ;;  %v8966_v40 = vld [vmem:[#allocation89_spill] sm:$0xff] }
 0x17e   :  { %8924 = vst [vmem:[#allocation31_spill] sm:$0xff] %v5399_v12  ;;  %v8954_v12 = vld [vmem:[#allocation63_spill] sm:$0xff]  ;;  %v8962_v62 = vld [vmem:[#allocation88_spill] sm:$0xff]  ;;  %v8967_v58 = vld [vmem:[#allocation90_spill] sm:$0xff] }
 0x17f   :  { %8926 = vst [vmem:[#allocation142_spill] sm:$0xff] %v5402_v29  ;;  %v8953_v29 = vld [vmem:[#allocation34_spill] sm:$0xff]  ;;  %v1546_v26 = vrot.slane %v8954_v12, 3  ;;  %v8956_v12 = vld [vmem:[#allocation51_spill] sm:$0xff]  ;;  %v1559_v37 = vrot.slane %v8962_v62, 3  ;;  %v8963_v49 = vld [vmem:[#allocation64_spill] sm:$0xff] }
 0x180   :  { %8928 = vst [vmem:[#allocation143_spill] sm:$0xff] %v5405_v18  ;;  %v8952_v18 = vld [vmem:[#allocation62_spill] sm:$0xff]  ;;  %v1544_v0 = vrot.slane %v8953_v29, 3  ;;  %v1537_v29 = vsel %vm1500_vm4, %v1534_v59, %v1536_v1  ;;  %v1549_v32 = vrot.slane %v8956_v12, 3  ;;  %v8961_v1 = vld [vmem:[#allocation87_spill] sm:$0xff]  ;;  %v1564_v12 = vrot.slane %v8965_v41, 3 }
 0x181   :  { %8930 = vst [vmem:[#allocation144_spill] sm:$0xff] %v5408_v38  ;;  %v8951_v38 = vld [vmem:[#allocation61_spill] sm:$0xff]  ;;  %v1543_v14 = vrot.slane %v8952_v18, 3  ;;  %v1535_v18 = vsel %vm1500_vm4, %v1533_v43, %v1534_v59  ;;  %v1556_v59 = vrot.slane %v8960_v52, 3  ;;  %v8969_v56 = vld [vmem:[#allocation92_spill] sm:$0xff]  ;;  %v8971_v35 = vld [vmem:[#allocation94_spill] sm:$0xff] }
 0x182   :  { %8932 = vst [vmem:[#allocation145_spill] sm:$0xff] %v5411_v24  ;;  %v8950_v24 = vld [vmem:[#allocation60_spill] sm:$0xff]  ;;  %v1541_v7 = vrot.slane %v8951_v38, 3  ;;  %v1532_v38 = vsel %vm1500_vm4, %v1529_v21, %v1531_v48  ;;  %v1547_v11 = vsel %vm1500_vm4, %v1544_v0, %v1546_v26  ;;  %v8959_v21 = vld [vmem:[#allocation54_spill] sm:$0xff]  ;;  %v1568_v26 = vrot.slane %v8967_v58, 3  ;;  %v8970_v23 = vld [vmem:[#allocation93_spill] sm:$0xff] }
 0x183   :  { %v1539_v30 = vrot.slane %v8950_v24, 3  ;;  %v1527_v24 = vsel %vm1500_vm4, %v1524_v9, %v1526_v44  ;;  %v1545_v53 = vsel %vm1500_vm4, %v1543_v14, %v1544_v0  ;;  %v1551_v9 = vrot.slane %v8957_v42, 3  ;;  %v8958_v44 = vld [vmem:[#allocation53_spill] sm:$0xff]  ;;  %v8968_v0 = vld [vmem:[#allocation91_spill] sm:$0xff]  ;;  %v8973_v55 = vld [vmem:[#allocation96_spill] sm:$0xff] }
 0x184   :  { %v1553_v48 = vrot.slane %v8958_v44, 3  ;;  %v1554_v43 = vrot.slane %v8959_v21, 3  ;;  %v1566_v42 = vrot.slane %v8966_v40, 3  ;;  %v1569_v44 = vrot.slane %v8968_v0, 3  ;;  %v8972_v34 = vld [vmem:[#allocation95_spill] sm:$0xff]  ;;  %v8974_v28 = vld [vmem:[#allocation97_spill] sm:$0xff] }
 0x185   :  { %v1540_v17 = vsel %vm1500_vm4, %v1538_v61, %v1539_v30  ;;  %v1542_v51 = vsel %vm1500_vm4, %v1539_v30, %v1541_v7  ;;  %v1558_v61 = vrot.slane %v8961_v1, 3  ;;  %v1561_v7 = vrot.slane %v8963_v49, 3  ;;  %v8964_v30 = vld [vmem:[#allocation65_spill] sm:$0xff]  ;;  %v8975_v22 = vld [vmem:[#allocation98_spill] sm:$0xff] }
 0x186   :  { %v1563_v14 = vrot.slane %v8964_v30, 3  ;;  %v1571_v21 = vrot.slane %v8969_v56, 3  ;;  %v1573_v52 = vrot.slane %v8970_v23, 3  ;;  %v1574_v1 = vrot.slane %v8971_v35, 3 }
 0x187   :  { %v1576_v62 = vrot.slane %v8972_v34, 3  ;;  %v1550_v49 = vsel %vm1500_vm4, %v1548_v57, %v1549_v32  ;;  %v1552_v30 = vsel %vm1500_vm4, %v1549_v32, %v1551_v9  ;;  %v1578_v41 = vrot.slane %v8973_v55, 3 }
 0x188   :  { %v1579_v40 = vrot.slane %v8974_v28, 3  ;;  %v1555_v58 = vsel %vm1500_vm4, %v1553_v48, %v1554_v43  ;;  %v1557_v0 = vsel %vm1500_vm4, %v1554_v43, %v1556_v59  ;;  %v1560_v56 = vsel %vm1500_vm4, %v1558_v61, %v1559_v37 }
 0x189   :  { %v1581_v23 = vrot.slane %v8975_v22, 3  ;;  %v1562_v35 = vsel %vm1500_vm4, %v1559_v37, %v1561_v7  ;;  %v1565_v34 = vsel %vm1500_vm4, %v1563_v14, %v1564_v12  ;;  %v1567_v57 = vsel %vm1500_vm4, %v1564_v12, %v1566_v42  ;;  %v9000_v7 = vld [vmem:[#allocation16_spill] sm:$0xff]  ;;  %v9001_v14 = vld [vmem:[#allocation26_spill] sm:$0xff]  ;;  %v9030_v22 = vld [vmem:[#allocation27_spill] sm:$0xff] }
 0x18a   :  { %v1570_v32 = vsel %vm1500_vm4, %v1568_v26, %v1569_v44  ;;  %v1572_v55 = vsel %vm1500_vm4, %v1569_v44, %v1571_v21  ;;  %v1575_v28 = vsel %vm1500_vm4, %v1573_v52, %v1574_v1  ;;  %v1577_v9 = vsel %vm1500_vm4, %v1574_v1, %v1576_v62  ;;  %v9002_v26 = vld [vmem:[#allocation42_spill] sm:$0xff]  ;;  %v9003_v21 = vld [vmem:[#allocation35_spill] sm:$0xff]  ;;  %v9004_v62 = vld [vmem:[#allocation49_spill] sm:$0xff] }
 0x18b   :  { %v5498_v48 = vadd.f32 %v5414_v5, %v5303_v39  ;;  %v1580_v43 = vsel %vm1500_vm4, %v1578_v41, %v1579_v40  ;;  %v5503_v59 = vadd.f32 %v5417_v10, %v5309_v19  ;;  %v5507_v42 = vadd.f32 %v5420_v46, %v5313_v45  ;;  %v9006_v41 = vld [vmem:[#allocation141_spill] sm:$0xff]  ;;  %v9029_v39 = vld [vmem:[#allocation19_spill] sm:$0xff] }
 0x18c   :  { %v5511_v61 = vadd.f32 %v5426_v3, %v5318_v36  ;;  %v1582_v52 = vsel %vm1500_vm4, %v1579_v40, %v1581_v23  ;;  %v5516_v5 = vadd.f32 %v5429_v4, %v5321_v54  ;;  %v5519_v37 = vadd.f32 %v1515_v27, %v5324_v13  ;;  %v9010_v23 = vld [vmem:[#allocation31_spill] sm:$0xff] }
 0x18d   :  { %v5522_v19 = vadd.f32 %v1517_v6, %v5327_v47  ;;  %v5525_v10 = vadd.f32 %v1520_v50, %v5330_v15  ;;  %v5528_v45 = vadd.f32 %v1522_v33, %v5333_v16  ;;  %v5531_v36 = vadd.f32 %v1525_v8, %v5336_v63  ;;  %v8977_v47 = vld [vmem:[#allocation99_spill] sm:$0xff]  ;;  %v8979_v16 = vld [vmem:[#allocation132_spill] sm:$0xff]  ;;  %v8981_v63 = vld [vmem:[#allocation133_spill] sm:$0xff] }
 0x18e   :  { %v5534_v40 = vadd.f32 %v1527_v24, %v5339_v60  ;;  %v5537_v54 = vadd.f32 %v1530_v31, %v5342_v25  ;;  %v5540_v13 = vadd.f32 %v1532_v38, %v5345_v2  ;;  %v5543_v6 = vadd.f32 %v1535_v18, %v5348_v20  ;;  %v8983_v60 = vld [vmem:[#allocation134_spill] sm:$0xff]  ;;  %v8985_v25 = vld [vmem:[#allocation135_spill] sm:$0xff]  ;;  %v8987_v2 = vld [vmem:[#allocation136_spill] sm:$0xff] }
 0x18f   :  { %v5546_v15 = vadd.f32 %v1537_v29, %v8977_v47  ;;  %v5549_v46 = vadd.f32 %v1540_v17, %v8979_v16  ;;  %v5552_v3 = vadd.f32 %v1542_v51, %v8981_v63  ;;  %v5555_v4 = vadd.f32 %v1545_v53, %v8983_v60  ;;  %v8989_v20 = vld [vmem:[#allocation137_spill] sm:$0xff]  ;;  %v8991_v33 = vld [vmem:[#allocation138_spill] sm:$0xff]  ;;  %v8993_v24 = vld [vmem:[#allocation139_spill] sm:$0xff] }
 0x190   :  { %8976 = vst [vmem:[#allocation15_spill] sm:$0xff] %v5543_v6  ;;  %v5558_v27 = vadd.f32 %v1547_v11, %v8985_v25  ;;  %v5561_v38 = vadd.f32 %v1550_v49, %v8987_v2  ;;  %v5564_v50 = vadd.f32 %v1552_v30, %v8989_v20  ;;  %v5567_v8 = vadd.f32 %v1555_v58, %v8991_v33  ;;  %v8995_v18 = vld [vmem:[#allocation140_spill] sm:$0xff]  ;;  %v8997_v17 = vld [vmem:[#allocation30_spill] sm:$0xff]  ;;  %v8999_v53 = vld [vmem:[#allocation41_spill] sm:$0xff] }
 0x191   :  { %8978 = vst [vmem:[#allocation81_spill] sm:$0xff] %v5546_v15  ;;  %v5570_v31 = vadd.f32 %v1557_v0, %v8993_v24  ;;  %v5573_v29 = vadd.f32 %v1560_v56, %v8995_v18  ;;  %v5576_v51 = vadd.f32 %v1562_v35, %v8997_v17  ;;  %v1684_v11 = vrot.slane %v8999_v53, 4  ;;  %v9008_v58 = vld [vmem:[#allocation79_spill] sm:$0xff]  ;;  %v9012_v47 = vld [vmem:[#allocation142_spill] sm:$0xff]  ;;  %v9016_v25 = vld [vmem:[#allocation144_spill] sm:$0xff] }
 0x192   :  { %8980 = vst [vmem:[#allocation82_spill] sm:$0xff] %v5549_v46  ;;  %v1685_v49 = vrot.slane %v9000_v7, 4  ;;  %v1687_v12 = vrot.slane %v9001_v14, 4  ;;  %v1689_v44 = vrot.slane %v9002_v26, 4  ;;  %v1690_v1 = vrot.slane %v9003_v21, 4  ;;  %v9014_v63 = vld [vmem:[#allocation143_spill] sm:$0xff] }
 0x193   :  { %8982 = vst [vmem:[#allocation17_spill] sm:$0xff] %v5552_v3  ;;  %v5584_v30 = vadd.f32 %v1565_v34, %v9004_v62  ;;  %v5587_v56 = vadd.f32 %v1567_v57, %v9006_v41  ;;  %v5590_v0 = vadd.f32 %v1570_v32, %v9008_v58  ;;  %v5593_v35 = vadd.f32 %v1572_v55, %v9010_v23  ;;  %v9018_v34 = vld [vmem:[#allocation145_spill] sm:$0xff]  ;;  %v9022_v18 = vld [vmem:[#allocation6_spill] sm:$0xff]  ;;  %v9033_v7 = vld [vmem:[#allocation43_spill] sm:$0xff] }
 0x194   :  { %8984 = vst [vmem:[#allocation33_spill] sm:$0xff] %v5555_v4  ;;  %v5596_v16 = vadd.f32 %v1575_v28, %v9012_v47  ;;  %v5599_v60 = vadd.f32 %v1577_v9, %v9014_v63  ;;  %v5602_v2 = vadd.f32 %v1580_v43, %v9016_v25  ;;  %v5605_v20 = vadd.f32 %v1582_v52, %v9018_v34  ;;  %v9021_v55 = vld [vmem:[#allocation77_spill] sm:$0xff]  ;;  %v9023_v43 = vld [vmem:[#allocation2_spill] sm:$0xff]  ;;  %v9026_v47 = vld [vmem:[#allocation36_spill] sm:$0xff] }
 0x195   :  { %8986 = vst [vmem:[#allocation84_spill] sm:$0xff] %v5558_v27  ;;  %v9020_v57 = vmov 0.0   ;;  %v5611_v32 = vsel %vm1681_vm5, %v1684_v11, %v1685_v49  ;;  %v1692_v24 = vrot.slane %v9021_v55, 4  ;;  %v1694_v28 = vrot.slane %v9022_v18, 4  ;;  %v9024_v52 = vld [vmem:[#allocation10_spill] sm:$0xff]  ;;  %v9028_v34 = vld [vmem:[#allocation23_spill] sm:$0xff] }
 0x196   :  { %8988 = vst [vmem:[#allocation85_spill] sm:$0xff] %v5561_v38  ;;  %v5608_v33 = vrot.slane %v9020_v57, 4  ;;  %v5616_v17 = vsel %vm1681_vm5, %v1685_v49, %v1687_v12  ;;  %v5619_v9 = vsel %vm1681_vm5, %v1689_v44, %v1690_v1  ;;  %v1695_v62 = vrot.slane %v9023_v43, 4  ;;  %v9025_v58 = vld [vmem:[#allocation70_spill] sm:$0xff]  ;;  %v9031_v12 = vld [vmem:[#allocation71_spill] sm:$0xff]  ;;  %v9032_v44 = vld [vmem:[#allocation69_spill] sm:$0xff] }
 0x197   :  { %8990 = vst [vmem:[#allocation66_spill] sm:$0xff] %v5564_v50  ;;  %v1697_v41 = vrot.slane %v9024_v52, 4  ;;  %v1699_v23 = vrot.slane %v9025_v58, 4  ;;  %v1700_v63 = vrot.slane %v9026_v47, 4  ;;  %v9027_v11 = vld [vmem:[#allocation78_spill] sm:$0xff]  ;;  %v1704_v57 = vrot.slane %v9028_v34, 4 }
 0x198   :  { %8992 = vst [vmem:[#allocation56_spill] sm:$0xff] %v5567_v8  ;;  %v1702_v25 = vrot.slane %v9027_v11, 4  ;;  %v1705_v18 = vrot.slane %v9029_v39, 4  ;;  %v1707_v49 = vrot.slane %v9030_v22, 4  ;;  %v1709_v21 = vrot.slane %v9031_v12, 4  ;;  %v9034_v53 = vld [vmem:[#allocation7_spill] sm:$0xff] }
 0x199   :  { %8994 = vst [vmem:[#allocation57_spill] sm:$0xff] %v5570_v31  ;;  %v1710_v26 = vrot.slane %v9032_v44, 4  ;;  %v1712_v43 = vrot.slane %v9033_v7, 4  ;;  %v1714_v52 = vrot.slane %v9034_v53, 4  ;;  %v9035_v55 = vld [vmem:[#allocation3_spill] sm:$0xff]  ;;  %v1693_v11 = vsel %vm1681_vm5, %v1690_v1, %v1692_v24  ;;  %v9054_v31 = vld [vmem:[#allocation29_spill] sm:$0xff] }
 0x19a   :  { %8996 = vst [vmem:[#allocation59_spill] sm:$0xff] %v5573_v29  ;;  %v1715_v58 = vrot.slane %v9035_v55, 4  ;;  %v9036_v14 = vld [vmem:[#allocation11_spill] sm:$0xff]  ;;  %v1696_v12 = vsel %vm1681_vm5, %v1694_v28, %v1695_v62  ;;  %v1698_v44 = vsel %vm1681_vm5, %v1695_v62, %v1697_v41  ;;  %v1701_v55 = vsel %vm1681_vm5, %v1699_v23, %v1700_v63  ;;  %v9053_v29 = vld [vmem:[#allocation21_spill] sm:$0xff]  ;;  %v9056_v50 = vld [vmem:[#allocation40_spill] sm:$0xff] }
 0x19b   :  { %8998 = vst [vmem:[#allocation60_spill] sm:$0xff] %v5576_v51  ;;  %v1717_v47 = vrot.slane %v9036_v14, 4  ;;  %v1703_v14 = vsel %vm1681_vm5, %v1700_v63, %v1702_v25  ;;  %v1706_v1 = vsel %vm1681_vm5, %v1704_v57, %v1705_v18  ;;  %v1708_v24 = vsel %vm1681_vm5, %v1705_v18, %v1707_v49  ;;  %v9044_v57 = vld [vmem:[#allocation38_spill] sm:$0xff]  ;;  %v9045_v49 = vld [vmem:[#allocation45_spill] sm:$0xff]  ;;  %v9055_v8 = vld [vmem:[#allocation75_spill] sm:$0xff] }
 0x19c   :  { %9005 = vst [vmem:[#allocation62_spill] sm:$0xff] %v5584_v30  ;;  %v1716_v28 = vsel %vm1681_vm5, %v1714_v52, %v1715_v58  ;;  %v1730_v18 = vrot.slane %v9044_v57, 4  ;;  %v9050_v30 = vld [vmem:[#allocation39_spill] sm:$0xff]  ;;  %v9052_v51 = vld [vmem:[#allocation25_spill] sm:$0xff]  ;;  %v1747_v57 = vrot.slane %v9054_v31, 4  ;;  %v9061_v46 = vld [vmem:[#allocation76_spill] sm:$0xff] }
 0x19d   :  { %9007 = vst [vmem:[#allocation34_spill] sm:$0xff] %v5587_v56  ;;  %v1718_v62 = vsel %vm1681_vm5, %v1715_v58, %v1717_v47  ;;  %v9048_v56 = vld [vmem:[#allocation12_spill] sm:$0xff]  ;;  %v9049_v47 = vld [vmem:[#allocation74_spill] sm:$0xff]  ;;  %v9057_v38 = vld [vmem:[#allocation47_spill] sm:$0xff] }
 0x19e   :  { %9009 = vst [vmem:[#allocation86_spill] sm:$0xff] %v5590_v0  ;;  %v9046_v0 = vld [vmem:[#allocation8_spill] sm:$0xff]  ;;  %v1737_v58 = vrot.slane %v9048_v56, 4  ;;  %v9058_v27 = vld [vmem:[#allocation9_spill] sm:$0xff]  ;;  %v9062_v15 = vld [vmem:[#allocation22_spill] sm:$0xff] }
 0x19f   :  { %9011 = vst [vmem:[#allocation51_spill] sm:$0xff] %v5593_v35  ;;  %v9041_v35 = vld [vmem:[#allocation20_spill] sm:$0xff]  ;;  %v1754_v56 = vrot.slane %v9058_v27, 4  ;;  %v9059_v4 = vld [vmem:[#allocation5_spill] sm:$0xff] }
 0x1a0   :  { %9013 = vst [vmem:[#allocation53_spill] sm:$0xff] %v5596_v16  ;;  %v9040_v16 = vld [vmem:[#allocation24_spill] sm:$0xff]  ;;  %v1725_v53 = vrot.slane %v9041_v35, 4  ;;  %v9060_v3 = vld [vmem:[#allocation13_spill] sm:$0xff] }
 0x1a1   :  { %9015 = vst [vmem:[#allocation54_spill] sm:$0xff] %v5599_v60  ;;  %v9039_v60 = vld [vmem:[#allocation44_spill] sm:$0xff]  ;;  %v1724_v7 = vrot.slane %v9040_v16, 4 }
 0x1a2   :  { %9017 = vst [vmem:[#allocation87_spill] sm:$0xff] %v5602_v2  ;;  %v9038_v2 = vld [vmem:[#allocation37_spill] sm:$0xff]  ;;  %v1722_v22 = vrot.slane %v9039_v60, 4  ;;  %v9042_v16 = vld [vmem:[#allocation28_spill] sm:$0xff] }
 0x1a3   :  { %9019 = vst [vmem:[#allocation88_spill] sm:$0xff] %v5605_v20  ;;  %v9037_v20 = vld [vmem:[#allocation72_spill] sm:$0xff]  ;;  %v1720_v39 = vrot.slane %v9038_v2, 4  ;;  %v1711_v2 = vsel %vm1681_vm5, %v1709_v21, %v1710_v26  ;;  %v1727_v23 = vrot.slane %v9042_v16, 4  ;;  %v9043_v60 = vld [vmem:[#allocation73_spill] sm:$0xff]  ;;  %v1726_v25 = vsel %vm1681_vm5, %v1724_v7, %v1725_v53 }
 0x1a4   :  { %v1719_v34 = vrot.slane %v9037_v20, 4  ;;  %v1713_v20 = vsel %vm1681_vm5, %v1710_v26, %v1712_v43  ;;  %v1729_v63 = vrot.slane %v9043_v60, 4  ;;  %v1732_v21 = vrot.slane %v9045_v49, 4  ;;  %v9047_v43 = vld [vmem:[#allocation4_spill] sm:$0xff] }
 0x1a5   :  { %v1723_v35 = vsel %vm1681_vm5, %v1720_v39, %v1722_v22  ;;  %v1734_v26 = vrot.slane %v9046_v0, 4  ;;  %v1735_v52 = vrot.slane %v9047_v43, 4  ;;  %v9051_v22 = vld [vmem:[#allocation46_spill] sm:$0xff]  ;;  %v1744_v60 = vrot.slane %v9052_v51, 4  ;;  %v9063_v6 = vld [vmem:[#allocation48_spill] sm:$0xff] }
 0x1a6   :  { %v1721_v41 = vsel %vm1681_vm5, %v1719_v34, %v1720_v39  ;;  %v1739_v34 = vrot.slane %v9049_v47, 4  ;;  %v1740_v39 = vrot.slane %v9050_v30, 4  ;;  %v1742_v16 = vrot.slane %v9051_v22, 4 }
 0x1a7   :  { %v1745_v7 = vrot.slane %v9053_v29, 4  ;;  %v1749_v49 = vrot.slane %v9055_v8, 4  ;;  %v1750_v0 = vrot.slane %v9056_v50, 4  ;;  %v1752_v43 = vrot.slane %v9057_v38, 4 }
 0x1a8   :  { %v1755_v47 = vrot.slane %v9059_v4, 4  ;;  %v1757_v30 = vrot.slane %v9060_v3, 4  ;;  %v1759_v22 = vrot.slane %v9061_v46, 4  ;;  %v1760_v51 = vrot.slane %v9062_v15, 4 }
 0x1a9   :  { %v1728_v29 = vsel %vm1681_vm5, %v1725_v53, %v1727_v23  ;;  %v1731_v31 = vsel %vm1681_vm5, %v1729_v63, %v1730_v18  ;;  %v1733_v8 = vsel %vm1681_vm5, %v1730_v18, %v1732_v21  ;;  %v1762_v50 = vrot.slane %v9063_v6, 4 }
 0x1aa   :  { %v1736_v38 = vsel %vm1681_vm5, %v1734_v26, %v1735_v52  ;;  %v1738_v27 = vsel %vm1681_vm5, %v1735_v52, %v1737_v58  ;;  %v1741_v4 = vsel %vm1681_vm5, %v1739_v34, %v1740_v39  ;;  %v1743_v3 = vsel %vm1681_vm5, %v1740_v39, %v1742_v16 }
 0x1ab   :  { %v1746_v46 = vsel %vm1681_vm5, %v1744_v60, %v1745_v7  ;;  %v1748_v15 = vsel %vm1681_vm5, %v1745_v7, %v1747_v57  ;;  %v1751_v53 = vsel %vm1681_vm5, %v1749_v49, %v1750_v0  ;;  %v1753_v23 = vsel %vm1681_vm5, %v1750_v0, %v1752_v43 }
 0x1ac   :  { %v1756_v63 = vsel %vm1681_vm5, %v1754_v56, %v1755_v47  ;;  %v1758_v18 = vsel %vm1681_vm5, %v1755_v47, %v1757_v30  ;;  %v1761_v21 = vsel %vm1681_vm5, %v1759_v22, %v1760_v51  ;;  %v5692_v26 = vadd.f32 %v5608_v33, %v5498_v48 }
 0x1ad   :  { %v1763_v16 = vsel %vm1681_vm5, %v1760_v51, %v1762_v50  ;;  %v5697_v60 = vadd.f32 %v5611_v32, %v5503_v59  ;;  %v5701_v57 = vadd.f32 %v5616_v17, %v5507_v42  ;;  %v5705_v56 = vadd.f32 %v5619_v9, %v5511_v61  ;;  %v9087_v17 = vld [vmem:[#allocation66_spill] sm:$0xff] }
 0x1ae   :  { %9064 = vst [vmem:[#allocation65_spill] sm:$0xff] %v5692_v26  ;;  %v5708_v30 = vadd.f32 %v1693_v11, %v5516_v5  ;;  %v5711_v48 = vadd.f32 %v1696_v12, %v5519_v37  ;;  %v5714_v50 = vadd.f32 %v1698_v44, %v5522_v19  ;;  %v5717_v59 = vadd.f32 %v1701_v55, %v5525_v10  ;;  %v9073_v19 = vld [vmem:[#allocation15_spill] sm:$0xff]  ;;  %v9075_v10 = vld [vmem:[#allocation81_spill] sm:$0xff]  ;;  %v9089_v11 = vld [vmem:[#allocation56_spill] sm:$0xff] }
 0x1af   :  { %v5720_v51 = vadd.f32 %v1703_v14, %v5528_v45  ;;  %v5723_v42 = vadd.f32 %v1706_v1, %v5531_v36  ;;  %v5726_v61 = vadd.f32 %v1708_v24, %v5534_v40  ;;  %v5729_v5 = vadd.f32 %v1711_v2, %v5537_v54  ;;  %v9077_v45 = vld [vmem:[#allocation82_spill] sm:$0xff]  ;;  %v9079_v36 = vld [vmem:[#allocation17_spill] sm:$0xff]  ;;  %v9083_v54 = vld [vmem:[#allocation84_spill] sm:$0xff] }
 0x1b0   :  { %9065 = vst [vmem:[#allocation50_spill] sm:$0xff] %v5711_v48  ;;  %v5732_v37 = vadd.f32 %v1713_v20, %v5540_v13  ;;  %v5735_v0 = vadd.f32 %v1716_v28, %v9073_v19  ;;  %v5738_v33 = vadd.f32 %v1718_v62, %v9075_v10  ;;  %v5741_v14 = vadd.f32 %v1721_v41, %v9077_v45  ;;  %v9081_v40 = vld [vmem:[#allocation33_spill] sm:$0xff]  ;;  %v9095_v28 = vld [vmem:[#allocation60_spill] sm:$0xff] }
 0x1b1   :  { %9066 = vst [vmem:[#allocation90_spill] sm:$0xff] %v5714_v50  ;;  %v5744_v32 = vadd.f32 %v1723_v35, %v9079_v36  ;;  %v5747_v55 = vadd.f32 %v1726_v25, %v9081_v40  ;;  %v5750_v2 = vadd.f32 %v1728_v29, %v9083_v54  ;;  %v9085_v13 = vld [vmem:[#allocation85_spill] sm:$0xff]  ;;  %v5756_v9 = vadd.f32 %v1733_v8, %v9087_v17  ;;  %v9093_v35 = vld [vmem:[#allocation59_spill] sm:$0xff]  ;;  %v9097_v29 = vld [vmem:[#allocation62_spill] sm:$0xff] }
 0x1b2   :  { %9067 = vst [vmem:[#allocation91_spill] sm:$0xff] %v5717_v59  ;;  %v5753_v20 = vadd.f32 %v1731_v31, %v9085_v13  ;;  %v5759_v12 = vadd.f32 %v1736_v38, %v9089_v11  ;;  %v9091_v44 = vld [vmem:[#allocation57_spill] sm:$0xff]  ;;  %v5765_v24 = vadd.f32 %v1741_v4, %v9093_v35  ;;  %v5768_v62 = vadd.f32 %v1743_v3, %v9095_v28  ;;  %v9099_v31 = vld [vmem:[#allocation34_spill] sm:$0xff]  ;;  %v9103_v38 = vld [vmem:[#allocation51_spill] sm:$0xff] }
 0x1b3   :  { %9068 = vst [vmem:[#allocation93_spill] sm:$0xff] %v5720_v51  ;;  %v5762_v1 = vadd.f32 %v1738_v27, %v9091_v44  ;;  %v5771_v41 = vadd.f32 %v1746_v46, %v9097_v29  ;;  %v5774_v25 = vadd.f32 %v1748_v15, %v9099_v31  ;;  %v9101_v8 = vld [vmem:[#allocation86_spill] sm:$0xff]  ;;  %v5780_v43 = vadd.f32 %v1753_v23, %v9103_v38  ;;  %v9105_v27 = vld [vmem:[#allocation53_spill] sm:$0xff]  ;;  %v9109_v3 = vld [vmem:[#allocation87_spill] sm:$0xff] }
 0x1b4   :  { %9069 = vst [vmem:[#allocation94_spill] sm:$0xff] %v5723_v42  ;;  %v5777_v49 = vadd.f32 %v1751_v53, %v9101_v8  ;;  %v5783_v52 = vadd.f32 %v1756_v63, %v9105_v27  ;;  %v9107_v4 = vld [vmem:[#allocation54_spill] sm:$0xff]  ;;  %v5789_v47 = vadd.f32 %v1761_v21, %v9109_v3  ;;  %v9111_v46 = vld [vmem:[#allocation88_spill] sm:$0xff]  ;;  %v5795_v15 = vmul.f32 -2.0, %v5692_v26 }
 0x1b5   :  { %9070 = vst [vmem:[#allocation96_spill] sm:$0xff] %v5726_v61  ;;  %v5786_v58 = vadd.f32 %v1758_v18, %v9107_v4  ;;  %v5792_v34 = vadd.f32 %v1763_v16, %v9111_v46  ;;  %v1831_v39 = vmul.f32 -2.0, %v5697_v60  ;;  %v1832_v22 = vmul.f32 -2.0, %v5701_v57 }
 0x1b6   :  { %9071 = vst [vmem:[#allocation97_spill] sm:$0xff] %v5729_v5  ;;  %v5800_v7 = vmul.f32 -2.0, %v5705_v56  ;;  %v5803_v53 = vmul.f32 -2.0, %v5708_v30  ;;  %v5806_v23 = vmul.f32 -2.0, %v5711_v48  ;;  %v5809_v63 = vmul.f32 -2.0, %v5714_v50 }
 0x1b7   :  { %9072 = vst [vmem:[#allocation99_spill] sm:$0xff] %v5732_v37  ;;  %v5812_v18 = vmul.f32 -2.0, %v5717_v59  ;;  %v5815_v21 = vmul.f32 -2.0, %v5720_v51  ;;  %v5818_v16 = vmul.f32 -2.0, %v5723_v42  ;;  %v5821_v19 = vmul.f32 -2.0, %v5726_v61 }
 0x1b8   :  { %9074 = vst [vmem:[#allocation132_spill] sm:$0xff] %v5735_v0  ;;  %v5824_v10 = vmul.f32 -2.0, %v5729_v5  ;;  %v5827_v45 = vmul.f32 -2.0, %v5732_v37  ;;  %v5830_v36 = vmul.f32 -2.0, %v5735_v0  ;;  %v5833_v40 = vmul.f32 -2.0, %v5738_v33 }
 0x1b9   :  { %9076 = vst [vmem:[#allocation133_spill] sm:$0xff] %v5738_v33  ;;  %v5836_v54 = vmul.f32 -2.0, %v5741_v14  ;;  %v5839_v13 = vmul.f32 -2.0, %v5744_v32  ;;  %v5842_v17 = vmul.f32 -2.0, %v5747_v55  ;;  %v5845_v11 = vmul.f32 -2.0, %v5750_v2 }
 0x1ba   :  { %9078 = vst [vmem:[#allocation134_spill] sm:$0xff] %v5741_v14  ;;  %v5848_v44 = vmul.f32 -2.0, %v5753_v20  ;;  %v5851_v35 = vmul.f32 -2.0, %v5756_v9  ;;  %v5854_v28 = vmul.f32 -2.0, %v5759_v12  ;;  %v5857_v29 = vmul.f32 -2.0, %v5762_v1 }
 0x1bb   :  { %9080 = vst [vmem:[#allocation135_spill] sm:$0xff] %v5744_v32  ;;  %v5860_v31 = vmul.f32 -2.0, %v5765_v24  ;;  %v5863_v8 = vmul.f32 -2.0, %v5768_v62  ;;  %v5866_v38 = vmul.f32 -2.0, %v5771_v41  ;;  %v5869_v27 = vmul.f32 -2.0, %v5774_v25 }
 0x1bc   :  { %9082 = vst [vmem:[#allocation136_spill] sm:$0xff] %v5747_v55  ;;  %v5872_v4 = vmul.f32 -2.0, %v5777_v49  ;;  %v5875_v3 = vmul.f32 -2.0, %v5780_v43  ;;  %v5878_v46 = vmul.f32 -2.0, %v5783_v52  ;;  %v5881_v6 = vmul.f32 -2.0, %v5786_v58 }
 0x1bd   :  { %9084 = vst [vmem:[#allocation137_spill] sm:$0xff] %v5750_v2 }
 0x1be   :  { %9086 = vst [vmem:[#allocation138_spill] sm:$0xff] %v5753_v20 }
 0x1bf   :  { %9088 = vst [vmem:[#allocation139_spill] sm:$0xff] %v5756_v9 }
 0x1c0   :  { %9090 = vst [vmem:[#allocation140_spill] sm:$0xff] %v5759_v12 }
 0x1c1   :  { %9092 = vst [vmem:[#allocation30_spill] sm:$0xff] %v5762_v1 }
 0x1c2   :  { %9094 = vst [vmem:[#allocation49_spill] sm:$0xff] %v5765_v24 }
 0x1c3   :  { %9096 = vst [vmem:[#allocation141_spill] sm:$0xff] %v5768_v62 }
 0x1c4   :  { %9098 = vst [vmem:[#allocation79_spill] sm:$0xff] %v5771_v41 }
 0x1c5   :  { %9100 = vst [vmem:[#allocation31_spill] sm:$0xff] %v5774_v25  ;;  %v5891_v25 = vadd.f32 %v1832_v22, %v5692_v26  ;;  %v5915_v22 = vadd.f32 %v5815_v21, %v5714_v50 }
 0x1c6   :  { %9102 = vst [vmem:[#allocation142_spill] sm:$0xff] %v5777_v49 }
 0x1c7   :  { %9104 = vst [vmem:[#allocation143_spill] sm:$0xff] %v5780_v43  ;;  %v5895_v43 = vadd.f32 %v5800_v7, %v5697_v60 }
 0x1c8   :  { %9106 = vst [vmem:[#allocation144_spill] sm:$0xff] %v5783_v52  ;;  %v5899_v52 = vadd.f32 %v5803_v53, %v5701_v57 }
 0x1c9   :  { %9108 = vst [vmem:[#allocation145_spill] sm:$0xff] %v5786_v58  ;;  %v5903_v58 = vadd.f32 %v5806_v23, %v5705_v56 }
 0x1ca   :  { %9110 = vst [vmem:[#allocation15_spill] sm:$0xff] %v5789_v47  ;;  %v5888_v47 = vadd.f32 %v1831_v39, %v5692_v26  ;;  %v5911_v39 = vadd.f32 %v5812_v18, %v5711_v48 }
 0x1cb   :  { %9112 = vst [vmem:[#allocation81_spill] sm:$0xff] %v5792_v34  ;;  %v5885_v34 = vadd.f32 %v5795_v15, %v5692_v26  ;;  %v5919_v26 = vadd.f32 %v5818_v16, %v5717_v59 }
 0x1cc   :  { %9113 = vst [vmem:[#allocation82_spill] sm:$0xff] %v5795_v15  ;;  %v5907_v15 = vadd.f32 %v5809_v63, %v5708_v30 }
 0x1cd   :  { %9114 = vst [vmem:[#allocation17_spill] sm:$0xff] %v5800_v7 }
 0x1ce   :  { %9115 = vst [vmem:[#allocation33_spill] sm:$0xff] %v5803_v53  ;;  %v9148_v53 = vld [vmem:[#allocation31_spill] sm:$0xff] }
 0x1cf   :  { %9116 = vst [vmem:[#allocation84_spill] sm:$0xff] %v5806_v23  ;;  %v5923_v23 = vadd.f32 %v5821_v19, %v5720_v51  ;;  %v9151_v7 = vld [vmem:[#allocation143_spill] sm:$0xff] }
 0x1d0   :  { %9117 = vst [vmem:[#allocation85_spill] sm:$0xff] %v5809_v63  ;;  %v5927_v63 = vadd.f32 %v5824_v10, %v5723_v42 }
 0x1d1   :  { %9118 = vst [vmem:[#allocation66_spill] sm:$0xff] %v5812_v18  ;;  %v5931_v18 = vadd.f32 %v5827_v45, %v5726_v61 }
 0x1d2   :  { %9119 = vst [vmem:[#allocation56_spill] sm:$0xff] %v5815_v21  ;;  %v5935_v21 = vadd.f32 %v5830_v36, %v5729_v5 }
 0x1d3   :  { %9120 = vst [vmem:[#allocation57_spill] sm:$0xff] %v5818_v16  ;;  %v5939_v16 = vadd.f32 %v5833_v40, %v5732_v37 }
 0x1d4   :  { %9121 = vst [vmem:[#allocation59_spill] sm:$0xff] %v5821_v19  ;;  %v5943_v19 = vadd.f32 %v5836_v54, %v5735_v0 }
 0x1d5   :  { %9122 = vst [vmem:[#allocation60_spill] sm:$0xff] %v5824_v10  ;;  %v5947_v10 = vadd.f32 %v5839_v13, %v5738_v33 }
 0x1d6   :  { %9123 = vst [vmem:[#allocation62_spill] sm:$0xff] %v5827_v45  ;;  %v5951_v45 = vadd.f32 %v5842_v17, %v5741_v14 }
 0x1d7   :  { %9124 = vst [vmem:[#allocation34_spill] sm:$0xff] %v5830_v36  ;;  %v5955_v36 = vadd.f32 %v5845_v11, %v5744_v32 }
 0x1d8   :  { %9125 = vst [vmem:[#allocation86_spill] sm:$0xff] %v5833_v40  ;;  %v5959_v40 = vadd.f32 %v5848_v44, %v5747_v55 }
 0x1d9   :  { %9126 = vst [vmem:[#allocation51_spill] sm:$0xff] %v5836_v54  ;;  %v5963_v54 = vadd.f32 %v5851_v35, %v5750_v2 }
 0x1da   :  { %9127 = vst [vmem:[#allocation53_spill] sm:$0xff] %v5839_v13  ;;  %v5967_v13 = vadd.f32 %v5854_v28, %v5753_v20 }
 0x1db   :  { %9128 = vst [vmem:[#allocation54_spill] sm:$0xff] %v5842_v17  ;;  %v5971_v17 = vadd.f32 %v5857_v29, %v5756_v9 }
 0x1dc   :  { %9129 = vst [vmem:[#allocation87_spill] sm:$0xff] %v5845_v11  ;;  %v5975_v11 = vadd.f32 %v5860_v31, %v5759_v12 }
 0x1dd   :  { %9130 = vst [vmem:[#allocation88_spill] sm:$0xff] %v5848_v44  ;;  %v5979_v44 = vadd.f32 %v5863_v8, %v5762_v1 }
 0x1de   :  { %9131 = vst [vmem:[#allocation146_spill] sm:$0xff] %v5851_v35  ;;  %v5983_v35 = vadd.f32 %v5866_v38, %v5765_v24 }
 0x1df   :  { %9132 = vst [vmem:[#allocation147_spill] sm:$0xff] %v5854_v28  ;;  %v5987_v28 = vadd.f32 %v5869_v27, %v5768_v62 }
 0x1e0   :  { %9133 = vst [vmem:[#allocation148_spill] sm:$0xff] %v5857_v29  ;;  %v5991_v29 = vadd.f32 %v5872_v4, %v5771_v41 }
 0x1e1   :  { %9134 = vst [vmem:[#allocation149_spill] sm:$0xff] %v5860_v31  ;;  %v5995_v31 = vadd.f32 %v5875_v3, %v9148_v53 }
 0x1e2   :  { %9135 = vst [vmem:[#allocation150_spill] sm:$0xff] %v5863_v8  ;;  %v5999_v8 = vadd.f32 %v5878_v46, %v5777_v49 }
 0x1e3   :  { %9136 = vst [vmem:[#allocation151_spill] sm:$0xff] %v5866_v38  ;;  %v6003_v38 = vadd.f32 %v5881_v6, %v9151_v7 }
 0x1e4   :  { %9137 = vst [vmem:[#allocation152_spill] sm:$0xff] %v5869_v27  ;;  %v1893_v27 = vmul.f32 2.0, %v5701_v57  ;;  %v1903_v57 = vmul.f32 2.0, %v5732_v37  ;;  %v1913_v37 = vmul.f32 2.0, %v5762_v1 }
 0x1e5   :  { %9138 = vst [vmem:[#allocation153_spill] sm:$0xff] %v5872_v4  ;;  %v1895_v4 = vmul.f32 2.0, %v5708_v30  ;;  %v1905_v30 = vmul.f32 2.0, %v5738_v33  ;;  %v1915_v33 = vmul.f32 2.0, %v5768_v62 }
 0x1e6   :  { %9139 = vst [vmem:[#allocation154_spill] sm:$0xff] %v5875_v3  ;;  %v1897_v3 = vmul.f32 2.0, %v5714_v50  ;;  %v1907_v50 = vmul.f32 2.0, %v5744_v32  ;;  %v1917_v32 = vmul.f32 2.0, %v9148_v53  ;;  %v1925_v62 = vadd.f32 %v1893_v27, %v5885_v34  ;;  %v9169_v27 = vld [vmem:[#allocation33_spill] sm:$0xff] }
 0x1e7   :  { %9140 = vst [vmem:[#allocation155_spill] sm:$0xff] %v5878_v46  ;;  %v1899_v46 = vmul.f32 2.0, %v5720_v51  ;;  %v1909_v51 = vmul.f32 2.0, %v5750_v2  ;;  %v1919_v2 = vmul.f32 2.0, %v9151_v7  ;;  %v1927_v53 = vadd.f32 %v1895_v4, %v5891_v25  ;;  %v9170_v4 = vld [vmem:[#allocation84_spill] sm:$0xff] }
 0x1e8   :  { %9141 = vst [vmem:[#allocation156_spill] sm:$0xff] %v5881_v6  ;;  %v1901_v6 = vmul.f32 2.0, %v5726_v61  ;;  %v1911_v61 = vmul.f32 2.0, %v5756_v9  ;;  %v1929_v7 = vadd.f32 %v1897_v3, %v5899_v52  ;;  %v1937_v25 = vadd.f32 %v1905_v30, %v5931_v18  ;;  %v9171_v3 = vld [vmem:[#allocation85_spill] sm:$0xff]  ;;  %v9177_v30 = vld [vmem:[#allocation62_spill] sm:$0xff] }
 0x1e9   :  { %9142 = vst [vmem:[#allocation157_spill] sm:$0xff] %v5971_v17  ;;  %v9156_v17 = vld [vmem:[#allocation81_spill] sm:$0xff]  ;;  %v1939_v52 = vadd.f32 %v1907_v50, %v5939_v16 }
 0x1ea   :  { %9143 = vst [vmem:[#allocation158_spill] sm:$0xff] %v5975_v11  ;;  %v9155_v11 = vld [vmem:[#allocation15_spill] sm:$0xff]  ;;  %v1923_v1 = vmul.f32 2.0, %v9156_v17  ;;  %v1933_v17 = vadd.f32 %v1901_v6, %v5915_v22  ;;  %v1943_v6 = vadd.f32 %v1911_v61, %v5955_v36  ;;  %v9174_v22 = vld [vmem:[#allocation57_spill] sm:$0xff] }
 0x1eb   :  { %9144 = vst [vmem:[#allocation159_spill] sm:$0xff] %v5979_v44  ;;  %v9154_v44 = vld [vmem:[#allocation145_spill] sm:$0xff] }
 0x1ec   :  { %9145 = vst [vmem:[#allocation160_spill] sm:$0xff] %v5983_v35  ;;  %v1892_v35 = vmul.f32 2.0, %v5697_v60  ;;  %v1902_v60 = vmul.f32 2.0, %v5729_v5  ;;  %v1912_v5 = vmul.f32 2.0, %v5759_v12  ;;  %v1921_v9 = vmul.f32 2.0, %v9154_v44 }
 0x1ed   :  { %9146 = vst [vmem:[#allocation161_spill] sm:$0xff] %v5987_v28  ;;  %v1894_v28 = vmul.f32 2.0, %v5705_v56  ;;  %v1904_v56 = vmul.f32 2.0, %v5735_v0  ;;  %v1914_v0 = vmul.f32 2.0, %v5765_v24  ;;  %v1922_v12 = vmul.f32 2.0, %v9155_v11 }
 0x1ee   :  { %9147 = vst [vmem:[#allocation162_spill] sm:$0xff] %v5991_v29  ;;  %v1896_v29 = vmul.f32 2.0, %v5711_v48  ;;  %v1906_v48 = vmul.f32 2.0, %v5741_v14  ;;  %v1916_v14 = vmul.f32 2.0, %v5771_v41  ;;  %v1924_v24 = vadd.f32 %v1892_v35, %v5885_v34 }
 0x1ef   :  { %9149 = vst [vmem:[#allocation163_spill] sm:$0xff] %v5995_v31  ;;  %v1898_v31 = vmul.f32 2.0, %v5717_v59  ;;  %v1908_v59 = vmul.f32 2.0, %v5747_v55  ;;  %v1918_v55 = vmul.f32 2.0, %v5777_v49  ;;  %v1926_v41 = vadd.f32 %v1894_v28, %v5888_v47 }
 0x1f0   :  { %9150 = vst [vmem:[#allocation164_spill] sm:$0xff] %v5999_v8  ;;  %v1900_v8 = vmul.f32 2.0, %v5723_v42  ;;  %v1910_v42 = vmul.f32 2.0, %v5753_v20  ;;  %v1928_v49 = vadd.f32 %v1896_v29, %v5895_v43  ;;  %v1931_v44 = vadd.f32 %v1899_v46, %v5907_v15  ;;  %v9157_v29 = vld [vmem:[#allocation157_spill] sm:$0xff]  ;;  %v9172_v46 = vld [vmem:[#allocation66_spill] sm:$0xff] }
 0x1f1   :  { %9152 = vst [vmem:[#allocation165_spill] sm:$0xff] %v6003_v38  ;;  %v9153_v38 = vld [vmem:[#allocation144_spill] sm:$0xff]  ;;  %v1934_v35 = vadd.f32 %v1902_v60, %v5919_v26  ;;  %v1935_v34 = vadd.f32 %v1903_v57, %v5923_v23  ;;  %v1936_v47 = vadd.f32 %v1904_v56, %v5927_v63  ;;  %v1938_v43 = vadd.f32 %v1906_v48, %v5935_v21  ;;  %v9175_v60 = vld [vmem:[#allocation59_spill] sm:$0xff] }
 0x1f2   :  { %v1920_v20 = vmul.f32 2.0, %v9153_v38  ;;  %v1930_v38 = vadd.f32 %v1898_v31, %v5903_v58  ;;  %v1932_v11 = vadd.f32 %v1900_v8, %v5911_v39  ;;  %v1940_v58 = vadd.f32 %v1908_v59, %v5943_v19  ;;  %v9158_v31 = vld [vmem:[#allocation158_spill] sm:$0xff]  ;;  %v9159_v21 = vld [vmem:[#allocation159_spill] sm:$0xff]  ;;  %v9168_v8 = vld [vmem:[#allocation17_spill] sm:$0xff] }
 0x1f3   :  { %v1941_v15 = vadd.f32 %v1909_v51, %v5947_v10  ;;  %v1942_v28 = vadd.f32 %v1910_v42, %v5951_v45  ;;  %v1944_v26 = vadd.f32 %v1912_v5, %v5959_v40  ;;  %v1945_v23 = vadd.f32 %v1913_v37, %v5963_v54  ;;  %v9160_v16 = vld [vmem:[#allocation160_spill] sm:$0xff]  ;;  %v9166_v54 = vld [vmem:[#allocation15_spill] sm:$0xff] }
 0x1f4   :  { %v1946_v63 = vadd.f32 %v1914_v0, %v5967_v13  ;;  %v1947_v18 = vadd.f32 %v1915_v33, %v9157_v29  ;;  %v1948_v48 = vadd.f32 %v1916_v14, %v9158_v31  ;;  %v1949_v50 = vadd.f32 %v1917_v32, %v9159_v21  ;;  %v9161_v19 = vld [vmem:[#allocation161_spill] sm:$0xff]  ;;  %v9173_v39 = vld [vmem:[#allocation56_spill] sm:$0xff]  ;;  %v9178_v31 = vld [vmem:[#allocation34_spill] sm:$0xff] }
 0x1f5   :  { %v1950_v59 = vadd.f32 %v1918_v55, %v9160_v16  ;;  %v1951_v51 = vadd.f32 %v1919_v2, %v9161_v19  ;;  %v9162_v10 = vld [vmem:[#allocation162_spill] sm:$0xff]  ;;  %v1956_v0 = vmul.f32 -2.0, %v9166_v54  ;;  %v9167_v13 = vld [vmem:[#allocation81_spill] sm:$0xff]  ;;  %v1958_v14 = vadd.f32 %v1924_v24, %v9168_v8  ;;  %v9176_v57 = vld [vmem:[#allocation60_spill] sm:$0xff] }
 0x1f6   :  { %v1952_v42 = vadd.f32 %v1920_v20, %v9162_v10  ;;  %v9163_v45 = vld [vmem:[#allocation163_spill] sm:$0xff]  ;;  %v1957_v33 = vmul.f32 -2.0, %v9167_v13  ;;  %v1959_v32 = vadd.f32 %v1925_v62, %v9169_v27  ;;  %v1960_v55 = vadd.f32 %v1926_v41, %v9170_v4  ;;  %v9179_v21 = vld [vmem:[#allocation86_spill] sm:$0xff]  ;;  %v9181_v19 = vld [vmem:[#allocation53_spill] sm:$0xff] }
 0x1f7   :  { %v1953_v61 = vadd.f32 %v1921_v9, %v9163_v45  ;;  %v9164_v36 = vld [vmem:[#allocation164_spill] sm:$0xff]  ;;  %v1961_v2 = vadd.f32 %v1927_v53, %v9171_v3  ;;  %v1962_v20 = vadd.f32 %v1928_v49, %v9172_v46  ;;  %v1963_v9 = vadd.f32 %v1929_v7, %v9173_v39  ;;  %v9180_v16 = vld [vmem:[#allocation51_spill] sm:$0xff]  ;;  %v9182_v10 = vld [vmem:[#allocation54_spill] sm:$0xff] }
 0x1f8   :  { %v1954_v5 = vadd.f32 %v1922_v12, %v9164_v36  ;;  %v9165_v40 = vld [vmem:[#allocation165_spill] sm:$0xff]  ;;  %v1964_v12 = vadd.f32 %v1930_v38, %v9174_v22  ;;  %v1966_v56 = vadd.f32 %v1932_v11, %v9176_v57  ;;  %v1967_v29 = vadd.f32 %v1933_v17, %v9177_v30  ;;  %v9183_v45 = vld [vmem:[#allocation87_spill] sm:$0xff]  ;;  %v9184_v36 = vld [vmem:[#allocation88_spill] sm:$0xff] }
 0x1f9   :  { %v1955_v37 = vadd.f32 %v1923_v1, %v9165_v40  ;;  %v1965_v1 = vadd.f32 %v1931_v44, %v9175_v60  ;;  %v1968_v24 = vadd.f32 %v1934_v35, %v9178_v31  ;;  %v1969_v62 = vadd.f32 %v1935_v34, %v9179_v21  ;;  %v9185_v40 = vld [vmem:[#allocation146_spill] sm:$0xff]  ;;  %v9186_v8 = vld [vmem:[#allocation147_spill] sm:$0xff]  ;;  %v9187_v27 = vld [vmem:[#allocation148_spill] sm:$0xff] }
 0x1fa   :  { %v1970_v41 = vadd.f32 %v1936_v47, %v9180_v16  ;;  %v1971_v53 = vadd.f32 %v1937_v25, %v9181_v19  ;;  %v1972_v49 = vadd.f32 %v1938_v43, %v9182_v10  ;;  %v1973_v7 = vadd.f32 %v1939_v52, %v9183_v45  ;;  %v9188_v4 = vld [vmem:[#allocation149_spill] sm:$0xff]  ;;  %v9189_v3 = vld [vmem:[#allocation150_spill] sm:$0xff]  ;;  %v9190_v46 = vld [vmem:[#allocation151_spill] sm:$0xff] }
 0x1fb   :  { %v1974_v38 = vadd.f32 %v1940_v58, %v9184_v36  ;;  %v1975_v44 = vadd.f32 %v1941_v15, %v9185_v40  ;;  %v1976_v11 = vadd.f32 %v1942_v28, %v9186_v8  ;;  %v1977_v17 = vadd.f32 %v1943_v6, %v9187_v27  ;;  %v9191_v39 = vld [vmem:[#allocation152_spill] sm:$0xff]  ;;  %v9192_v22 = vld [vmem:[#allocation153_spill] sm:$0xff]  ;;  %v9193_v60 = vld [vmem:[#allocation154_spill] sm:$0xff] }
 0x1fc   :  { %v1978_v35 = vadd.f32 %v1944_v26, %v9188_v4  ;;  %v1979_v34 = vadd.f32 %v1945_v23, %v9189_v3  ;;  %v1980_v47 = vadd.f32 %v1946_v63, %v9190_v46  ;;  %v1981_v25 = vadd.f32 %v1947_v18, %v9191_v39  ;;  %v9194_v57 = vld [vmem:[#allocation155_spill] sm:$0xff]  ;;  %v9195_v30 = vld [vmem:[#allocation156_spill] sm:$0xff]  ;;  %v9196_v21 = vld [vmem:[#allocation82_spill] sm:$0xff] }
 0x1fd   :  { %v1982_v43 = vadd.f32 %v1948_v48, %v9192_v22  ;;  %v1983_v52 = vadd.f32 %v1949_v50, %v9193_v60  ;;  %v1984_v58 = vadd.f32 %v1950_v59, %v9194_v57  ;;  %v1985_v15 = vadd.f32 %v1951_v51, %v9195_v30  ;;  %v9197_v16 = vld [vmem:[#allocation50_spill] sm:$0xff]  ;;  %v9201_v18 = vld [vmem:[#allocation91_spill] sm:$0xff]  ;;  %v9203_v50 = vld [vmem:[#allocation93_spill] sm:$0xff] }
 0x1fe   :  { %v1986_v31 = vadd.f32 %v1956_v0, %v1952_v42  ;;  %v1987_v28 = vadd.f32 %v1957_v33, %v1953_v61  ;;  %v1988_v6 = vadd.f32 %v1954_v5, %v9196_v21  ;;  %v1989_v26 = vadd.f32 %v1955_v37, %v9196_v21  ;;  %v9199_v63 = vld [vmem:[#allocation90_spill] sm:$0xff]  ;;  %v9207_v42 = vld [vmem:[#allocation96_spill] sm:$0xff]  ;;  %v9209_v5 = vld [vmem:[#allocation97_spill] sm:$0xff] }
 0x1ff   :  { %v6102_v23 = vadd.f32 %v1958_v14, %v9197_v16  ;;  %v6105_v19 = vadd.f32 %v1959_v32, %v9199_v63  ;;  %v6108_v48 = vadd.f32 %v1960_v55, %v9201_v18  ;;  %v6111_v10 = vadd.f32 %v1961_v2, %v9203_v50  ;;  %v9205_v59 = vld [vmem:[#allocation94_spill] sm:$0xff]  ;;  %v9211_v0 = vld [vmem:[#allocation99_spill] sm:$0xff]  ;;  %v9213_v14 = vld [vmem:[#allocation132_spill] sm:$0xff] }
 0x200   :  { %v6114_v51 = vadd.f32 %v1962_v20, %v9205_v59  ;;  %v6117_v61 = vadd.f32 %v1963_v9, %v9207_v42  ;;  %v6120_v37 = vadd.f32 %v1964_v12, %v9209_v5  ;;  %v6123_v33 = vadd.f32 %v1965_v1, %v9211_v0  ;;  %v9215_v55 = vld [vmem:[#allocation133_spill] sm:$0xff]  ;;  %v9217_v2 = vld [vmem:[#allocation134_spill] sm:$0xff]  ;;  %v9219_v20 = vld [vmem:[#allocation135_spill] sm:$0xff] }
 0x201   :  { %9198 = vst [vmem:[#allocation157_spill] sm:$0xff] %v6102_v23  ;;  %v6126_v32 = vadd.f32 %v1966_v56, %v9213_v14  ;;  %v6129_v45 = vadd.f32 %v1967_v29, %v9215_v55  ;;  %v6132_v36 = vadd.f32 %v1968_v24, %v9217_v2  ;;  %v6135_v40 = vadd.f32 %v1969_v62, %v9219_v20  ;;  %v9221_v9 = vld [vmem:[#allocation136_spill] sm:$0xff]  ;;  %v9223_v12 = vld [vmem:[#allocation137_spill] sm:$0xff]  ;;  %v9225_v1 = vld [vmem:[#allocation138_spill] sm:$0xff] }
 0x202   :  { %9200 = vst [vmem:[#allocation158_spill] sm:$0xff] %v6105_v19  ;;  %v6138_v8 = vadd.f32 %v1970_v41, %v9221_v9  ;;  %v6141_v27 = vadd.f32 %v1971_v53, %v9223_v12  ;;  %v6144_v4 = vadd.f32 %v1972_v49, %v9225_v1  ;;  %v9227_v56 = vld [vmem:[#allocation139_spill] sm:$0xff]  ;;  %v9229_v29 = vld [vmem:[#allocation140_spill] sm:$0xff]  ;;  %v9231_v24 = vld [vmem:[#allocation30_spill] sm:$0xff] }
 0x203   :  { %9202 = vst [vmem:[#allocation159_spill] sm:$0xff] %v6108_v48  ;;  %v6147_v3 = vadd.f32 %v1973_v7, %v9227_v56  ;;  %v6150_v46 = vadd.f32 %v1974_v38, %v9229_v29  ;;  %v6153_v39 = vadd.f32 %v1975_v44, %v9231_v24  ;;  %v9233_v62 = vld [vmem:[#allocation49_spill] sm:$0xff]  ;;  %v9237_v53 = vld [vmem:[#allocation79_spill] sm:$0xff]  ;;  %v9241_v7 = vld [vmem:[#allocation142_spill] sm:$0xff] }
 0x204   :  { %9204 = vst [vmem:[#allocation160_spill] sm:$0xff] %v6111_v10  ;;  %v6156_v22 = vadd.f32 %v1976_v11, %v9233_v62  ;;  %v9235_v41 = vld [vmem:[#allocation141_spill] sm:$0xff]  ;;  %v6162_v57 = vadd.f32 %v1978_v35, %v9237_v53  ;;  %v9239_v49 = vld [vmem:[#allocation31_spill] sm:$0xff]  ;;  %v6168_v21 = vadd.f32 %v1980_v47, %v9241_v7  ;;  %v9245_v44 = vld [vmem:[#allocation144_spill] sm:$0xff]  ;;  %v6183_v35 = vadd.f32 %v1985_v15, %v9167_v13 }
 0x205   :  { %9206 = vst [vmem:[#allocation161_spill] sm:$0xff] %v6114_v51  ;;  %v6159_v60 = vadd.f32 %v1977_v17, %v9235_v41  ;;  %v6165_v30 = vadd.f32 %v1979_v34, %v9239_v49  ;;  %v9243_v38 = vld [vmem:[#allocation143_spill] sm:$0xff]  ;;  %v6174_v63 = vadd.f32 %v1982_v43, %v9245_v44  ;;  %v9247_v11 = vld [vmem:[#allocation145_spill] sm:$0xff]  ;;  %v6180_v17 = vadd.f32 %v1984_v58, %v9166_v54  ;;  %v9256_v29 = vld [vmem:[#allocation26_spill] sm:$0xff] }
 0x206   :  { %9208 = vst [vmem:[#allocation162_spill] sm:$0xff] %v6117_v61  ;;  %v6171_v16 = vadd.f32 %v1981_v25, %v9243_v38  ;;  %v6177_v18 = vadd.f32 %v1983_v52, %v9247_v11  ;;  %v9251_v34 = vld [vmem:[#allocation65_spill] sm:$0xff]  ;;  %v9257_v24 = vld [vmem:[#allocation14_spill] sm:$0xff]  ;;  %v9260_v1 = vld [vmem:[#allocation80_spill] sm:$0xff] }
 0x207   :  { %9210 = vst [vmem:[#allocation163_spill] sm:$0xff] %v6120_v37  ;;  %v6186_v50 = vadd.f32 %v1986_v31, %v9251_v34  ;;  %v6189_v47 = vadd.f32 %v1987_v28, %v9251_v34  ;;  %v6192_v25 = vadd.f32 %v1988_v6, %v9251_v34  ;;  %v6195_v43 = vadd.f32 %v1989_v26, %v9251_v34  ;;  %v9259_v41 = vld [vmem:[#allocation77_spill] sm:$0xff]  ;;  %v9262_v49 = vld [vmem:[#allocation10_spill] sm:$0xff]  ;;  %v9263_v7 = vld [vmem:[#allocation32_spill] sm:$0xff] }
 0x208   :  { %9212 = vst [vmem:[#allocation164_spill] sm:$0xff] %v6123_v33  ;;  %v9258_v56 = vrot.slane %v9257_v24, 1  ;;  %v9261_v53 = vrot.slane %v9260_v1, 1  ;;  %v9264_v9 = vrot.slane %v9263_v7, 1  ;;  %v9265_v44 = vld [vmem:[#allocation78_spill] sm:$0xff]  ;;  %v9266_v20 = vld [vmem:[#allocation83_spill] sm:$0xff] }
 0x209   :  { %9214 = vst [vmem:[#allocation165_spill] sm:$0xff] %v6126_v32  ;;  %v9267_v11 = vrot.slane %v9266_v20, 1  ;;  %v9268_v34 = vld [vmem:[#allocation27_spill] sm:$0xff]  ;;  %v9269_v55 = vld [vmem:[#allocation18_spill] sm:$0xff]  ;;  %v9271_v14 = vld [vmem:[#allocation41_spill] sm:$0xff] }
 0x20a   :  { %9216 = vst [vmem:[#allocation15_spill] sm:$0xff] %v6129_v45  ;;  %v6232_v62 = vadd.f32 %v9258_v56, %v9256_v29  ;;  %v6237_v12 = vadd.f32 %v9261_v53, %v9259_v41  ;;  %v6242_v38 = vadd.f32 %v9264_v9, %v9262_v49  ;;  %v9270_v24 = vrot.slane %v9269_v55, 1  ;;  %v9272_v1 = vld [vmem:[#allocation16_spill] sm:$0xff]  ;;  %v9273_v5 = vld [vmem:[#allocation43_spill] sm:$0xff]  ;;  %v9277_v59 = vld [vmem:[#allocation58_spill] sm:$0xff] }
 0x20b   :  { %9218 = vst [vmem:[#allocation81_spill] sm:$0xff] %v6132_v36  ;;  %v6247_v2 = vadd.f32 %v9267_v11, %v9265_v44  ;;  %v2088_v0 = vrot.slane %v9271_v14, 2  ;;  %v2089_v53 = vrot.slane %v9272_v1, 2  ;;  %v9274_v42 = vld [vmem:[#allocation67_spill] sm:$0xff]  ;;  %v9278_v6 = vrot.slane %v9277_v59, 1  ;;  %v9279_v11 = vld [vmem:[#allocation44_spill] sm:$0xff] }
 0x20c   :  { %9220 = vst [vmem:[#allocation17_spill] sm:$0xff] %v6135_v40  ;;  %v6252_v56 = vadd.f32 %v9270_v24, %v9268_v34  ;;  %v9275_v26 = vrot.slane %v9274_v42, 1  ;;  %v9276_v9 = vld [vmem:[#allocation11_spill] sm:$0xff]  ;;  %v9280_v28 = vld [vmem:[#allocation61_spill] sm:$0xff]  ;;  %v9282_v14 = vld [vmem:[#allocation28_spill] sm:$0xff]  ;;  %v9332_v45 = vrot.slane %v9262_v49, 2 }
 0x20d   :  { %9222 = vst [vmem:[#allocation33_spill] sm:$0xff] %v6138_v8  ;;  %v6264_v20 = vadd.f32 %v9278_v6, %v9276_v9  ;;  %v9281_v31 = vrot.slane %v9280_v28, 1  ;;  %v9283_v15 = vld [vmem:[#allocation63_spill] sm:$0xff]  ;;  %v9286_v42 = vld [vmem:[#allocation42_spill] sm:$0xff]  ;;  %v9288_v6 = vld [vmem:[#allocation45_spill] sm:$0xff]  ;;  %v9335_v10 = vrot.slane %v9273_v5, 2 }
 0x20e   :  { %9224 = vst [vmem:[#allocation84_spill] sm:$0xff] %v6141_v27  ;;  %v6259_v7 = vadd.f32 %v9275_v26, %v9273_v5  ;;  %v9284_v1 = vrot.slane %v9283_v15, 1  ;;  %v2093_v26 = vrot.slane %v9286_v42, 2  ;;  %v9287_v58 = vld [vmem:[#allocation35_spill] sm:$0xff]  ;;  %v9289_v52 = vld [vmem:[#allocation52_spill] sm:$0xff]  ;;  %v9300_v42 = vld [vmem:[#allocation29_spill] sm:$0xff] }
 0x20f   :  { %9226 = vst [vmem:[#allocation85_spill] sm:$0xff] %v6144_v4  ;;  %v6269_v55 = vadd.f32 %v9281_v31, %v9279_v11  ;;  %v2094_v54 = vrot.slane %v9287_v58, 2  ;;  %v9292_v31 = vld [vmem:[#allocation12_spill] sm:$0xff]  ;;  %v9293_v28 = vld [vmem:[#allocation55_spill] sm:$0xff]  ;;  %v9325_v40 = vld [vmem:[#allocation69_spill] sm:$0xff]  ;;  %v9338_v48 = vrot.slane %v9279_v11, 2 }
 0x210   :  { %9228 = vst [vmem:[#allocation66_spill] sm:$0xff] %v6147_v3  ;;  %v6275_v13 = vadd.f32 %v9284_v1, %v9282_v14  ;;  %v9297_v15 = vld [vmem:[#allocation64_spill] sm:$0xff]  ;;  %v9304_v59 = vld [vmem:[#allocation47_spill] sm:$0xff]  ;;  %v2114_v36 = vrot.slane %v9325_v40, 2  ;;  %v9329_v37 = vld [vmem:[#allocation37_spill] sm:$0xff] }
 0x211   :  { %9230 = vst [vmem:[#allocation56_spill] sm:$0xff] %v6150_v46  ;;  %v9298_v1 = vrot.slane %v9297_v15, 1  ;;  %v9321_v3 = vld [vmem:[#allocation36_spill] sm:$0xff]  ;;  %v9323_v27 = vld [vmem:[#allocation19_spill] sm:$0xff]  ;;  %v9353_v11 = vld [vmem:[#allocation22_spill] sm:$0xff] }
 0x212   :  { %9232 = vst [vmem:[#allocation57_spill] sm:$0xff] %v6153_v39  ;;  %v2104_v4 = vrot.slane %v9321_v3, 2  ;;  %v9324_v8 = vld [vmem:[#allocation71_spill] sm:$0xff]  ;;  %v9328_v33 = vld [vmem:[#allocation72_spill] sm:$0xff]  ;;  %v9333_v3 = vrot.slane %v9265_v44, 2 }
 0x213   :  { %9234 = vst [vmem:[#allocation59_spill] sm:$0xff] %v6156_v22  ;;  %v9318_v22 = vld [vmem:[#allocation2_spill] sm:$0xff]  ;;  %v9327_v32 = vld [vmem:[#allocation3_spill] sm:$0xff]  ;;  %v9330_v61 = vld [vmem:[#allocation24_spill] sm:$0xff] }
 0x214   :  { %9236 = vst [vmem:[#allocation60_spill] sm:$0xff] %v6159_v60  ;;  %v6316_v60 = vsel %vm479_vm2, %v2088_v0, %v2089_v53  ;;  %v2099_v39 = vrot.slane %v9318_v22, 2  ;;  %v9320_v0 = vld [vmem:[#allocation70_spill] sm:$0xff]  ;;  %v2109_v22 = vrot.slane %v9323_v27, 2  ;;  %v9331_v51 = vld [vmem:[#allocation20_spill] sm:$0xff] }
 0x215   :  { %9238 = vst [vmem:[#allocation62_spill] sm:$0xff] %v6162_v57  ;;  %v9313_v57 = vld [vmem:[#allocation98_spill] sm:$0xff]  ;;  %v2103_v46 = vrot.slane %v9320_v0, 2  ;;  %v2119_v0 = vrot.slane %v9327_v32, 2  ;;  %v2129_v40 = vrot.slane %v9331_v51, 2  ;;  %v9341_v23 = vld [vmem:[#allocation8_spill] sm:$0xff] }
 0x216   :  { %9240 = vst [vmem:[#allocation34_spill] sm:$0xff] %v6165_v30  ;;  %v9312_v30 = vld [vmem:[#allocation48_spill] sm:$0xff]  ;;  %v9314_v15 = vrot.slane %v9313_v57, 1  ;;  %v9319_v57 = vrot.slane %v9259_v41, 2 }
 0x217   :  { %9242 = vst [vmem:[#allocation86_spill] sm:$0xff] %v6168_v21  ;;  %v9309_v21 = vld [vmem:[#allocation95_spill] sm:$0xff]  ;;  %v2105_v32 = vsel %vm479_vm2, %v2103_v46, %v2104_v4 }
 0x218   :  { %9244 = vst [vmem:[#allocation51_spill] sm:$0xff] %v6171_v16  ;;  %v9308_v16 = vld [vmem:[#allocation13_spill] sm:$0xff] }
 0x219   :  { %9246 = vst [vmem:[#allocation53_spill] sm:$0xff] %v6174_v63  ;;  %v9305_v63 = vld [vmem:[#allocation92_spill] sm:$0xff] }
 0x21a   :  { %9248 = vst [vmem:[#allocation54_spill] sm:$0xff] %v6177_v18 }
 0x21b   :  { %9249 = vst [vmem:[#allocation87_spill] sm:$0xff] %v6180_v17  ;;  %v9301_v17 = vld [vmem:[#allocation89_spill] sm:$0xff] }
 0x21c   :  { %9250 = vst [vmem:[#allocation88_spill] sm:$0xff] %v6183_v35  ;;  %v9302_v58 = vrot.slane %v9301_v17, 1  ;;  %v9316_v17 = vrot.slane %v9256_v29, 2 }
 0x21d   :  { %9252 = vst [vmem:[#allocation146_spill] sm:$0xff] %v6186_v50  ;;  %v9296_v50 = vld [vmem:[#allocation46_spill] sm:$0xff] }
 0x21e   :  { %9253 = vst [vmem:[#allocation147_spill] sm:$0xff] %v6189_v47  ;;  %v9294_v47 = vrot.slane %v9293_v28, 1  ;;  %v6293_v35 = vadd.f32 %v9298_v1, %v9296_v50  ;;  %v6298_v18 = vadd.f32 %v9302_v58, %v9300_v42  ;;  %v9310_v28 = vrot.slane %v9309_v21, 1 }
 0x21f   :  { %9254 = vst [vmem:[#allocation148_spill] sm:$0xff] %v6192_v25  ;;  %v6313_v1 = vadd.f32 %v9314_v15, %v9312_v30  ;;  %v6321_v58 = vsel %vm479_vm2, %v2089_v53, %v9316_v17  ;;  %v6332_v15 = vsel %vm479_vm2, %v2094_v54, %v9319_v57  ;;  %v9322_v17 = vld [vmem:[#allocation23_spill] sm:$0xff]  ;;  %v2123_v53 = vrot.slane %v9328_v33, 2 }
 0x220   :  { %9255 = vst [vmem:[#allocation149_spill] sm:$0xff] %v6195_v43  ;;  %v9290_v43 = vrot.slane %v9289_v52, 1  ;;  %v6288_v24 = vadd.f32 %v9294_v47, %v9292_v31  ;;  %v9306_v52 = vrot.slane %v9305_v63, 1  ;;  %v6308_v47 = vadd.f32 %v9310_v28, %v9308_v16  ;;  %v9317_v63 = vld [vmem:[#allocation6_spill] sm:$0xff] }
 0x221   :  { %9285 = vst [vmem:[#allocation150_spill] sm:$0xff] %v6275_v13  ;;  %v6327_v28 = vsel %vm479_vm2, %v2093_v26, %v2094_v54  ;;  %v2113_v26 = vrot.slane %v9324_v8, 2  ;;  %v9326_v54 = vld [vmem:[#allocation7_spill] sm:$0xff]  ;;  %v2128_v8 = vrot.slane %v9330_v61, 2  ;;  %v2107_v33 = vsel %vm479_vm2, %v2104_v4, %v9333_v3  ;;  %v9352_v13 = vld [vmem:[#allocation76_spill] sm:$0xff] }
 0x222   :  { %v6283_v25 = vadd.f32 %v9290_v43, %v9288_v6  ;;  %9295 = vst [vmem:[#allocation152_spill] sm:$0xff] %v6288_v24  ;;  %v6303_v43 = vadd.f32 %v9306_v52, %v9304_v59  ;;  %v2098_v52 = vrot.slane %v9317_v63, 2  ;;  %v2108_v63 = vrot.slane %v9322_v17, 2  ;;  %v9347_v24 = vld [vmem:[#allocation75_spill] sm:$0xff] }
 0x223   :  { %9299 = vst [vmem:[#allocation153_spill] sm:$0xff] %v6293_v35  ;;  %v2118_v57 = vrot.slane %v9326_v54, 2  ;;  %v2124_v17 = vrot.slane %v9329_v37, 2  ;;  %v2102_v54 = vsel %vm479_vm2, %v2099_v39, %v9332_v45  ;;  %v9334_v21 = vrot.slane %v9268_v34, 2  ;;  %v9337_v37 = vld [vmem:[#allocation73_spill] sm:$0xff] }
 0x224   :  { %9291 = vst [vmem:[#allocation151_spill] sm:$0xff] %v6283_v25  ;;  %v2100_v27 = vsel %vm479_vm2, %v2098_v52, %v2099_v39  ;;  %v2110_v52 = vsel %vm479_vm2, %v2108_v63, %v2109_v22  ;;  %v2115_v51 = vsel %vm479_vm2, %v2113_v26, %v2114_v36  ;;  %v2117_v45 = vsel %vm479_vm2, %v2114_v36, %v9335_v10  ;;  %v9339_v26 = vld [vmem:[#allocation38_spill] sm:$0xff]  ;;  %v9349_v25 = vld [vmem:[#allocation9_spill] sm:$0xff] }
 0x225   :  { %9303 = vst [vmem:[#allocation154_spill] sm:$0xff] %v6298_v18  ;;  %v2112_v61 = vsel %vm479_vm2, %v2109_v22, %v9334_v21  ;;  %v2120_v46 = vsel %vm479_vm2, %v2118_v57, %v2119_v0  ;;  %v9336_v39 = vrot.slane %v9276_v9, 2  ;;  %v2125_v3 = vsel %vm479_vm2, %v2123_v53, %v2124_v17  ;;  %v9346_v18 = vld [vmem:[#allocation21_spill] sm:$0xff] }
 0x226   :  { %9307 = vst [vmem:[#allocation155_spill] sm:$0xff] %v6303_v43  ;;  %v2133_v63 = vrot.slane %v9337_v37, 2  ;;  %v2127_v21 = vsel %vm479_vm2, %v2124_v17, %v9338_v48  ;;  %v2130_v22 = vsel %vm479_vm2, %v2128_v8, %v2129_v40  ;;  %v2134_v19 = vrot.slane %v9339_v26, 2  ;;  %v9344_v43 = vld [vmem:[#allocation39_spill] sm:$0xff]  ;;  %v9345_v8 = vld [vmem:[#allocation25_spill] sm:$0xff] }
 0x227   :  { %9311 = vst [vmem:[#allocation156_spill] sm:$0xff] %v6308_v47  ;;  %v2122_v4 = vsel %vm479_vm2, %v2119_v0, %v9336_v39  ;;  %v9340_v36 = vrot.slane %v9282_v14, 2  ;;  %v2138_v0 = vrot.slane %v9341_v23, 2  ;;  %v9342_v39 = vld [vmem:[#allocation4_spill] sm:$0xff]  ;;  %v2141_v37 = vrot.slane %v9292_v31, 2  ;;  %v9350_v14 = vld [vmem:[#allocation5_spill] sm:$0xff] }
 0x228   :  { %9315 = vst [vmem:[#allocation82_spill] sm:$0xff] %v6313_v1  ;;  %v2139_v53 = vrot.slane %v9342_v39, 2  ;;  %v9343_v1 = vld [vmem:[#allocation74_spill] sm:$0xff]  ;;  %v2144_v48 = vrot.slane %v9344_v43, 2  ;;  %v2146_v17 = vrot.slane %v9296_v50, 2  ;;  %v2148_v26 = vrot.slane %v9345_v8, 2 }
 0x229   :  { %v2132_v57 = vsel %vm479_vm2, %v2129_v40, %v9340_v36  ;;  %v2143_v47 = vrot.slane %v9343_v1, 2  ;;  %v2149_v10 = vrot.slane %v9346_v18, 2  ;;  %v2151_v35 = vrot.slane %v9300_v42, 2  ;;  %v9348_v36 = vld [vmem:[#allocation40_spill] sm:$0xff] }
 0x22a   :  { %v2153_v40 = vrot.slane %v9347_v24, 2  ;;  %v2154_v23 = vrot.slane %v9348_v36, 2  ;;  %v2156_v39 = vrot.slane %v9304_v59, 2  ;;  %v2158_v31 = vrot.slane %v9349_v25, 2 }
 0x22b   :  { %v2159_v1 = vrot.slane %v9350_v14, 2  ;;  %v2161_v43 = vrot.slane %v9308_v16, 2  ;;  %v2135_v50 = vsel %vm479_vm2, %v2133_v63, %v2134_v19  ;;  %v9351_v8 = vrot.slane %v9288_v6, 2 }
 0x22c   :  { %v2163_v42 = vrot.slane %v9352_v13, 2  ;;  %v2164_v24 = vrot.slane %v9353_v11, 2  ;;  %v2140_v36 = vsel %vm479_vm2, %v2138_v0, %v2139_v53  ;;  %v2142_v59 = vsel %vm479_vm2, %v2139_v53, %v2141_v37 }
 0x22d   :  { %v2137_v18 = vsel %vm479_vm2, %v2134_v19, %v9351_v8  ;;  %v2145_v25 = vsel %vm479_vm2, %v2143_v47, %v2144_v48  ;;  %v2166_v14 = vrot.slane %v9312_v30, 2  ;;  %v2147_v16 = vsel %vm479_vm2, %v2144_v48, %v2146_v17  ;;  %v9354_v8 = vld [vmem:[#allocation100_spill] sm:$0xff]  ;;  %v9355_v47 = vld [vmem:[#allocation101_spill] sm:$0xff] }
 0x22e   :  { %v2150_v63 = vsel %vm479_vm2, %v2148_v26, %v2149_v10  ;;  %v2152_v6 = vsel %vm479_vm2, %v2149_v10, %v2151_v35  ;;  %v2155_v19 = vsel %vm479_vm2, %v2153_v40, %v2154_v23  ;;  %v2157_v13 = vsel %vm479_vm2, %v2154_v23, %v2156_v39  ;;  %v9357_v40 = vld [vmem:[#allocation102_spill] sm:$0xff] }
 0x22f   :  { %v2160_v11 = vsel %vm479_vm2, %v2158_v31, %v2159_v1  ;;  %v2162_v0 = vsel %vm479_vm2, %v2159_v1, %v2161_v43  ;;  %v6417_v53 = vadd.f32 %v6316_v60, %v9354_v8  ;;  %v2165_v30 = vsel %vm479_vm2, %v2163_v42, %v2164_v24  ;;  %v9359_v1 = vld [vmem:[#allocation103_spill] sm:$0xff]  ;;  %v9363_v8 = vld [vmem:[#allocation104_spill] sm:$0xff] }
 0x230   :  { %v6422_v48 = vadd.f32 %v6321_v58, %v9355_v47  ;;  %v9356_v10 = vrot.slane %v9256_v29, 2  ;;  %v6431_v23 = vadd.f32 %v6327_v28, %v9357_v40  ;;  %v2167_v31 = vsel %vm479_vm2, %v2164_v24, %v2166_v14  ;;  %v9365_v29 = vld [vmem:[#allocation105_spill] sm:$0xff]  ;;  %v9369_v24 = vld [vmem:[#allocation106_spill] sm:$0xff] }
 0x231   :  { %v6436_v60 = vadd.f32 %v6332_v15, %v9359_v1  ;;  %v9361_v42 = vrot.slane %v9259_v41, 2  ;;  %v6444_v47 = vadd.f32 %v2100_v27, %v9363_v8  ;;  %v9367_v28 = vrot.slane %v9262_v49, 2  ;;  %v9371_v15 = vld [vmem:[#allocation107_spill] sm:$0xff]  ;;  %v9375_v27 = vld [vmem:[#allocation108_spill] sm:$0xff] }
 0x232   :  { %v6427_v26 = vadd.f32 %v9356_v10, %v6232_v62  ;;  %9358 = vst [vmem:[#allocation50_spill] sm:$0xff] %v6431_v23  ;;  %v6447_v62 = vadd.f32 %v2102_v54, %v9365_v29  ;;  %v6455_v40 = vadd.f32 %v2105_v32, %v9369_v24  ;;  %v6458_v1 = vadd.f32 %v2107_v33, %v9371_v15  ;;  %v9377_v54 = vld [vmem:[#allocation109_spill] sm:$0xff]  ;;  %v9381_v32 = vld [vmem:[#allocation110_spill] sm:$0xff]  ;;  %v9383_v33 = vld [vmem:[#allocation111_spill] sm:$0xff] }
 0x233   :  { %9360 = vst [vmem:[#allocation90_spill] sm:$0xff] %v6436_v60  ;;  %v6441_v58 = vadd.f32 %v9361_v42, %v6237_v12  ;;  %v6452_v10 = vadd.f32 %v9367_v28, %v6242_v38  ;;  %v9373_v12 = vrot.slane %v9265_v44, 2  ;;  %v6466_v42 = vadd.f32 %v2110_v52, %v9375_v27  ;;  %v9387_v52 = vld [vmem:[#allocation112_spill] sm:$0xff] }
 0x234   :  { %9364 = vst [vmem:[#allocation93_spill] sm:$0xff] %v6444_v47  ;;  %v6469_v8 = vadd.f32 %v2112_v61, %v9377_v54  ;;  %v9379_v49 = vrot.slane %v9268_v34, 2  ;;  %v6477_v29 = vadd.f32 %v2115_v51, %v9381_v32  ;;  %v6480_v28 = vadd.f32 %v2117_v45, %v9383_v33  ;;  %v9389_v61 = vld [vmem:[#allocation113_spill] sm:$0xff]  ;;  %v9393_v51 = vld [vmem:[#allocation114_spill] sm:$0xff]  ;;  %v9395_v45 = vld [vmem:[#allocation115_spill] sm:$0xff] }
 0x235   :  { %9362 = vst [vmem:[#allocation91_spill] sm:$0xff] %v6441_v58  ;;  %v6463_v41 = vadd.f32 %v9373_v12, %v6247_v2  ;;  %v9385_v2 = vrot.slane %v9273_v5, 2  ;;  %v6488_v24 = vadd.f32 %v2120_v46, %v9387_v52  ;;  %v6491_v15 = vadd.f32 %v2122_v4, %v9389_v61  ;;  %v9397_v5 = vld [vmem:[#allocation44_spill] sm:$0xff]  ;;  %v9402_v4 = vld [vmem:[#allocation117_spill] sm:$0xff] }
 0x236   :  { %9366 = vst [vmem:[#allocation94_spill] sm:$0xff] %v6447_v62  ;;  %v6474_v38 = vadd.f32 %v9379_v49, %v6252_v56  ;;  %v9391_v34 = vrot.slane %v9276_v9, 2  ;;  %v6499_v12 = vadd.f32 %v2125_v3, %v9393_v51  ;;  %v6502_v27 = vadd.f32 %v2127_v21, %v9395_v45  ;;  %v9400_v46 = vld [vmem:[#allocation116_spill] sm:$0xff]  ;;  %v9404_v9 = vld [vmem:[#allocation150_spill] sm:$0xff]  ;;  %v9410_v21 = vld [vmem:[#allocation119_spill] sm:$0xff] }
 0x237   :  { %9368 = vst [vmem:[#allocation96_spill] sm:$0xff] %v6452_v10  ;;  %v6485_v44 = vadd.f32 %v9385_v2, %v6259_v7  ;;  %v9398_v7 = vrot.slane %v9397_v5, 2  ;;  %v6510_v49 = vadd.f32 %v2130_v22, %v9400_v46  ;;  %v6513_v32 = vadd.f32 %v2132_v57, %v9402_v4  ;;  %v9408_v3 = vld [vmem:[#allocation118_spill] sm:$0xff]  ;;  %v9416_v22 = vld [vmem:[#allocation120_spill] sm:$0xff]  ;;  %v9418_v57 = vld [vmem:[#allocation121_spill] sm:$0xff] }
 0x238   :  { %9370 = vst [vmem:[#allocation97_spill] sm:$0xff] %v6455_v40  ;;  %v6496_v56 = vadd.f32 %v9391_v34, %v6264_v20  ;;  %v9405_v20 = vld [vmem:[#allocation28_spill] sm:$0xff]  ;;  %v6521_v52 = vadd.f32 %v2135_v50, %v9408_v3  ;;  %v6524_v61 = vadd.f32 %v2137_v18, %v9410_v21  ;;  %v9412_v34 = vld [vmem:[#allocation151_spill] sm:$0xff]  ;;  %v6532_v5 = vadd.f32 %v2140_v36, %v9416_v22  ;;  %v9430_v36 = vld [vmem:[#allocation125_spill] sm:$0xff] }
 0x239   :  { %9372 = vst [vmem:[#allocation99_spill] sm:$0xff] %v6458_v1  ;;  %v6507_v54 = vadd.f32 %v9398_v7, %v6269_v55  ;;  %v9406_v33 = vrot.slane %v9405_v20, 2  ;;  %v9413_v55 = vld [vmem:[#allocation45_spill] sm:$0xff]  ;;  %v6535_v7 = vadd.f32 %v2142_v59, %v9418_v57  ;;  %v9420_v46 = vld [vmem:[#allocation152_spill] sm:$0xff]  ;;  %v9424_v20 = vld [vmem:[#allocation123_spill] sm:$0xff] }
 0x23a   :  { %9374 = vst [vmem:[#allocation132_spill] sm:$0xff] %v6463_v41  ;;  %v9414_v51 = vrot.slane %v9413_v55, 2  ;;  %v6538_v4 = vadd.f32 %v2141_v37, %v9420_v46  ;;  %v6544_v18 = vadd.f32 %v2147_v16, %v9424_v20  ;;  %v9428_v21 = vld [vmem:[#allocation124_spill] sm:$0xff]  ;;  %v6553_v55 = vadd.f32 %v2152_v6, %v9430_v36  ;;  %v9432_v59 = vld [vmem:[#allocation154_spill] sm:$0xff]  ;;  %v9438_v16 = vld [vmem:[#allocation155_spill] sm:$0xff] }
 0x23b   :  { %9376 = vst [vmem:[#allocation133_spill] sm:$0xff] %v6466_v42  ;;  %v6518_v2 = vadd.f32 %v9406_v33, %v9404_v9  ;;  %v9422_v9 = vld [vmem:[#allocation122_spill] sm:$0xff]  ;;  %v9426_v33 = vld [vmem:[#allocation153_spill] sm:$0xff]  ;;  %v6565_v46 = vadd.f32 %v2156_v39, %v9438_v16  ;;  %v9444_v6 = vld [vmem:[#allocation156_spill] sm:$0xff]  ;;  %v2266_v39 = vmul.f32 -2.0, %v6417_v53  ;;  %v2274_v16 = vmul.f32 -2.0, %v6452_v10 }
 0x23c   :  { %9378 = vst [vmem:[#allocation134_spill] sm:$0xff] %v6469_v8  ;;  %v6529_v45 = vadd.f32 %v9414_v51, %v9412_v34  ;;  %v6541_v50 = vadd.f32 %v2145_v25, %v9422_v9  ;;  %v6547_v3 = vadd.f32 %v2146_v17, %v9426_v33  ;;  %v6550_v34 = vadd.f32 %v2150_v63, %v9428_v21  ;;  %v9434_v37 = vld [vmem:[#allocation126_spill] sm:$0xff]  ;;  %v9436_v25 = vld [vmem:[#allocation127_spill] sm:$0xff]  ;;  %v9440_v17 = vld [vmem:[#allocation128_spill] sm:$0xff] }
 0x23d   :  { %9380 = vst [vmem:[#allocation135_spill] sm:$0xff] %v6474_v38  ;;  %v6556_v51 = vadd.f32 %v2151_v35, %v9432_v59  ;;  %v6559_v22 = vadd.f32 %v2155_v19, %v9434_v37  ;;  %v6562_v57 = vadd.f32 %v2157_v13, %v9436_v25  ;;  %v6568_v9 = vadd.f32 %v2160_v11, %v9440_v17  ;;  %v9442_v63 = vld [vmem:[#allocation129_spill] sm:$0xff]  ;;  %v9446_v35 = vld [vmem:[#allocation130_spill] sm:$0xff]  ;;  %v9448_v19 = vld [vmem:[#allocation131_spill] sm:$0xff] }
 0x23e   :  { %9382 = vst [vmem:[#allocation136_spill] sm:$0xff] %v6477_v29  ;;  %v6571_v20 = vadd.f32 %v2162_v0, %v9442_v63  ;;  %v6574_v33 = vadd.f32 %v2161_v43, %v9444_v6  ;;  %v6577_v21 = vadd.f32 %v2165_v30, %v9446_v35  ;;  %v6580_v36 = vadd.f32 %v2167_v31, %v9448_v19  ;;  %v9450_v13 = vld [vmem:[#allocation82_spill] sm:$0xff] }
 0x23f   :  { %9384 = vst [vmem:[#allocation137_spill] sm:$0xff] %v6480_v28  ;;  %v6583_v59 = vadd.f32 %v2166_v14, %v9450_v13  ;;  %v2267_v11 = vmul.f32 -2.0, %v6422_v48  ;;  %v2268_v37 = vmul.f32 -2.0, %v6427_v26  ;;  %v2269_v0 = vmul.f32 -2.0, %v6431_v23 }
 0x240   :  { %9386 = vst [vmem:[#allocation138_spill] sm:$0xff] %v6485_v44  ;;  %v2270_v43 = vmul.f32 -2.0, %v6436_v60  ;;  %v2271_v25 = vmul.f32 -2.0, %v6441_v58  ;;  %v2272_v30 = vmul.f32 -2.0, %v6444_v47  ;;  %v2273_v31 = vmul.f32 -2.0, %v6447_v62  ;;  %v9452_v58 = vld [vmem:[#allocation68_spill] sm:$0xff] }
 0x241   :  { %9388 = vst [vmem:[#allocation139_spill] sm:$0xff] %v6488_v24  ;;  %v2275_v14 = vmul.f32 -2.0, %v6455_v40  ;;  %v2276_v17 = vmul.f32 -2.0, %v6458_v1  ;;  %v2277_v63 = vmul.f32 -2.0, %v6463_v41  ;;  %v2278_v6 = vmul.f32 -2.0, %v6466_v42 }
 0x242   :  { %9390 = vst [vmem:[#allocation140_spill] sm:$0xff] %v6491_v15  ;;  %v2279_v35 = vmul.f32 -2.0, %v6469_v8  ;;  %v2280_v19 = vmul.f32 -2.0, %v6474_v38  ;;  %v2281_v13 = vmul.f32 -2.0, %v6477_v29  ;;  %v2282_v47 = vmul.f32 -2.0, %v6480_v28 }
 0x243   :  { %9392 = vst [vmem:[#allocation30_spill] sm:$0xff] %v6496_v56  ;;  %v2283_v62 = vmul.f32 -2.0, %v6485_v44  ;;  %v2284_v10 = vmul.f32 -2.0, %v6488_v24  ;;  %v2285_v40 = vmul.f32 -2.0, %v6491_v15  ;;  %v2286_v1 = vmul.f32 -2.0, %v6496_v56 }
 0x244   :  { %9394 = vst [vmem:[#allocation49_spill] sm:$0xff] %v6499_v12  ;;  %v2287_v41 = vmul.f32 -2.0, %v6499_v12  ;;  %v2288_v42 = vmul.f32 -2.0, %v6502_v27  ;;  %v2289_v8 = vmul.f32 -2.0, %v6507_v54  ;;  %v2290_v38 = vmul.f32 -2.0, %v6510_v49 }
 0x245   :  { %9396 = vst [vmem:[#allocation141_spill] sm:$0xff] %v6502_v27  ;;  %v2291_v29 = vmul.f32 -2.0, %v6513_v32  ;;  %v2292_v28 = vmul.f32 -2.0, %v6518_v2  ;;  %v2293_v44 = vmul.f32 -2.0, %v6521_v52  ;;  %v2294_v24 = vmul.f32 -2.0, %v6524_v61 }
 0x246   :  { %9399 = vst [vmem:[#allocation79_spill] sm:$0xff] %v6507_v54  ;;  %v2295_v15 = vmul.f32 -2.0, %v6529_v45  ;;  %v2296_v56 = vmul.f32 -2.0, %v6532_v5  ;;  %v2297_v12 = vmul.f32 -2.0, %v6535_v7  ;;  %v2298_v27 = vmul.f32 -2.0, %v6538_v4 }
 0x247   :  { %9401 = vst [vmem:[#allocation31_spill] sm:$0xff] %v6510_v49  ;;  %v2299_v54 = vmul.f32 -2.0, %v6541_v50  ;;  %v2300_v49 = vmul.f32 -2.0, %v6544_v18 }
 0x248   :  { %9403 = vst [vmem:[#allocation142_spill] sm:$0xff] %v6513_v32  ;;  %v2301_v32 = vmul.f32 -2.0, %v6547_v3 }
 0x249   :  { %9407 = vst [vmem:[#allocation143_spill] sm:$0xff] %v6518_v2  ;;  %v2302_v2 = vmul.f32 -2.0, %v6550_v34 }
 0x24a   :  { %9409 = vst [vmem:[#allocation144_spill] sm:$0xff] %v6521_v52  ;;  %v2303_v52 = vmul.f32 -2.0, %v6553_v55 }
 0x24b   :  { %9411 = vst [vmem:[#allocation145_spill] sm:$0xff] %v6524_v61  ;;  %v2304_v61 = vmul.f32 -2.0, %v6556_v51 }
 0x24c   :  { %9415 = vst [vmem:[#allocation65_spill] sm:$0xff] %v6529_v45  ;;  %v2305_v45 = vmul.f32 -2.0, %v6559_v22 }
 0x24d   :  { %9417 = vst [vmem:[#allocation26_spill] sm:$0xff] %v6532_v5  ;;  %v2306_v5 = vmul.f32 -2.0, %v6562_v57 }
 0x24e   :  { %9419 = vst [vmem:[#allocation14_spill] sm:$0xff] %v6535_v7  ;;  %v2307_v7 = vmul.f32 -2.0, %v6565_v46 }
 0x24f   :  { %9421 = vst [vmem:[#allocation77_spill] sm:$0xff] %v6538_v4  ;;  %v2308_v4 = vmul.f32 -2.0, %v6568_v9 }
 0x250   :  { %9423 = vst [vmem:[#allocation80_spill] sm:$0xff] %v6541_v50  ;;  %v2309_v50 = vmul.f32 -2.0, %v6571_v20 }
 0x251   :  { %9425 = vst [vmem:[#allocation10_spill] sm:$0xff] %v6544_v18  ;;  %v2310_v18 = vmul.f32 -2.0, %v6574_v33 }
 0x252   :  { %9427 = vst [vmem:[#allocation32_spill] sm:$0xff] %v6547_v3  ;;  %v2311_v3 = vmul.f32 -2.0, %v6577_v21 }
 0x253   :  { %9429 = vst [vmem:[#allocation78_spill] sm:$0xff] %v6550_v34  ;;  %v2312_v34 = vmul.f32 -2.0, %v6580_v36 }
 0x254   :  { %9431 = vst [vmem:[#allocation83_spill] sm:$0xff] %v6553_v55  ;;  %v2313_v55 = vmul.f32 -2.0, %v6583_v59 }
 0x255   :  { %9433 = vst [vmem:[#allocation27_spill] sm:$0xff] %v6556_v51  ;;  %v2314_v51 = vadd.f32 %v2266_v39, %v9452_v58  ;;  %v9454_v39 = vld [vmem:[#allocation93_spill] sm:$0xff] }
 0x256   :  { %9435 = vst [vmem:[#allocation18_spill] sm:$0xff] %v6559_v22  ;;  %v2315_v22 = vadd.f32 %v2267_v11, %v9452_v58  ;;  %v2323_v11 = vadd.f32 %v2275_v14, %v9454_v39  ;;  %v9462_v14 = vld [vmem:[#allocation135_spill] sm:$0xff] }
 0x257   :  { %9437 = vst [vmem:[#allocation41_spill] sm:$0xff] %v6562_v57  ;;  %v2316_v57 = vadd.f32 %v2268_v37, %v9452_v58  ;;  %v9455_v37 = vld [vmem:[#allocation94_spill] sm:$0xff]  ;;  %v2331_v39 = vadd.f32 %v2283_v62, %v9462_v14  ;;  %v9470_v14 = vld [vmem:[#allocation141_spill] sm:$0xff] }
 0x258   :  { %9439 = vst [vmem:[#allocation16_spill] sm:$0xff] %v6565_v46  ;;  %v2317_v46 = vadd.f32 %v2269_v0, %v6417_v53  ;;  %v2324_v58 = vadd.f32 %v2276_v17, %v9455_v37  ;;  %v9456_v0 = vld [vmem:[#allocation96_spill] sm:$0xff]  ;;  %v2339_v62 = vadd.f32 %v2291_v29, %v9470_v14  ;;  %v9478_v14 = vld [vmem:[#allocation26_spill] sm:$0xff] }
 0x259   :  { %9441 = vst [vmem:[#allocation43_spill] sm:$0xff] %v6568_v9  ;;  %v2318_v9 = vadd.f32 %v2270_v43, %v6422_v48  ;;  %v2325_v53 = vadd.f32 %v2277_v63, %v9456_v0  ;;  %v9457_v43 = vld [vmem:[#allocation97_spill] sm:$0xff]  ;;  %v9463_v17 = vld [vmem:[#allocation136_spill] sm:$0xff]  ;;  %v2347_v29 = vadd.f32 %v2299_v54, %v9478_v14 }
 0x25a   :  { %9443 = vst [vmem:[#allocation67_spill] sm:$0xff] %v6571_v20  ;;  %v2319_v20 = vadd.f32 %v2271_v25, %v6427_v26  ;;  %v2326_v48 = vadd.f32 %v2278_v6, %v9457_v43  ;;  %v9458_v25 = vld [vmem:[#allocation99_spill] sm:$0xff]  ;;  %v2332_v37 = vadd.f32 %v2284_v10, %v9463_v17  ;;  %v9464_v0 = vld [vmem:[#allocation137_spill] sm:$0xff]  ;;  %v9465_v6 = vld [vmem:[#allocation138_spill] sm:$0xff] }
 0x25b   :  { %9445 = vst [vmem:[#allocation11_spill] sm:$0xff] %v6574_v33  ;;  %v2320_v33 = vadd.f32 %v2272_v30, %v6431_v23  ;;  %v2327_v26 = vadd.f32 %v2279_v35, %v9458_v25  ;;  %v9459_v23 = vld [vmem:[#allocation132_spill] sm:$0xff]  ;;  %v2333_v63 = vadd.f32 %v2285_v40, %v9464_v0  ;;  %v2334_v43 = vadd.f32 %v2286_v1, %v9465_v6  ;;  %v9466_v25 = vld [vmem:[#allocation139_spill] sm:$0xff]  ;;  %v9473_v1 = vld [vmem:[#allocation142_spill] sm:$0xff] }
 0x25c   :  { %9447 = vst [vmem:[#allocation58_spill] sm:$0xff] %v6577_v21  ;;  %v2321_v21 = vadd.f32 %v2273_v31, %v6436_v60  ;;  %v2328_v30 = vadd.f32 %v2280_v19, %v9459_v23  ;;  %v9460_v31 = vld [vmem:[#allocation133_spill] sm:$0xff]  ;;  %v2335_v35 = vadd.f32 %v2287_v41, %v9466_v25  ;;  %v9467_v19 = vld [vmem:[#allocation140_spill] sm:$0xff]  ;;  %v9471_v10 = vld [vmem:[#allocation79_spill] sm:$0xff]  ;;  %v2342_v6 = vadd.f32 %v2294_v24, %v9473_v1 }
 0x25d   :  { %9449 = vst [vmem:[#allocation61_spill] sm:$0xff] %v6580_v36  ;;  %v9453_v36 = vld [vmem:[#allocation91_spill] sm:$0xff]  ;;  %v2329_v60 = vadd.f32 %v2281_v13, %v9460_v31  ;;  %v2336_v23 = vadd.f32 %v2288_v42, %v9467_v19  ;;  %v9468_v13 = vld [vmem:[#allocation30_spill] sm:$0xff]  ;;  %v2340_v17 = vadd.f32 %v2292_v28, %v9471_v10  ;;  %v9475_v19 = vld [vmem:[#allocation144_spill] sm:$0xff] }
 0x25e   :  { %9451 = vst [vmem:[#allocation63_spill] sm:$0xff] %v6583_v59  ;;  %v2322_v59 = vadd.f32 %v2274_v16, %v9453_v36  ;;  %v9461_v16 = vld [vmem:[#allocation134_spill] sm:$0xff]  ;;  %v2337_v31 = vadd.f32 %v2289_v8, %v9468_v13  ;;  %v9472_v0 = vld [vmem:[#allocation31_spill] sm:$0xff]  ;;  %v2344_v42 = vadd.f32 %v2296_v56, %v9475_v19  ;;  %v9476_v8 = vld [vmem:[#allocation145_spill] sm:$0xff] }
 0x25f   :  { %v2330_v36 = vadd.f32 %v2282_v47, %v9461_v16  ;;  %v9469_v16 = vld [vmem:[#allocation49_spill] sm:$0xff]  ;;  %v2341_v40 = vadd.f32 %v2293_v44, %v9472_v0  ;;  %v9474_v25 = vld [vmem:[#allocation143_spill] sm:$0xff]  ;;  %v2345_v13 = vadd.f32 %v2297_v12, %v9476_v8  ;;  %v9479_v10 = vld [vmem:[#allocation14_spill] sm:$0xff] }
 0x260   :  { %v2338_v47 = vadd.f32 %v2290_v38, %v9469_v16  ;;  %v2343_v41 = vadd.f32 %v2295_v15, %v9474_v25  ;;  %v9477_v16 = vld [vmem:[#allocation65_spill] sm:$0xff]  ;;  %v2348_v28 = vadd.f32 %v2300_v49, %v9479_v10  ;;  %v9481_v1 = vld [vmem:[#allocation80_spill] sm:$0xff]  ;;  %v9482_v15 = vld [vmem:[#allocation10_spill] sm:$0xff] }
 0x261   :  { %v2346_v38 = vadd.f32 %v2298_v27, %v9477_v16  ;;  %v9480_v0 = vld [vmem:[#allocation77_spill] sm:$0xff]  ;;  %v2350_v24 = vadd.f32 %v2302_v2, %v9481_v1  ;;  %v2351_v25 = vadd.f32 %v2303_v52, %v9482_v15  ;;  %v9483_v19 = vld [vmem:[#allocation32_spill] sm:$0xff]  ;;  %v9484_v8 = vld [vmem:[#allocation78_spill] sm:$0xff] }
 0x262   :  { %v2349_v44 = vadd.f32 %v2301_v32, %v9480_v0  ;;  %v2352_v56 = vadd.f32 %v2304_v61, %v9483_v19  ;;  %v2353_v12 = vadd.f32 %v2305_v45, %v9484_v8  ;;  %v9485_v16 = vld [vmem:[#allocation83_spill] sm:$0xff]  ;;  %v9487_v10 = vld [vmem:[#allocation18_spill] sm:$0xff]  ;;  %v9488_v0 = vld [vmem:[#allocation41_spill] sm:$0xff] }
 0x263   :  { %v2354_v27 = vadd.f32 %v2306_v5, %v9485_v16  ;;  %v9486_v14 = vld [vmem:[#allocation27_spill] sm:$0xff]  ;;  %v2356_v49 = vadd.f32 %v2308_v4, %v9487_v10  ;;  %v2357_v32 = vadd.f32 %v2309_v50, %v9488_v0  ;;  %v9489_v1 = vld [vmem:[#allocation16_spill] sm:$0xff]  ;;  %v9493_v5 = vld [vmem:[#allocation50_spill] sm:$0xff] }
 0x264   :  { %v2355_v54 = vadd.f32 %v2307_v7, %v9486_v14  ;;  %v2358_v2 = vadd.f32 %v2310_v18, %v9489_v1  ;;  %v9490_v15 = vld [vmem:[#allocation43_spill] sm:$0xff]  ;;  %v2362_v16 = vadd.f32 %v2314_v51, %v9493_v5  ;;  %v9494_v7 = vld [vmem:[#allocation90_spill] sm:$0xff]  ;;  %v9496_v0 = vld [vmem:[#allocation93_spill] sm:$0xff] }
 0x265   :  { %v2359_v52 = vadd.f32 %v2311_v3, %v9490_v15  ;;  %v9491_v19 = vld [vmem:[#allocation67_spill] sm:$0xff]  ;;  %v2363_v14 = vadd.f32 %v2315_v22, %v9494_v7  ;;  %v2365_v50 = vadd.f32 %v2317_v46, %v9496_v0  ;;  %v9497_v1 = vld [vmem:[#allocation94_spill] sm:$0xff]  ;;  %v9498_v3 = vld [vmem:[#allocation96_spill] sm:$0xff] }
 0x266   :  { %v2360_v61 = vadd.f32 %v2312_v34, %v9491_v19  ;;  %v9492_v8 = vld [vmem:[#allocation11_spill] sm:$0xff]  ;;  %v2366_v18 = vadd.f32 %v2318_v9, %v9497_v1  ;;  %v2367_v15 = vadd.f32 %v2319_v20, %v9498_v3  ;;  %v9499_v19 = vld [vmem:[#allocation97_spill] sm:$0xff]  ;;  %v9501_v5 = vld [vmem:[#allocation132_spill] sm:$0xff] }
 0x267   :  { %v2361_v45 = vadd.f32 %v2313_v55, %v9492_v8  ;;  %v9495_v4 = vld [vmem:[#allocation91_spill] sm:$0xff]  ;;  %v2368_v34 = vadd.f32 %v2320_v33, %v9499_v19  ;;  %v2370_v51 = vadd.f32 %v2322_v59, %v9501_v5  ;;  %v9502_v7 = vld [vmem:[#allocation133_spill] sm:$0xff]  ;;  %v9505_v1 = vld [vmem:[#allocation136_spill] sm:$0xff] }
 0x268   :  { %v2364_v10 = vadd.f32 %v2316_v57, %v9495_v4  ;;  %v9500_v8 = vld [vmem:[#allocation99_spill] sm:$0xff]  ;;  %v2371_v22 = vadd.f32 %v2323_v11, %v9502_v7  ;;  %v9503_v4 = vld [vmem:[#allocation134_spill] sm:$0xff]  ;;  %v2374_v9 = vadd.f32 %v2326_v48, %v9505_v1  ;;  %v9506_v3 = vld [vmem:[#allocation137_spill] sm:$0xff] }
 0x269   :  { %v2369_v55 = vadd.f32 %v2321_v21, %v9500_v8  ;;  %v2372_v57 = vadd.f32 %v2324_v58, %v9503_v4  ;;  %v9504_v0 = vld [vmem:[#allocation135_spill] sm:$0xff]  ;;  %v2375_v20 = vadd.f32 %v2327_v26, %v9506_v3  ;;  %v9507_v19 = vld [vmem:[#allocation138_spill] sm:$0xff]  ;;  %v9509_v5 = vld [vmem:[#allocation140_spill] sm:$0xff] }
 0x26a   :  { %v2373_v46 = vadd.f32 %v2325_v53, %v9504_v0  ;;  %v2376_v33 = vadd.f32 %v2328_v30, %v9507_v19  ;;  %v9508_v8 = vld [vmem:[#allocation139_spill] sm:$0xff]  ;;  %v2378_v59 = vadd.f32 %v2330_v36, %v9509_v5  ;;  %v9510_v7 = vld [vmem:[#allocation30_spill] sm:$0xff]  ;;  %v9511_v4 = vld [vmem:[#allocation49_spill] sm:$0xff] }
 0x26b   :  { %v2377_v21 = vadd.f32 %v2329_v60, %v9508_v8  ;;  %v2379_v11 = vadd.f32 %v2331_v39, %v9510_v7  ;;  %v2380_v58 = vadd.f32 %v2332_v37, %v9511_v4  ;;  %v9512_v0 = vld [vmem:[#allocation141_spill] sm:$0xff]  ;;  %v9513_v1 = vld [vmem:[#allocation79_spill] sm:$0xff]  ;;  %v9515_v19 = vld [vmem:[#allocation142_spill] sm:$0xff] }
 0x26c   :  { %v2381_v53 = vadd.f32 %v2333_v63, %v9512_v0  ;;  %v2382_v48 = vadd.f32 %v2334_v43, %v9513_v1  ;;  %v9514_v3 = vld [vmem:[#allocation31_spill] sm:$0xff]  ;;  %v2384_v30 = vadd.f32 %v2336_v23, %v9515_v19  ;;  %v9517_v5 = vld [vmem:[#allocation144_spill] sm:$0xff]  ;;  %v9518_v7 = vld [vmem:[#allocation145_spill] sm:$0xff] }
 0x26d   :  { %v2383_v26 = vadd.f32 %v2335_v35, %v9514_v3  ;;  %v9516_v8 = vld [vmem:[#allocation143_spill] sm:$0xff]  ;;  %v2386_v36 = vadd.f32 %v2338_v47, %v9517_v5  ;;  %v2387_v39 = vadd.f32 %v2339_v62, %v9518_v7  ;;  %v9519_v4 = vld [vmem:[#allocation65_spill] sm:$0xff]  ;;  %v9520_v0 = vld [vmem:[#allocation26_spill] sm:$0xff] }
 0x26e   :  { %v2385_v60 = vadd.f32 %v2337_v31, %v9516_v8  ;;  %v2388_v37 = vadd.f32 %v2340_v17, %v9519_v4  ;;  %v2389_v63 = vadd.f32 %v2341_v40, %v9520_v0  ;;  %v9521_v1 = vld [vmem:[#allocation14_spill] sm:$0xff]  ;;  %v9522_v3 = vld [vmem:[#allocation77_spill] sm:$0xff]  ;;  %v9523_v19 = vld [vmem:[#allocation80_spill] sm:$0xff] }
 0x26f   :  { %v2390_v43 = vadd.f32 %v2342_v6, %v9521_v1  ;;  %v2391_v35 = vadd.f32 %v2343_v41, %v9522_v3  ;;  %v2392_v23 = vadd.f32 %v2344_v42, %v9523_v19  ;;  %v9524_v8 = vld [vmem:[#allocation10_spill] sm:$0xff]  ;;  %v9525_v5 = vld [vmem:[#allocation32_spill] sm:$0xff]  ;;  %v9527_v4 = vld [vmem:[#allocation83_spill] sm:$0xff] }
 0x270   :  { %v2393_v31 = vadd.f32 %v2345_v13, %v9524_v8  ;;  %v2394_v47 = vadd.f32 %v2346_v38, %v9525_v5  ;;  %v9526_v7 = vld [vmem:[#allocation78_spill] sm:$0xff]  ;;  %v2396_v17 = vadd.f32 %v2348_v28, %v9527_v4  ;;  %v9528_v0 = vld [vmem:[#allocation27_spill] sm:$0xff]  ;;  %v9530_v3 = vld [vmem:[#allocation41_spill] sm:$0xff] }
 0x271   :  { %v2395_v62 = vadd.f32 %v2347_v29, %v9526_v7  ;;  %v2397_v40 = vadd.f32 %v2349_v44, %v9528_v0  ;;  %v9529_v1 = vld [vmem:[#allocation18_spill] sm:$0xff]  ;;  %v2399_v41 = vadd.f32 %v2351_v25, %v9530_v3  ;;  %v9531_v19 = vld [vmem:[#allocation16_spill] sm:$0xff]  ;;  %v9532_v8 = vld [vmem:[#allocation43_spill] sm:$0xff] }
 0x272   :  { %v2398_v6 = vadd.f32 %v2350_v24, %v9529_v1  ;;  %v2400_v42 = vadd.f32 %v2352_v56, %v9531_v19  ;;  %v2401_v13 = vadd.f32 %v2353_v12, %v9532_v8  ;;  %v9533_v5 = vld [vmem:[#allocation67_spill] sm:$0xff]  ;;  %v9535_v4 = vld [vmem:[#allocation58_spill] sm:$0xff]  ;;  %v9536_v0 = vld [vmem:[#allocation61_spill] sm:$0xff]  ;;  %v2410_v8 = vmul.f32 2.0, %v2362_v16 }
 0x273   :  { %v2402_v38 = vadd.f32 %v2354_v27, %v9533_v5  ;;  %v9534_v7 = vld [vmem:[#allocation11_spill] sm:$0xff]  ;;  %v2404_v28 = vadd.f32 %v2356_v49, %v9535_v4  ;;  %v2405_v44 = vadd.f32 %v2357_v32, %v9536_v0  ;;  %v9538_v3 = vld [vmem:[#allocation68_spill] sm:$0xff]  ;;  %v2411_v12 = vmul.f32 2.0, %v2363_v14 }
 0x274   :  { %v2403_v29 = vadd.f32 %v2355_v54, %v9534_v7  ;;  %v9537_v1 = vld [vmem:[#allocation63_spill] sm:$0xff]  ;;  %v2407_v25 = vadd.f32 %v2359_v52, %v9538_v3  ;;  %v2408_v19 = vadd.f32 %v2360_v61, %v9538_v3  ;;  %v2409_v56 = vadd.f32 %v2361_v45, %v9538_v3 }
 0x275   :  { %v2406_v24 = vadd.f32 %v2358_v2, %v9537_v1  ;;  %v2412_v5 = vmul.f32 2.0, %v2364_v10  ;;  %v2413_v27 = vmul.f32 2.0, %v2365_v50  ;;  %v2414_v7 = vmul.f32 2.0, %v2366_v18 }
 0x276   :  { %v2415_v54 = vmul.f32 2.0, %v2367_v15  ;;  %v6729_v4 = vmul.f32 2.0, %v2368_v34  ;;  %v6731_v49 = vmul.f32 2.0, %v2369_v55  ;;  %v6733_v0 = vmul.f32 2.0, %v2370_v51 }
 0x277   :  { %v6735_v32 = vmul.f32 2.0, %v2371_v22  ;;  %v6737_v2 = vmul.f32 2.0, %v2372_v57  ;;  %v6739_v52 = vmul.f32 2.0, %v2373_v46  ;;  %v6741_v61 = vmul.f32 2.0, %v2374_v9 }
 0x278   :  { %v6743_v16 = vmul.f32 2.0, %v2375_v20  ;;  %v6745_v14 = vmul.f32 2.0, %v2376_v33  ;;  %v6747_v10 = vmul.f32 2.0, %v2377_v21  ;;  %v6749_v15 = vmul.f32 2.0, %v2378_v59 }
 0x279   :  { %v6751_v45 = vmul.f32 2.0, %v2379_v11  ;;  %v6753_v50 = vmul.f32 2.0, %v2380_v58  ;;  %v6755_v18 = vmul.f32 2.0, %v2381_v53  ;;  %v6757_v34 = vmul.f32 2.0, %v2382_v48 }
 0x27a   :  { %v6759_v55 = vmul.f32 2.0, %v2383_v26  ;;  %v6761_v51 = vmul.f32 2.0, %v2384_v30  ;;  %v6763_v22 = vmul.f32 2.0, %v2385_v60  ;;  %v6765_v57 = vmul.f32 2.0, %v2386_v36 }
 0x27b   :  { %v6767_v46 = vmul.f32 2.0, %v2387_v39  ;;  %v6769_v9 = vmul.f32 2.0, %v2388_v37  ;;  %v6771_v20 = vmul.f32 2.0, %v2389_v63  ;;  %v6773_v33 = vmul.f32 2.0, %v2390_v43 }
 0x27c   :  { %v6775_v21 = vmul.f32 2.0, %v2391_v35  ;;  %v6777_v59 = vmul.f32 2.0, %v2392_v23  ;;  %v6779_v11 = vmul.f32 2.0, %v2393_v31  ;;  %v6781_v58 = vmul.f32 2.0, %v2394_v47 }
 0x27d   :  { %v6783_v53 = vmul.f32 2.0, %v2395_v62  ;;  %v6785_v48 = vmul.f32 2.0, %v2396_v17  ;;  %v6787_v26 = vmul.f32 2.0, %v2397_v40  ;;  %v6789_v30 = vmul.f32 2.0, %v2398_v6 }
 0x27e   :  { %v2506_v60 = vrot.slane %v2410_v8, 1  ;;  %v2507_v36 = vrot.slane %v2411_v12, 1  ;;  %v6791_v39 = vmul.f32 2.0, %v2399_v41  ;;  %v6793_v37 = vmul.f32 2.0, %v2400_v42 }
 0x27f   :  { %v6795_v63 = vmul.f32 2.0, %v2401_v13  ;;  %v2509_v43 = vrot.slane %v2412_v5, 1  ;;  %v6797_v35 = vmul.f32 2.0, %v2402_v38  ;;  %v2511_v23 = vrot.slane %v2413_v27, 1 }
 0x280   :  { %v2512_v31 = vrot.slane %v2414_v7, 1  ;;  %v2514_v47 = vrot.slane %v2415_v54, 1  ;;  %v6799_v62 = vmul.f32 2.0, %v2403_v29  ;;  %v6801_v17 = vmul.f32 2.0, %v2404_v28 }
 0x281   :  { %v6803_v40 = vmul.f32 2.0, %v2405_v44  ;;  %v6805_v6 = vmul.f32 2.0, %v2406_v24  ;;  %v6807_v41 = vmul.f32 2.0, %v2407_v25  ;;  %v6809_v42 = vmul.f32 2.0, %v2408_v19 }
 0x282   :  { %v6811_v13 = vmul.f32 2.0, %v2409_v56  ;;  %v6814_v38 = vsel %vm298_vm1, %v2506_v60, %v2507_v36  ;;  %v6817_v1 = vsel %vm298_vm1, %v2507_v36, %v2509_v43  ;;  %v2516_v29 = vrot.slane %v6729_v4, 1 }
 0x283   :  { %v2517_v28 = vrot.slane %v6731_v49, 1  ;;  %v2519_v44 = vrot.slane %v6733_v0, 1  ;;  %v6823_v24 = vsel %vm298_vm1, %v2511_v23, %v2512_v31  ;;  %v6826_v3 = vsel %vm298_vm1, %v2512_v31, %v2514_v47 }
 0x284   :  { %v2521_v25 = vrot.slane %v6735_v32, 1  ;;  %v2522_v19 = vrot.slane %v6737_v2, 1  ;;  %v2524_v56 = vrot.slane %v6739_v52, 1  ;;  %v2526_v8 = vrot.slane %v6741_v61, 1 }
 0x285   :  { %v2527_v12 = vrot.slane %v6743_v16, 1  ;;  %v2529_v5 = vrot.slane %v6745_v14, 1  ;;  %v2531_v27 = vrot.slane %v6747_v10, 1  ;;  %v2532_v7 = vrot.slane %v6749_v15, 1 }
 0x286   :  { %v2534_v54 = vrot.slane %v6751_v45, 1  ;;  %v2536_v4 = vrot.slane %v6753_v50, 1  ;;  %v2537_v49 = vrot.slane %v6755_v18, 1  ;;  %v2539_v0 = vrot.slane %v6757_v34, 1 }
 0x287   :  { %v2541_v32 = vrot.slane %v6759_v55, 1  ;;  %v2542_v2 = vrot.slane %v6761_v51, 1  ;;  %v2518_v52 = vsel %vm298_vm1, %v2516_v29, %v2517_v28  ;;  %v2544_v61 = vrot.slane %v6763_v22, 1 }
 0x288   :  { %v2546_v16 = vrot.slane %v6765_v57, 1  ;;  %v2547_v14 = vrot.slane %v6767_v46, 1  ;;  %v2520_v10 = vsel %vm298_vm1, %v2517_v28, %v2519_v44  ;;  %v2523_v15 = vsel %vm298_vm1, %v2521_v25, %v2522_v19 }
 0x289   :  { %v2525_v45 = vsel %vm298_vm1, %v2522_v19, %v2524_v56  ;;  %v2549_v50 = vrot.slane %v6769_v9, 1  ;;  %v2528_v18 = vsel %vm298_vm1, %v2526_v8, %v2527_v12  ;;  %v2530_v34 = vsel %vm298_vm1, %v2527_v12, %v2529_v5 }
 0x28a   :  { %v2533_v55 = vsel %vm298_vm1, %v2531_v27, %v2532_v7  ;;  %v2535_v51 = vsel %vm298_vm1, %v2532_v7, %v2534_v54  ;;  %v2538_v22 = vsel %vm298_vm1, %v2536_v4, %v2537_v49  ;;  %v2540_v57 = vsel %vm298_vm1, %v2537_v49, %v2539_v0  ;;  %v9539_v27 = vld [vmem:[#allocation157_spill] sm:$0xff]  ;;  %v9541_v4 = vld [vmem:[#allocation158_spill] sm:$0xff] }
 0x28b   :  { %v2543_v46 = vsel %vm298_vm1, %v2541_v32, %v2542_v2  ;;  %v2551_v60 = vrot.slane %v6771_v20, 1  ;;  %v2545_v36 = vsel %vm298_vm1, %v2542_v2, %v2544_v61  ;;  %v2548_v9 = vsel %vm298_vm1, %v2546_v16, %v2547_v14  ;;  %v9543_v32 = vld [vmem:[#allocation159_spill] sm:$0xff]  ;;  %v9545_v16 = vld [vmem:[#allocation160_spill] sm:$0xff] }
 0x28c   :  { %v2552_v43 = vrot.slane %v6773_v33, 1  ;;  %v2554_v23 = vrot.slane %v6775_v21, 1  ;;  %v2550_v31 = vsel %vm298_vm1, %v2547_v14, %v2549_v50  ;;  %v2556_v47 = vrot.slane %v6777_v59, 1 }
 0x28d   :  { %v2557_v29 = vrot.slane %v6779_v11, 1  ;;  %v2559_v28 = vrot.slane %v6781_v58, 1  ;;  %v2561_v44 = vrot.slane %v6783_v53, 1  ;;  %v2562_v20 = vrot.slane %v6785_v48, 1 }
 0x28e   :  { %v2564_v25 = vrot.slane %v6787_v26, 1  ;;  %v2566_v19 = vrot.slane %v6789_v30, 1  ;;  %v2567_v33 = vrot.slane %v6791_v39, 1  ;;  %v2569_v21 = vrot.slane %v6793_v37, 1 }
 0x28f   :  { %v2571_v56 = vrot.slane %v6795_v63, 1  ;;  %v2572_v59 = vrot.slane %v6797_v35, 1  ;;  %v2574_v11 = vrot.slane %v6799_v62, 1  ;;  %v2576_v58 = vrot.slane %v6801_v17, 1 }
 0x290   :  { %v2577_v53 = vrot.slane %v6803_v40, 1  ;;  %v2579_v48 = vrot.slane %v6805_v6, 1  ;;  %v2553_v26 = vsel %vm298_vm1, %v2551_v60, %v2552_v43  ;;  %v2555_v30 = vsel %vm298_vm1, %v2552_v43, %v2554_v23  ;;  %v9547_v60 = vld [vmem:[#allocation161_spill] sm:$0xff] }
 0x291   :  { %v2581_v39 = vrot.slane %v6807_v41, 1  ;;  %v2582_v37 = vrot.slane %v6809_v42, 1  ;;  %v2558_v63 = vsel %vm298_vm1, %v2556_v47, %v2557_v29  ;;  %v2560_v35 = vsel %vm298_vm1, %v2557_v29, %v2559_v28  ;;  %v9549_v47 = vld [vmem:[#allocation162_spill] sm:$0xff]  ;;  %v9551_v28 = vld [vmem:[#allocation163_spill] sm:$0xff] }
 0x292   :  { %v2563_v62 = vsel %vm298_vm1, %v2561_v44, %v2562_v20  ;;  %v2584_v17 = vrot.slane %v6811_v13, 1  ;;  %v2565_v40 = vsel %vm298_vm1, %v2562_v20, %v2564_v25  ;;  %v2568_v6 = vsel %vm298_vm1, %v2566_v19, %v2567_v33 }
 0x293   :  { %v2570_v8 = vsel %vm298_vm1, %v2567_v33, %v2569_v21  ;;  %v2573_v12 = vsel %vm298_vm1, %v2571_v56, %v2572_v59  ;;  %v2575_v41 = vsel %vm298_vm1, %v2572_v59, %v2574_v11  ;;  %v2578_v42 = vsel %vm298_vm1, %v2576_v58, %v2577_v53  ;;  %v9557_v56 = vld [vmem:[#allocation15_spill] sm:$0xff]  ;;  %v9559_v11 = vld [vmem:[#allocation81_spill] sm:$0xff] }
 0x294   :  { %v2580_v5 = vsel %vm298_vm1, %v2577_v53, %v2579_v48  ;;  %v9540_v7 = vsub.f32 0.0, %v9539_v27  ;;  %v2583_v13 = vsel %vm298_vm1, %v2581_v39, %v2582_v37  ;;  %v9542_v49 = vsub.f32 0.0, %v9541_v4  ;;  %v9561_v53 = vld [vmem:[#allocation17_spill] sm:$0xff] }
 0x295   :  { %v9544_v2 = vsub.f32 0.0, %v9543_v32  ;;  %v9546_v14 = vsub.f32 0.0, %v9545_v16  ;;  %v9548_v43 = vsub.f32 0.0, %v9547_v60  ;;  %v9550_v29 = vsub.f32 0.0, %v9549_v47  ;;  %v9563_v39 = vld [vmem:[#allocation33_spill] sm:$0xff] }
 0x296   :  { %v6896_v54 = vsub.f32 %v9540_v7, %v6814_v38  ;;  %v6902_v0 = vsub.f32 %v9542_v49, %v6817_v1  ;;  %v2585_v38 = vsel %vm298_vm1, %v2582_v37, %v2584_v17  ;;  %v9552_v44 = vsub.f32 0.0, %v9551_v28  ;;  %v9565_v17 = vld [vmem:[#allocation84_spill] sm:$0xff]  ;;  %v9567_v7 = vld [vmem:[#allocation85_spill] sm:$0xff]  ;;  %v9569_v49 = vld [vmem:[#allocation66_spill] sm:$0xff] }
 0x297   :  { %v6907_v61 = vsub.f32 %v9544_v2, %v6823_v24  ;;  %v6912_v50 = vsub.f32 %v9546_v14, %v6826_v3  ;;  %v6917_v23 = vsub.f32 %v9548_v43, %v2518_v52  ;;  %v6921_v1 = vsub.f32 %v9550_v29, %v2520_v10  ;;  %v9553_v24 = vld [vmem:[#allocation164_spill] sm:$0xff]  ;;  %v9555_v3 = vld [vmem:[#allocation165_spill] sm:$0xff]  ;;  %v9575_v43 = vld [vmem:[#allocation59_spill] sm:$0xff] }
 0x298   :  { %v6925_v20 = vsub.f32 %v9552_v44, %v2523_v15  ;;  %v9554_v25 = vsub.f32 0.0, %v9553_v24  ;;  %v9556_v33 = vsub.f32 0.0, %v9555_v3  ;;  %v9558_v59 = vsub.f32 0.0, %v9557_v56  ;;  %v9571_v2 = vld [vmem:[#allocation56_spill] sm:$0xff]  ;;  %v9573_v14 = vld [vmem:[#allocation57_spill] sm:$0xff]  ;;  %v9579_v44 = vld [vmem:[#allocation62_spill] sm:$0xff] }
 0x299   :  { %v9560_v58 = vsub.f32 0.0, %v9559_v11  ;;  %v9562_v48 = vsub.f32 0.0, %v9561_v53  ;;  %v9564_v37 = vsub.f32 0.0, %v9563_v39  ;;  %v9566_v27 = vsub.f32 0.0, %v9565_v17  ;;  %v9577_v29 = vld [vmem:[#allocation60_spill] sm:$0xff]  ;;  %v9581_v3 = vld [vmem:[#allocation34_spill] sm:$0xff] }
 0x29a   :  { %v6929_v19 = vsub.f32 %v9554_v25, %v2525_v45  ;;  %v6933_v21 = vsub.f32 %v9556_v33, %v2528_v18  ;;  %v6937_v52 = vsub.f32 %v9558_v59, %v2530_v34  ;;  %v9568_v4 = vsub.f32 0.0, %v9567_v7  ;;  %v9583_v56 = vld [vmem:[#allocation86_spill] sm:$0xff]  ;;  %v9591_v7 = vld [vmem:[#allocation87_spill] sm:$0xff] }
 0x29b   :  { %v6941_v10 = vsub.f32 %v9560_v58, %v2533_v55  ;;  %v6945_v15 = vsub.f32 %v9562_v48, %v2535_v51  ;;  %v6949_v45 = vsub.f32 %v9564_v37, %v2538_v22  ;;  %v6953_v18 = vsub.f32 %v9566_v27, %v2540_v57  ;;  %v9585_v58 = vld [vmem:[#allocation51_spill] sm:$0xff]  ;;  %v9587_v48 = vld [vmem:[#allocation53_spill] sm:$0xff]  ;;  %v9589_v17 = vld [vmem:[#allocation54_spill] sm:$0xff] }
 0x29c   :  { %v6957_v34 = vsub.f32 %v9568_v4, %v2543_v46  ;;  %v9570_v32 = vsub.f32 0.0, %v9569_v49  ;;  %v9572_v16 = vsub.f32 0.0, %v9571_v2  ;;  %v9574_v60 = vsub.f32 0.0, %v9573_v14  ;;  %v9593_v49 = vld [vmem:[#allocation88_spill] sm:$0xff] }
 0x29d   :  { %v9576_v47 = vsub.f32 0.0, %v9575_v43  ;;  %v9578_v28 = vsub.f32 0.0, %v9577_v29  ;;  %v9580_v24 = vsub.f32 0.0, %v9579_v44  ;;  %v2682_v25 = vrot.slane %v6896_v54, 7 }
 0x29e   :  { %v6961_v55 = vsub.f32 %v9570_v32, %v2545_v36  ;;  %v6965_v51 = vsub.f32 %v9572_v16, %v2548_v9  ;;  %v6969_v22 = vsub.f32 %v9574_v60, %v2550_v31  ;;  %v2683_v9 = vrot.slane %v6902_v0, 7 }
 0x29f   :  { %v6973_v57 = vsub.f32 %v9576_v47, %v2553_v26  ;;  %v6977_v46 = vsub.f32 %v9578_v28, %v2555_v30  ;;  %v6981_v36 = vsub.f32 %v9580_v24, %v2558_v63  ;;  %v9582_v33 = vsub.f32 0.0, %v9581_v3  ;;  %v9601_v28 = vld [vmem:[#allocation149_spill] sm:$0xff] }
 0x2a0   :  { %v9584_v59 = vsub.f32 0.0, %v9583_v56  ;;  %v2685_v11 = vrot.slane %v6907_v61, 7  ;;  %v2686_v30 = vrot.slane %v6912_v50, 7  ;;  %v9586_v53 = vsub.f32 0.0, %v9585_v58 }
 0x2a1   :  { %v6987_v31 = vsub.f32 %v9582_v33, %v2560_v35  ;;  %v9588_v54 = vsub.f32 0.0, %v9587_v48  ;;  %v2688_v37 = vrot.slane %v6917_v23, 7  ;;  %v2689_v35 = vrot.slane %v6921_v1, 7  ;;  %v9599_v23 = vld [vmem:[#allocation148_spill] sm:$0xff] }
 0x2a2   :  { %v6991_v26 = vsub.f32 %v9584_v59, %v2563_v62  ;;  %v6997_v63 = vsub.f32 %v9586_v53, %v2565_v40  ;;  %v9590_v27 = vsub.f32 0.0, %v9589_v17  ;;  %v9592_v61 = vsub.f32 0.0, %v9591_v7  ;;  %v9595_v40 = vld [vmem:[#allocation146_spill] sm:$0xff] }
 0x2a3   :  { %v7001_v39 = vsub.f32 %v9588_v54, %v2568_v6  ;;  %v9594_v32 = vsub.f32 0.0, %v9593_v49  ;;  %v9596_v16 = vsub.f32 0.0, %v9595_v40  ;;  %v9597_v6 = vld [vmem:[#allocation147_spill] sm:$0xff]  ;;  %v9600_v47 = vsub.f32 0.0, %v9599_v23 }
 0x2a4   :  { %v7007_v62 = vsub.f32 %v9590_v27, %v2570_v8  ;;  %v2644_v4 = vsub.f32 %v9592_v61, %v2573_v12  ;;  %v9598_v60 = vsub.f32 0.0, %v9597_v6  ;;  %v9602_v8 = vsub.f32 0.0, %v9601_v28 }
 0x2a5   :  { %v7013_v2 = vsub.f32 %v9594_v32, %v2575_v41  ;;  %v2646_v14 = vsub.f32 %v9596_v16, %v2578_v42  ;;  %v2648_v29 = vsub.f32 %v9600_v47, %v2583_v13  ;;  %v7030_v12 = vsel %vm72_vm0, %v2682_v25, %v2683_v9 }
 0x2a6   :  { %v7019_v43 = vsub.f32 %v9598_v60, %v2580_v5  ;;  %v7025_v44 = vsub.f32 %v9602_v8, %v2585_v38  ;;  %v7035_v41 = vsel %vm72_vm0, %v2685_v11, %v2686_v30  ;;  %v2691_v42 = vrot.slane %v6925_v20, 7 }
 0x2a7   :  { %v2692_v5 = vrot.slane %v6929_v19, 7  ;;  %v2694_v13 = vrot.slane %v6933_v21, 7  ;;  %v7043_v38 = vsel %vm72_vm0, %v2688_v37, %v2689_v35  ;;  %v2695_v24 = vrot.slane %v6937_v52, 7 }
 0x2a8   :  { %9603 = vst [vmem:[#allocation42_spill] sm:$0xff] %v7043_v38  ;;  %v2697_v3 = vrot.slane %v6941_v10, 7  ;;  %v2698_v33 = vrot.slane %v6945_v15, 7  ;;  %v2700_v56 = vrot.slane %v6949_v45, 7  ;;  %v2701_v59 = vrot.slane %v6953_v18, 7 }
 0x2a9   :  { %v2703_v20 = vrot.slane %v6957_v34, 7  ;;  %v2704_v19 = vrot.slane %v6961_v55, 7  ;;  %v2706_v21 = vrot.slane %v6965_v51, 7  ;;  %v2707_v58 = vrot.slane %v6969_v22, 7 }
 0x2aa   :  { %v2709_v53 = vrot.slane %v6973_v57, 7  ;;  %v2710_v52 = vrot.slane %v6977_v46, 7  ;;  %v2712_v10 = vrot.slane %v6981_v36, 7  ;;  %v2713_v15 = vrot.slane %v6987_v31, 7 }
 0x2ab   :  { %v2715_v45 = vrot.slane %v6991_v26, 7  ;;  %v2716_v18 = vrot.slane %v6997_v63, 7  ;;  %v2718_v34 = vrot.slane %v7001_v39, 7  ;;  %v2719_v55 = vrot.slane %v7007_v62, 7 }
 0x2ac   :  { %v2721_v48 = vrot.slane %v2644_v4, 7  ;;  %v2722_v51 = vrot.slane %v7013_v2, 7  ;;  %v2724_v22 = vrot.slane %v2646_v14, 7  ;;  %v2725_v57 = vrot.slane %v7019_v43, 7 }
 0x2ad   :  { %v2727_v54 = vrot.slane %v2648_v29, 7  ;;  %v2728_v46 = vrot.slane %v7025_v44, 7  ;;  %v7066_v36 = vsel %vm72_vm0, %v2691_v42, %v2692_v5  ;;  %v7069_v31 = vsel %vm72_vm0, %v2694_v13, %v2695_v24 }
 0x2ae   :  { %9604 = vst [vmem:[#allocation35_spill] sm:$0xff] %v7066_v36  ;;  %v7072_v26 = vsel %vm72_vm0, %v2697_v3, %v2698_v33  ;;  %v7075_v63 = vsel %vm72_vm0, %v2700_v56, %v2701_v59  ;;  %v7078_v39 = vsel %vm72_vm0, %v2703_v20, %v2704_v19  ;;  %v7081_v17 = vsel %vm72_vm0, %v2706_v21, %v2707_v58 }
 0x2af   :  { %9605 = vst [vmem:[#allocation52_spill] sm:$0xff] %v7069_v31  ;;  %v7084_v27 = vsel %vm72_vm0, %v2709_v53, %v2710_v52  ;;  %v7087_v62 = vsel %vm72_vm0, %v2712_v10, %v2713_v15  ;;  %v7090_v7 = vsel %vm72_vm0, %v2715_v45, %v2716_v18  ;;  %v7093_v61 = vsel %vm72_vm0, %v2718_v34, %v2719_v55 }
 0x2b0   :  { %9606 = vst [vmem:[#allocation12_spill] sm:$0xff] %v7072_v26  ;;  %v7096_v4 = vsel %vm72_vm0, %v2721_v48, %v2722_v51  ;;  %v7099_v49 = vsel %vm72_vm0, 0.0, %v2682_v25  ;;  %v7102_v32 = vsel %vm72_vm0, %v2724_v22, %v2725_v57  ;;  %v7105_v2 = vsel %vm72_vm0, %v2727_v54, %v2728_v46 }
 0x2b1   :  { %9607 = vst [vmem:[#allocation55_spill] sm:$0xff] %v7075_v63  ;;  %v7108_v40 = vsel %vm72_vm0, 0.0, %v2685_v11  ;;  %v7111_v16 = vsel %vm72_vm0, 0.0, %v2688_v37  ;;  %v7114_v14 = vsel %vm72_vm0, 0.0, %v2691_v42  ;;  %v7117_v6 = vsel %vm72_vm0, 0.0, %v2694_v13 }
 0x2b2   :  { %9608 = vst [vmem:[#allocation46_spill] sm:$0xff] %v7078_v39  ;;  %v7120_v25 = vsel %vm72_vm0, 0.0, %v2697_v3  ;;  %v7123_v60 = vsel %vm72_vm0, 0.0, %v2700_v56  ;;  %v7126_v43 = vsel %vm72_vm0, 0.0, %v2703_v20  ;;  %v7129_v11 = vsel %vm72_vm0, 0.0, %v2706_v21 }
 0x2b3   :  { %9609 = vst [vmem:[#allocation64_spill] sm:$0xff] %v7081_v17  ;;  %v7132_v37 = vsel %vm72_vm0, 0.0, %v2709_v53  ;;  %v7135_v23 = vsel %vm72_vm0, 0.0, %v2712_v10  ;;  %v7138_v47 = vsel %vm72_vm0, 0.0, %v2715_v45  ;;  %v7141_v29 = vsel %vm72_vm0, 0.0, %v2718_v34 }
 0x2b4   :  { %9610 = vst [vmem:[#allocation29_spill] sm:$0xff] %v7084_v27  ;;  %v7144_v28 = vsel %vm72_vm0, 0.0, %v2721_v48  ;;  %v7147_v8 = vsel %vm72_vm0, 0.0, %v2724_v22  ;;  %v7150_v44 = vsel %vm72_vm0, 0.0, %v2727_v54  ;;  %v7155_v42 = vsel %vm72_vm0, %v2683_v9, 0.0 }
 0x2b5   :  { %9611 = vst [vmem:[#allocation89_spill] sm:$0xff] %v7087_v62  ;;  %v7160_v13 = vsel %vm72_vm0, %v2686_v30, 0.0  ;;  %v7165_v3 = vsel %vm72_vm0, %v2689_v35, 0.0  ;;  %v7168_v56 = vsel %vm72_vm0, %v2692_v5, 0.0  ;;  %v7171_v20 = vsel %vm72_vm0, %v2695_v24, 0.0 }
 0x2b6   :  { %9612 = vst [vmem:[#allocation47_spill] sm:$0xff] %v7090_v7  ;;  %v7174_v0 = vsel %vm72_vm0, %v2698_v33, 0.0  ;;  %v7177_v9 = vsel %vm72_vm0, %v2701_v59, 0.0  ;;  %v7180_v50 = vsel %vm72_vm0, %v2704_v19, 0.0  ;;  %v7183_v1 = vsel %vm72_vm0, %v2707_v58, 0.0 }
 0x2b7   :  { %9613 = vst [vmem:[#allocation92_spill] sm:$0xff] %v7096_v4  ;;  %v7186_v30 = vsel %vm72_vm0, %v2710_v52, 0.0  ;;  %v7189_v35 = vsel %vm72_vm0, %v2713_v15, 0.0  ;;  %v7192_v5 = vsel %vm72_vm0, %v2716_v18, 0.0  ;;  %v7195_v24 = vsel %vm72_vm0, %v2719_v55, 0.0 }
 0x2b8   :  { %9614 = vst [vmem:[#allocation13_spill] sm:$0xff] %v7102_v32  ;;  %v7198_v33 = vsel %vm72_vm0, %v2722_v51, 0.0  ;;  %v7201_v59 = vsel %vm72_vm0, %v2725_v57, 0.0  ;;  %v7204_v19 = vsel %vm72_vm0, %v2728_v46, 0.0  ;;  %v2810_v21 = vmul.f32 -2.0, %v7099_v49 }
 0x2b9   :  { %9615 = vst [vmem:[#allocation95_spill] sm:$0xff] %v7105_v2  ;;  %v2811_v58 = vmul.f32 -2.0, %v7030_v12  ;;  %v2812_v53 = vmul.f32 -2.0, %v7155_v42  ;;  %v2813_v52 = vmul.f32 -2.0, %v7108_v40  ;;  %v2814_v10 = vmul.f32 -2.0, %v7035_v41 }
 0x2ba   :  { %9616 = vst [vmem:[#allocation48_spill] sm:$0xff] %v7114_v14  ;;  %v2815_v15 = vmul.f32 -2.0, %v7160_v13  ;;  %v7213_v45 = vmul.f32 -2.0, %v7111_v16  ;;  %v7216_v18 = vmul.f32 -2.0, %v7043_v38  ;;  %v7219_v34 = vmul.f32 -2.0, %v7165_v3 }
 0x2bb   :  { %9617 = vst [vmem:[#allocation98_spill] sm:$0xff] %v7117_v6  ;;  %v7222_v55 = vmul.f32 -2.0, %v7114_v14  ;;  %v7225_v48 = vmul.f32 -2.0, %v7066_v36  ;;  %v7228_v51 = vmul.f32 -2.0, %v7168_v56  ;;  %v7231_v22 = vmul.f32 -2.0, %v7117_v6 }
 0x2bc   :  { %9618 = vst [vmem:[#allocation6_spill] sm:$0xff] %v7120_v25  ;;  %v7234_v57 = vmul.f32 -2.0, %v7069_v31  ;;  %v7237_v54 = vmul.f32 -2.0, %v7171_v20  ;;  %v7240_v46 = vmul.f32 -2.0, %v7120_v25  ;;  %v7252_v6 = vmul.f32 -2.0, %v7075_v63 }
 0x2bd   :  { %9619 = vst [vmem:[#allocation2_spill] sm:$0xff] %v7123_v60  ;;  %v7255_v31 = vmul.f32 -2.0, %v7177_v9  ;;  %v7261_v25 = vmul.f32 -2.0, %v7078_v39  ;;  %v7273_v63 = vmul.f32 -2.0, %v7183_v1  ;;  %v7282_v39 = vmul.f32 -2.0, %v7186_v30 }
 0x2be   :  { %9620 = vst [vmem:[#allocation70_spill] sm:$0xff] %v7126_v43  ;;  %v2909_v36 = vrot.slane %v2812_v53, 1  ;;  %v2912_v14 = vrot.slane %v2814_v10, 1  ;;  %v2914_v38 = vrot.slane %v2815_v15, 1  ;;  %v7330_v53 = vmul.f32 -2.0, %v7150_v44 }
 0x2bf   :  { %9621 = vst [vmem:[#allocation36_spill] sm:$0xff] %v7129_v11 }
 0x2c0   :  { %9622 = vst [vmem:[#allocation23_spill] sm:$0xff] %v7132_v37 }
 0x2c1   :  { %9623 = vst [vmem:[#allocation19_spill] sm:$0xff] %v7135_v23 }
 0x2c2   :  { %9624 = vst [vmem:[#allocation71_spill] sm:$0xff] %v7138_v47 }
 0x2c3   :  { %9625 = vst [vmem:[#allocation69_spill] sm:$0xff] %v7141_v29 }
 0x2c4   :  { %9626 = vst [vmem:[#allocation7_spill] sm:$0xff] %v7147_v8 }
 0x2c5   :  { %9627 = vst [vmem:[#allocation3_spill] sm:$0xff] %v7150_v44 }
 0x2c6   :  { %9628 = vst [vmem:[#allocation72_spill] sm:$0xff] %v7155_v42  ;;  %v2907_v42 = vrot.slane %v2811_v58, 1  ;;  %v7324_v58 = vmul.f32 -2.0, %v7102_v32  ;;  %v2916_v32 = vrot.slane %v7213_v45, 1  ;;  %v2929_v45 = vrot.slane %v7237_v54, 1 }
 0x2c7   :  { %9629 = vst [vmem:[#allocation37_spill] sm:$0xff] %v7160_v13  ;;  %v7246_v13 = vmul.f32 -2.0, %v7174_v0 }
 0x2c8   :  { %9630 = vst [vmem:[#allocation24_spill] sm:$0xff] %v7165_v3  ;;  %v7243_v3 = vmul.f32 -2.0, %v7072_v26  ;;  %v7264_v26 = vmul.f32 -2.0, %v7180_v50  ;;  %v7342_v15 = vsel %vm298_vm1, %v2907_v42, %v2909_v36  ;;  %v2926_v36 = vrot.slane %v7231_v22, 1 }
 0x2c9   :  { %9631 = vst [vmem:[#allocation20_spill] sm:$0xff] %v7168_v56  ;;  %v7249_v56 = vmul.f32 -2.0, %v7123_v60  ;;  %v7270_v60 = vmul.f32 -2.0, %v7081_v17  ;;  %v7291_v17 = vmul.f32 -2.0, %v7189_v35 }
 0x2ca   :  { %9632 = vst [vmem:[#allocation73_spill] sm:$0xff] %v7171_v20  ;;  %v7258_v20 = vmul.f32 -2.0, %v7126_v43  ;;  %v7279_v43 = vmul.f32 -2.0, %v7084_v27  ;;  %v7300_v27 = vmul.f32 -2.0, %v7192_v5 }
 0x2cb   :  { %9633 = vst [vmem:[#allocation38_spill] sm:$0xff] %v7174_v0  ;;  %v7267_v0 = vmul.f32 -2.0, %v7129_v11  ;;  %v7288_v11 = vmul.f32 -2.0, %v7087_v62  ;;  %v7306_v62 = vmul.f32 -2.0, %v7093_v61 }
 0x2cc   :  { %9634 = vst [vmem:[#allocation8_spill] sm:$0xff] %v7177_v9  ;;  %v7276_v9 = vmul.f32 -2.0, %v7132_v37  ;;  %v7297_v37 = vmul.f32 -2.0, %v7090_v7  ;;  %v7315_v7 = vmul.f32 -2.0, %v7096_v4  ;;  %v7333_v4 = vmul.f32 -2.0, %v7105_v2 }
 0x2cd   :  { %9635 = vst [vmem:[#allocation4_spill] sm:$0xff] %v7180_v50  ;;  %v7285_v50 = vmul.f32 -2.0, %v7135_v23  ;;  %v2906_v23 = vrot.slane %v2810_v21, 1  ;;  %v7321_v21 = vmul.f32 -2.0, %v7147_v8  ;;  %v2919_v8 = vrot.slane %v7219_v34, 1 }
 0x2ce   :  { %9636 = vst [vmem:[#allocation74_spill] sm:$0xff] %v7183_v1  ;;  %v7294_v1 = vmul.f32 -2.0, %v7138_v47  ;;  %v7312_v47 = vmul.f32 -2.0, %v7144_v28  ;;  %v7351_v2 = vsel %vm298_vm1, %v2912_v14, %v2914_v38  ;;  %v2934_v34 = vrot.slane %v7246_v13, 1 }
 0x2cf   :  { %9637 = vst [vmem:[#allocation39_spill] sm:$0xff] %v7186_v30  ;;  %v7303_v30 = vmul.f32 -2.0, %v7141_v29  ;;  %v7318_v29 = vmul.f32 -2.0, %v7198_v33  ;;  %v7339_v10 = vsel %vm298_vm1, %v2906_v23, %v2907_v42  ;;  %v2922_v23 = vrot.slane %v7225_v48, 1 }
 0x2d0   :  { %9638 = vst [vmem:[#allocation25_spill] sm:$0xff] %v7189_v35  ;;  %v7309_v35 = vmul.f32 -2.0, %v7195_v24  ;;  %v2927_v42 = vrot.slane %v7234_v57, 1  ;;  %v2936_v38 = vrot.slane %v7249_v56, 1  ;;  %v2941_v48 = vrot.slane %v7258_v20, 1 }
 0x2d1   :  { %9639 = vst [vmem:[#allocation21_spill] sm:$0xff] %v7192_v5  ;;  %v2911_v5 = vrot.slane %v2813_v52, 1  ;;  %v7336_v52 = vmul.f32 -2.0, %v7204_v19  ;;  %v2944_v57 = vrot.slane %v7264_v26, 1  ;;  %v2946_v54 = vrot.slane %v7267_v0, 1 }
 0x2d2   :  { %9640 = vst [vmem:[#allocation75_spill] sm:$0xff] %v7195_v24  ;;  %v7327_v24 = vmul.f32 -2.0, %v7201_v59  ;;  %v2928_v20 = vsel %vm298_vm1, %v2926_v36, %v2927_v42  ;;  %v2956_v36 = vrot.slane %v7285_v50, 1  ;;  %v2972_v50 = vrot.slane %v7315_v7, 1 }
 0x2d3   :  { %9641 = vst [vmem:[#allocation40_spill] sm:$0xff] %v7198_v33  ;;  %v7348_v44 = vsel %vm298_vm1, %v2911_v5, %v2912_v14  ;;  %v2924_v33 = vrot.slane %v7228_v51, 1  ;;  %v2932_v5 = vrot.slane %v7243_v3, 1  ;;  %v2937_v14 = vrot.slane %v7252_v6, 1 }
 0x2d4   :  { %9642 = vst [vmem:[#allocation9_spill] sm:$0xff] %v7201_v59  ;;  %v2917_v59 = vrot.slane %v7216_v18, 1  ;;  %v2931_v18 = vrot.slane %v7240_v46, 1  ;;  %v2942_v51 = vrot.slane %v7261_v25, 1  ;;  %v2947_v3 = vrot.slane %v7270_v60, 1 }
 0x2d5   :  { %9643 = vst [vmem:[#allocation5_spill] sm:$0xff] %v7204_v19  ;;  %v2921_v19 = vrot.slane %v7222_v55, 1  ;;  %v2939_v55 = vrot.slane %v7255_v31, 1  ;;  %v2925_v6 = vsel %vm298_vm1, %v2922_v23, %v2924_v33  ;;  %v2949_v31 = vrot.slane %v7273_v63, 1 }
 0x2d6   :  { %v2918_v22 = vsel %vm298_vm1, %v2916_v32, %v2917_v59  ;;  %v2920_v13 = vsel %vm298_vm1, %v2917_v59, %v2919_v8  ;;  %v2930_v25 = vsel %vm298_vm1, %v2927_v42, %v2929_v45  ;;  %v2933_v32 = vsel %vm298_vm1, %v2931_v18, %v2932_v5 }
 0x2d7   :  { %v2923_v56 = vsel %vm298_vm1, %v2921_v19, %v2922_v23  ;;  %v2935_v26 = vsel %vm298_vm1, %v2932_v5, %v2934_v34  ;;  %v2938_v0 = vsel %vm298_vm1, %v2936_v38, %v2937_v14  ;;  %v2940_v60 = vsel %vm298_vm1, %v2937_v14, %v2939_v55 }
 0x2d8   :  { %v2943_v8 = vsel %vm298_vm1, %v2941_v48, %v2942_v51  ;;  %v2951_v59 = vrot.slane %v7276_v9, 1  ;;  %v2945_v33 = vsel %vm298_vm1, %v2942_v51, %v2944_v57  ;;  %v7385_v63 = vsel %vm298_vm1, %v2946_v54, %v2947_v3 }
 0x2d9   :  { %v2952_v19 = vrot.slane %v7279_v43, 1  ;;  %v2954_v46 = vrot.slane %v7282_v39, 1  ;;  %v7390_v23 = vsel %vm298_vm1, %v2947_v3, %v2949_v31  ;;  %v2957_v42 = vrot.slane %v7288_v11, 1 }
 0x2da   :  { %v2959_v45 = vrot.slane %v7291_v17, 1  ;;  %v2961_v9 = vrot.slane %v7294_v1, 1  ;;  %v2962_v18 = vrot.slane %v7297_v37, 1  ;;  %v2964_v5 = vrot.slane %v7300_v27, 1 }
 0x2db   :  { %v2966_v34 = vrot.slane %v7303_v30, 1  ;;  %v2967_v43 = vrot.slane %v7306_v62, 1  ;;  %v2969_v39 = vrot.slane %v7309_v35, 1  ;;  %v2971_v38 = vrot.slane %v7312_v47, 1 }
 0x2dc   :  { %v2974_v11 = vrot.slane %v7318_v29, 1  ;;  %v2976_v17 = vrot.slane %v7321_v21, 1  ;;  %v2977_v1 = vrot.slane %v7324_v58, 1  ;;  %v2979_v37 = vrot.slane %v7327_v24, 1 }
 0x2dd   :  { %v7408_v27 = vsel %vm298_vm1, %v2951_v59, %v2952_v19  ;;  %v7411_v30 = vsel %vm298_vm1, %v2952_v19, %v2954_v46  ;;  %v2981_v62 = vrot.slane %v7330_v53, 1  ;;  %v2982_v47 = vrot.slane %v7333_v4, 1  ;;  %v9648_v46 = vld [vmem:[#allocation42_spill] sm:$0xff] }
 0x2de   :  { %v7416_v7 = vsel %vm298_vm1, %v2956_v36, %v2957_v42  ;;  %v7419_v29 = vsel %vm298_vm1, %v2957_v42, %v2959_v45  ;;  %v7422_v35 = vsel %vm298_vm1, %v2961_v9, %v2962_v18  ;;  %v2984_v24 = vrot.slane %v7336_v52, 1  ;;  %v9649_v42 = vld [vmem:[#allocation48_spill] sm:$0xff] }
 0x2df   :  { %v7426_v21 = vsel %vm298_vm1, %v2962_v18, %v2964_v5  ;;  %v7429_v58 = vsel %vm298_vm1, %v2966_v34, %v2967_v43  ;;  %v7432_v53 = vsel %vm298_vm1, %v2967_v43, %v2969_v39  ;;  %v7435_v4 = vsel %vm298_vm1, %v2971_v38, %v2972_v50  ;;  %v9651_v18 = vld [vmem:[#allocation72_spill] sm:$0xff]  ;;  %v9652_v5 = vld [vmem:[#allocation98_spill] sm:$0xff] }
 0x2e0   :  { %v7438_v14 = vsel %vm298_vm1, %v2972_v50, %v2974_v11  ;;  %v7441_v55 = vsel %vm298_vm1, %v2976_v17, %v2977_v1  ;;  %v7444_v52 = vsel %vm298_vm1, %v2977_v1, %v2979_v37  ;;  %v3018_v48 = vadd.f32 %v7339_v10, %v7099_v49  ;;  %v9658_v17 = vld [vmem:[#allocation55_spill] sm:$0xff]  ;;  %v9659_v1 = vld [vmem:[#allocation70_spill] sm:$0xff] }
 0x2e1   :  { %9644 = vst [vmem:[#allocation76_spill] sm:$0xff] %v7441_v55  ;;  %v7449_v51 = vsel %vm298_vm1, %v2981_v62, %v2982_v47  ;;  %v3019_v57 = vadd.f32 %v7342_v15, %v7030_v12  ;;  %v3020_v54 = vadd.f32 %v7348_v44, %v7108_v40  ;;  %v3021_v3 = vadd.f32 %v7351_v2, %v7035_v41  ;;  %v9650_v15 = vld [vmem:[#allocation35_spill] sm:$0xff]  ;;  %v9653_v2 = vld [vmem:[#allocation52_spill] sm:$0xff]  ;;  %v9660_v37 = vld [vmem:[#allocation46_spill] sm:$0xff] }
 0x2e2   :  { %9645 = vst [vmem:[#allocation22_spill] sm:$0xff] %v7444_v52  ;;  %v7458_v31 = vsel %vm298_vm1, %v2982_v47, %v2984_v24  ;;  %v3022_v59 = vadd.f32 %v2918_v22, %v7111_v16  ;;  %v3082_v19 = vrot.slane %v7099_v49, 2  ;;  %v3083_v10 = vrot.slane %v7030_v12, 2  ;;  %v9654_v49 = vld [vmem:[#allocation6_spill] sm:$0xff]  ;;  %v9655_v12 = vld [vmem:[#allocation12_spill] sm:$0xff] }
 0x2e3   :  { %9646 = vst [vmem:[#allocation100_spill] sm:$0xff] %v7449_v51  ;;  %v3023_v36 = vadd.f32 %v2920_v13, %v9648_v46  ;;  %v3024_v45 = vadd.f32 %v2923_v56, %v9649_v42  ;;  %v3025_v9 = vadd.f32 %v2925_v6, %v9650_v15  ;;  %v3085_v44 = vrot.slane %v9651_v18, 2  ;;  %v9656_v56 = vld [vmem:[#allocation2_spill] sm:$0xff]  ;;  %v9657_v6 = vld [vmem:[#allocation37_spill] sm:$0xff]  ;;  %v9661_v62 = vld [vmem:[#allocation24_spill] sm:$0xff] }
 0x2e4   :  { %9647 = vst [vmem:[#allocation101_spill] sm:$0xff] %v7458_v31  ;;  %v3026_v34 = vadd.f32 %v2928_v20, %v9652_v5  ;;  %v7469_v43 = vadd.f32 %v2930_v25, %v9653_v2  ;;  %v3087_v39 = vrot.slane %v7108_v40, 2  ;;  %v3088_v22 = vrot.slane %v7035_v41, 2  ;;  %v9662_v24 = vld [vmem:[#allocation36_spill] sm:$0xff]  ;;  %v9665_v51 = vld [vmem:[#allocation73_spill] sm:$0xff] }
 0x2e5   :  { %v7474_v38 = vadd.f32 %v2933_v32, %v9654_v49  ;;  %v7477_v13 = vadd.f32 %v2935_v26, %v9655_v12  ;;  %v7480_v50 = vadd.f32 %v2938_v0, %v9656_v56  ;;  %v3090_v11 = vrot.slane %v9657_v6, 2  ;;  %v9663_v18 = vld [vmem:[#allocation64_spill] sm:$0xff] }
 0x2e6   :  { %v7484_v20 = vadd.f32 %v2940_v60, %v9658_v17  ;;  %v3084_v25 = vsel %vm479_vm2, %v3082_v19, %v3083_v10  ;;  %v3092_v40 = vrot.slane %v7111_v16, 2  ;;  %v3093_v41 = vrot.slane %v9648_v46, 2  ;;  %v9664_v6 = vld [vmem:[#allocation20_spill] sm:$0xff] }
 0x2e7   :  { %v7490_v32 = vadd.f32 %v2943_v8, %v9659_v1  ;;  %v7493_v26 = vadd.f32 %v2945_v33, %v9660_v37  ;;  %v3086_v0 = vsel %vm479_vm2, %v3083_v10, %v3085_v44  ;;  %v3095_v47 = vrot.slane %v9661_v62, 2 }
 0x2e8   :  { %v7499_v60 = vadd.f32 %v7385_v63, %v9662_v24  ;;  %v3089_v19 = vsel %vm479_vm2, %v3087_v39, %v3088_v22  ;;  %v3097_v16 = vrot.slane %v9649_v42, 2  ;;  %v3098_v46 = vrot.slane %v9650_v15, 2 }
 0x2e9   :  { %v7506_v8 = vadd.f32 %v7390_v23, %v9663_v18  ;;  %v3091_v33 = vsel %vm479_vm2, %v3088_v22, %v3090_v11  ;;  %v3100_v10 = vrot.slane %v9664_v6, 2  ;;  %v3194_v44 = vadd.f32 %v3084_v25, %v3018_v48  ;;  %v9666_v48 = vld [vmem:[#allocation23_spill] sm:$0xff]  ;;  %v9673_v6 = vld [vmem:[#allocation74_spill] sm:$0xff] }
 0x2ea   :  { %v3094_v62 = vsel %vm479_vm2, %v3092_v40, %v3093_v41  ;;  %v3102_v63 = vrot.slane %v9652_v5, 2  ;;  %v3103_v31 = vrot.slane %v9653_v2, 2  ;;  %v3195_v39 = vadd.f32 %v3086_v0, %v3019_v57  ;;  %v9667_v57 = vld [vmem:[#allocation38_spill] sm:$0xff] }
 0x2eb   :  { %v3096_v42 = vsel %vm479_vm2, %v3093_v41, %v3095_v47  ;;  %v3105_v15 = vrot.slane %v9665_v51, 2  ;;  %v3107_v52 = vrot.slane %v9654_v49, 2  ;;  %v3196_v23 = vadd.f32 %v3089_v19, %v3020_v54  ;;  %3227 = vst.msk [vmem:[%s7749_s1] sm:$0xff] %vm3226_vm6, %v3194_v44  ;;  %v9669_v41 = vld [vmem:[#allocation8_spill] sm:$0xff] }
 0x2ec   :  { %v3099_v55 = vsel %vm479_vm2, %v3097_v16, %v3098_v46  ;;  %v3108_v22 = vrot.slane %v9655_v12, 2  ;;  %v3197_v11 = vadd.f32 %v3091_v33, %v3021_v3  ;;  %v7520_v25 = vadd.f32 %v7408_v27, %v9666_v48  ;;  %3228 = vst.msk [vmem:[%s7749_s1 + $0x8] sm:$0xff] %vm3226_vm6, %v3195_v39  ;;  %v9668_v27 = vld [vmem:[#allocation29_spill] sm:$0xff]  ;;  %v9675_v39 = vld [vmem:[#allocation39_spill] sm:$0xff] }
 0x2ed   :  { %v3101_v5 = vsel %vm479_vm2, %v3098_v46, %v3100_v10  ;;  %v3110_v2 = vrot.slane %v9667_v57, 2  ;;  %v3198_v40 = vadd.f32 %v3094_v62, %v3022_v59  ;;  %v3104_v51 = vsel %vm479_vm2, %v3102_v63, %v3103_v31  ;;  %3229 = vst.msk [vmem:[%s7749_s1 + $0x10] sm:$0xff] %vm3226_vm6, %v3196_v23 }
 0x2ee   :  { %v3112_v54 = vrot.slane %v9656_v56, 2  ;;  %v3113_v3 = vrot.slane %v9658_v17, 2  ;;  %v3199_v49 = vadd.f32 %v3096_v42, %v3023_v36  ;;  %v7537_v59 = vadd.f32 %v7411_v30, %v9668_v27  ;;  %3230 = vst.msk [vmem:[%s7749_s1 + $0x18] sm:$0xff] %vm3226_vm6, %v3197_v11  ;;  %v9670_v30 = vld [vmem:[#allocation19_spill] sm:$0xff] }
 0x2ef   :  { %v3106_v12 = vsel %vm479_vm2, %v3103_v31, %v3105_v15  ;;  %v3115_v0 = vrot.slane %v9669_v41, 2  ;;  %v3200_v47 = vadd.f32 %v3099_v55, %v3024_v45  ;;  %v3109_v36 = vsel %vm479_vm2, %v3107_v52, %v3108_v22  ;;  %v9671_v45 = vld [vmem:[#allocation4_spill] sm:$0xff]  ;;  %3231 = vst.msk [vmem:[%s7749_s1 + $0x20] sm:$0xff] %vm3226_vm6, %v3198_v40 }
 0x2f0   :  { %v3117_v56 = vrot.slane %v9659_v1, 2  ;;  %v3118_v17 = vrot.slane %v9660_v37, 2  ;;  %v3201_v19 = vadd.f32 %v3101_v5, %v3025_v9  ;;  %v7554_v55 = vadd.f32 %v7416_v7, %v9670_v30  ;;  %3232 = vst.msk [vmem:[%s7749_s1 + $0x28] sm:$0xff] %vm3226_vm6, %v3199_v49  ;;  %v9672_v7 = vld [vmem:[#allocation89_spill] sm:$0xff] }
 0x2f1   :  { %v3111_v31 = vsel %vm479_vm2, %v3108_v22, %v3110_v2  ;;  %v3120_v16 = vrot.slane %v9671_v45, 2  ;;  %v3202_v46 = vadd.f32 %v3104_v51, %v3026_v34  ;;  %v3114_v52 = vsel %vm479_vm2, %v3112_v54, %v3113_v3  ;;  %3233 = vst.msk [vmem:[%s7749_s1 + $0x30] sm:$0xff] %vm3226_vm6, %v3200_v47  ;;  %v9677_v5 = vld [vmem:[#allocation25_spill] sm:$0xff] }
 0x2f2   :  { %v3122_v9 = vrot.slane %v9662_v24, 2  ;;  %v3123_v1 = vrot.slane %v9663_v18, 2  ;;  %v3203_v37 = vadd.f32 %v3106_v12, %v7469_v43  ;;  %v3039_v34 = vadd.f32 %v7419_v29, %v9672_v7  ;;  %3234 = vst.msk [vmem:[%s7749_s1 + $0x38] sm:$0xff] %vm3226_vm6, %v3201_v19  ;;  %v9674_v29 = vld [vmem:[#allocation71_spill] sm:$0xff]  ;;  %v9679_v49 = vld [vmem:[#allocation21_spill] sm:$0xff] }
 0x2f3   :  { %v3116_v33 = vsel %vm479_vm2, %v3113_v3, %v3115_v0  ;;  %v3125_v10 = vrot.slane %v9673_v6, 2  ;;  %v3204_v44 = vadd.f32 %v3109_v36, %v7474_v38  ;;  %v3119_v43 = vsel %vm479_vm2, %v3117_v56, %v3118_v17  ;;  %3235 = vst.msk [vmem:[%s7749_s1 + $0x40] sm:$0xff] %vm3226_vm6, %v3202_v46  ;;  %v9680_v36 = vld [vmem:[#allocation75_spill] sm:$0xff] }
 0x2f4   :  { %v3127_v24 = vrot.slane %v9666_v48, 2  ;;  %v3128_v18 = vrot.slane %v9668_v27, 2  ;;  %v3205_v62 = vadd.f32 %v3111_v31, %v7477_v13  ;;  %v3040_v38 = vadd.f32 %v7422_v35, %v9674_v29  ;;  %3236 = vst.msk [vmem:[%s7749_s1 + $0x48] sm:$0xff] %vm3226_vm6, %v3203_v37  ;;  %v9676_v35 = vld [vmem:[#allocation47_spill] sm:$0xff] }
 0x2f5   :  { %v3121_v63 = vsel %vm479_vm2, %v3118_v17, %v3120_v16  ;;  %v3130_v42 = vrot.slane %v9675_v39, 2  ;;  %v3206_v15 = vadd.f32 %v3114_v52, %v7480_v50  ;;  %v3124_v13 = vsel %vm479_vm2, %v3122_v9, %v3123_v1  ;;  %3237 = vst.msk [vmem:[%s7749_s1 + $0x50] sm:$0xff] %vm3226_vm6, %v3204_v44  ;;  %v9683_v52 = vld [vmem:[#allocation7_spill] sm:$0xff] }
 0x2f6   :  { %v3132_v23 = vrot.slane %v9670_v30, 2  ;;  %v3133_v22 = vrot.slane %v9672_v7, 2  ;;  %v3207_v11 = vadd.f32 %v3116_v33, %v7484_v20  ;;  %v3041_v50 = vadd.f32 %v7426_v21, %v9676_v35  ;;  %3238 = vst.msk [vmem:[%s7749_s1 + $0x58] sm:$0xff] %vm3226_vm6, %v3205_v62  ;;  %v9678_v21 = vld [vmem:[#allocation69_spill] sm:$0xff]  ;;  %v9681_v30 = vld [vmem:[#allocation92_spill] sm:$0xff] }
 0x2f7   :  { %v3126_v48 = vsel %vm479_vm2, %v3123_v1, %v3125_v10  ;;  %v3135_v57 = vrot.slane %v9677_v5, 2  ;;  %v3208_v2 = vadd.f32 %v3119_v43, %v7490_v32  ;;  %v3129_v20 = vsel %vm479_vm2, %v3127_v24, %v3128_v18  ;;  %3239 = vst.msk [vmem:[%s7749_s1 + $0x60] sm:$0xff] %vm3226_vm6, %v3206_v15  ;;  %v9684_v1 = vld [vmem:[#allocation13_spill] sm:$0xff]  ;;  %v9686_v10 = vld [vmem:[#allocation3_spill] sm:$0xff] }
 0x2f8   :  { %v3137_v40 = vrot.slane %v9674_v29, 2  ;;  %v3138_v51 = vrot.slane %v9676_v35, 2  ;;  %v3209_v54 = vadd.f32 %v3121_v63, %v7493_v26  ;;  %v3042_v32 = vadd.f32 %v7429_v58, %v9678_v21  ;;  %3240 = vst.msk [vmem:[%s7749_s1 + $0x68] sm:$0xff] %vm3226_vm6, %v3207_v11  ;;  %v9687_v43 = vld [vmem:[#allocation95_spill] sm:$0xff] }
 0x2f9   :  { %v3131_v3 = vsel %vm479_vm2, %v3128_v18, %v3130_v42  ;;  %v3140_v27 = vrot.slane %v9679_v49, 2  ;;  %v3210_v12 = vadd.f32 %v3124_v13, %v7499_v60  ;;  %v3134_v26 = vsel %vm479_vm2, %v3132_v23, %v3133_v22  ;;  %3241 = vst.msk [vmem:[%s7749_s1 + $0x70] sm:$0xff] %vm3226_vm6, %v3208_v2  ;;  %v9690_v42 = vld [vmem:[#allocation22_spill] sm:$0xff] }
 0x2fa   :  { %v3142_v41 = vrot.slane %v9678_v21, 2  ;;  %v3143_v0 = vrot.slane %v7093_v61, 2  ;;  %v3211_v47 = vadd.f32 %v3126_v48, %v7506_v8  ;;  %v3043_v58 = vadd.f32 %v7432_v53, %v7093_v61  ;;  %3242 = vst.msk [vmem:[%s7749_s1 + $0x78] sm:$0xff] %vm3226_vm6, %v3209_v54  ;;  %v9692_v48 = vld [vmem:[#allocation101_spill] sm:$0xff] }
 0x2fb   :  { %v3136_v60 = vsel %vm479_vm2, %v3133_v22, %v3135_v57  ;;  %v3145_v56 = vrot.slane %v9680_v36, 2  ;;  %v3212_v17 = vadd.f32 %v3129_v20, %v7520_v25  ;;  %v3139_v8 = vsel %vm479_vm2, %v3137_v40, %v3138_v51  ;;  %v9682_v25 = vld [vmem:[#allocation40_spill] sm:$0xff]  ;;  %3243 = vst.msk [vmem:[%s7749_s1 + $0x80] sm:$0xff] %vm3226_vm6, %v3210_v12 }
 0x2fc   :  { %v3147_v19 = vrot.slane %v7144_v28, 2  ;;  %v3148_v31 = vrot.slane %v9681_v30, 2  ;;  %v3213_v45 = vadd.f32 %v3131_v3, %v7537_v59  ;;  %v3044_v61 = vadd.f32 %v7435_v4, %v7144_v28  ;;  %3244 = vst.msk [vmem:[%s7749_s1 + $0x88] sm:$0xff] %vm3226_vm6, %v3211_v47  ;;  %v9691_v22 = vld [vmem:[#allocation100_spill] sm:$0xff] }
 0x2fd   :  { %v3141_v53 = vsel %vm479_vm2, %v3138_v51, %v3140_v27  ;;  %v3150_v16 = vrot.slane %v9682_v25, 2  ;;  %v3214_v46 = vadd.f32 %v3134_v26, %v7554_v55  ;;  %v3144_v59 = vsel %vm479_vm2, %v3142_v41, %v3143_v0  ;;  %v9685_v55 = vld [vmem:[#allocation9_spill] sm:$0xff]  ;;  %3245 = vst.msk [vmem:[%s7749_s1 + $0x90] sm:$0xff] %vm3226_vm6, %v3212_v17 }
 0x2fe   :  { %v3152_v9 = vrot.slane %v9683_v52, 2  ;;  %v3153_v37 = vrot.slane %v9684_v1, 2  ;;  %v3215_v7 = vadd.f32 %v3136_v60, %v3039_v34  ;;  %v3045_v28 = vadd.f32 %v7438_v14, %v9681_v30  ;;  %3246 = vst.msk [vmem:[%s7749_s1 + $0x98] sm:$0xff] %vm3226_vm6, %v3213_v45  ;;  %v9688_v14 = vld [vmem:[#allocation76_spill] sm:$0xff] }
 0x2ff   :  { %v3146_v4 = vsel %vm479_vm2, %v3143_v0, %v3145_v56  ;;  %v3155_v33 = vrot.slane %v9685_v55, 2  ;;  %v3216_v6 = vadd.f32 %v3139_v8, %v3040_v38  ;;  %v3149_v34 = vsel %vm479_vm2, %v3147_v19, %v3148_v31  ;;  %v9689_v38 = vld [vmem:[#allocation5_spill] sm:$0xff]  ;;  %3247 = vst.msk [vmem:[%s7749_s1 + $0xa0] sm:$0xff] %vm3226_vm6, %v3214_v46 }
 0x300   :  { %v3157_v44 = vrot.slane %v9686_v10, 2  ;;  %v3158_v24 = vrot.slane %v9687_v43, 2  ;;  %v3217_v18 = vadd.f32 %v3141_v53, %v3041_v50  ;;  %v3046_v62 = vadd.f32 %v9688_v14, %v9683_v52  ;;  %3248 = vst.msk [vmem:[%s7749_s1 + $0xa8] sm:$0xff] %vm3226_vm6, %v3215_v7 }
 0x301   :  { %v3151_v29 = vsel %vm479_vm2, %v3148_v31, %v3150_v16  ;;  %v3160_v63 = vrot.slane %v9689_v38, 2  ;;  %v3218_v39 = vadd.f32 %v3144_v59, %v3042_v32  ;;  %v3047_v15 = vadd.f32 %v9690_v42, %v9684_v1  ;;  %3249 = vst.msk [vmem:[%s7749_s1 + $0xb0] sm:$0xff] %vm3226_vm6, %v3216_v6 }
 0x302   :  { %v3154_v13 = vsel %vm479_vm2, %v3152_v9, %v3153_v37  ;;  %v3219_v23 = vadd.f32 %v3146_v4, %v3043_v58  ;;  %v3048_v11 = vadd.f32 %v9691_v22, %v9686_v10  ;;  %v3156_v35 = vsel %vm479_vm2, %v3153_v37, %v3155_v33  ;;  %3250 = vst.msk [vmem:[%s7749_s1 + $0xb8] sm:$0xff] %vm3226_vm6, %v3217_v18 }
 0x303   :  { %v3220_v50 = vadd.f32 %v3149_v34, %v3044_v61  ;;  %v3049_v5 = vadd.f32 %v9692_v48, %v9687_v43  ;;  %v3159_v57 = vsel %vm479_vm2, %v3157_v44, %v3158_v24  ;;  %v3221_v2 = vadd.f32 %v3151_v29, %v3045_v28  ;;  %3251 = vst.msk [vmem:[%s7749_s1 + $0xc0] sm:$0xff] %vm3226_vm6, %v3218_v39 }
 0x304   :  { %v3161_v20 = vsel %vm479_vm2, %v3158_v24, %v3160_v63  ;;  %v3222_v40 = vadd.f32 %v3154_v13, %v3046_v62  ;;  %v3223_v51 = vadd.f32 %v3156_v35, %v3047_v15  ;;  %3252 = vst.msk [vmem:[%s7749_s1 + $0xc8] sm:$0xff] %vm3226_vm6, %v3219_v23  ;;  %v3224_v54 = vadd.f32 %v3159_v57, %v3048_v11 }
 0x305   :  { %3253 = vst.msk [vmem:[%s7749_s1 + $0xd0] sm:$0xff] %vm3226_vm6, %v3220_v50  ;;  %v3225_v21 = vadd.f32 %v3161_v20, %v3049_v5 }
 0x306   :  { %3254 = vst.msk [vmem:[%s7749_s1 + $0xd8] sm:$0xff] %vm3226_vm6, %v3221_v2 }
 0x307   :  { %3255 = vst.msk [vmem:[%s7749_s1 + $0xe0] sm:$0xff] %vm3226_vm6, %v3222_v40 }
 0x308   :  { %3256 = vst.msk [vmem:[%s7749_s1 + $0xe8] sm:$0xff] %vm3226_vm6, %v3223_v51 }
 0x309   :  { %3257 = vst.msk [vmem:[%s7749_s1 + $0xf0] sm:$0xff] %vm3226_vm6, %v3224_v54 }
 0x30a   :  { %3258 = vst.msk [vmem:[%s7749_s1 + $0xf8] sm:$0xff] %vm3226_vm6, %v3225_v21 }

</bundles_post_ra>
